<compile_context>
chip_gen: v7x
topology: tpu7x:2x2x1
jax: 0.10.0
libtpu: 0.0.40
codegen_flags: <defaults>
</compile_context>

<pallas_src>
import math

import numpy as np
import jax
import jax.numpy as jnp
from jax.experimental import pallas as pl
from jax.experimental.pallas import tpu as pltpu


# Flattened-spatial grid widths used inside the kernel.
_W1 = 32   # conv1 input grid: 32x32  -> flat 1024 (= 8 x 128 lanes, aligned)
_W2 = 16   # conv2 input grid: 14x14 valid placed on a 16x16 grid -> flat 256


def _shl(v, d):
    """v: [R, N].  Returns u with u[:, p] = v[:, p + d] (wrap-around at the
    tail; wrapped positions are never read when producing valid outputs)."""
    if d == 0:
        return v
    return jnp.concatenate([v[:, d:], v[:, :d]], axis=1)


def _net_kernel(x_ref, w1_ref, b1_ref, s1_ref, w2_ref, b2_ref, s2_ref,
                f1w_ref, f1b_ref, f2w_ref, f2b_ref, f3w_ref, f3b_ref, o_ref):
    f32 = jnp.float32
    x0 = x_ref[0]                                                  # [3, 1024]

    # ---- conv1 (3->6, 5x5, valid) : one K=75 matmul over 25 shifted copies.
    x1 = jnp.concatenate(
        [_shl(x0, i * _W1 + j) for i in range(5) for j in range(5)], axis=0)  # [75, 1024]
    h1 = jnp.dot(w1_ref[...], x1, preferred_element_type=f32) + b1_ref[...]   # [6, 1024]
    h1 = jnp.maximum(h1, 0.0)

    # ---- maxpool1 (2x2 stride 2) on the valid 28x28 region: window max via
    # shifts, then a 0/1 selection matmul gathering the 14x14 strided samples
    # onto an aligned 16x16 grid (flat 256 lanes).
    m1 = jnp.maximum(jnp.maximum(h1, _shl(h1, 1)),
                     jnp.maximum(_shl(h1, _W1), _shl(h1, _W1 + 1)))
    p1 = jnp.dot(m1, s1_ref[...], preferred_element_type=f32)                 # [6, 256]

    # ---- conv2 (6->16, 5x5, valid) on the 14x14 map.
    x2 = jnp.concatenate(
        [_shl(p1, i * _W2 + j) for i in range(5) for j in range(5)], axis=0)  # [150, 256]
    h2 = jnp.dot(w2_ref[...], x2, preferred_element_type=f32) + b2_ref[...]   # [16, 256]
    h2 = jnp.maximum(h2, 0.0)

    # ---- maxpool2 (2x2 stride 2) on the valid 10x10 region -> 5x5 (flat 25).
    m2 = jnp.maximum(jnp.maximum(h2, _shl(h2, 1)),
                     jnp.maximum(_shl(h2, _W2), _shl(h2, _W2 + 1)))
    p2 = jnp.dot(m2, s2_ref[...], preferred_element_type=f32)                 # [16, 25]

    # ---- flatten in (C, H, W) order (matches torch's x.view(-1, 400)).
    feat = jnp.concatenate([p2[c:c + 1, :] for c in range(16)], axis=1)       # [1, 400]

    # ---- fc1 -> fc2 -> fc3
    a1 = jnp.maximum(
        jnp.dot(feat, f1w_ref[...], preferred_element_type=f32) + f1b_ref[...], 0.0)
    a2 = jnp.maximum(
        jnp.dot(a1, f2w_ref[...], preferred_element_type=f32) + f2b_ref[...], 0.0)
    o_ref[0] = jnp.dot(a2, f3w_ref[...], preferred_element_type=f32) + f3b_ref[...]


# ----------------------------------------------------------------------------
# One-time parameter packing (kernel-friendly layouts)
# ----------------------------------------------------------------------------

def _pool_select(in_w, n_valid, out_w):
    """[in_w*in_w, out_w*out_w] 0/1 matrix: column (py*out_w + px) selects the
    flat input position (2*py)*in_w + 2*px (top-left corner of each 2x2 window,
    which after the shift-max holds the window maximum)."""
    s = np.zeros((in_w * in_w, out_w * out_w), np.float32)
    for py in range(n_valid):
        for px in range(n_valid):
            s[(2 * py) * in_w + 2 * px, py * out_w + px] = 1.0
    return s


def pack_params(p):
    """Repack PyTorch-layout params once into the layouts the kernel expects."""
    return {
        # Conv weights as [O, KH*KW*C] with column order (i, j, c) -- matches
        # the in-kernel stack of shifted input copies.
        "w1": jnp.transpose(p["conv1_w"], (0, 2, 3, 1)).reshape(6, 75),
        "b1": p["conv1_b"].reshape(6, 1),
        "w2": jnp.transpose(p["conv2_w"], (0, 2, 3, 1)).reshape(16, 150),
        "b2": p["conv2_b"].reshape(16, 1),
        # Max-pool strided-selection matrices (static constants).
        "s1": jnp.asarray(_pool_select(32, 14, 16)),   # [1024, 256]
        "s2": jnp.asarray(_pool_select(16, 5, 5)),     # [256, 25]
        # FC weights pre-transposed to [in, out].
        "f1w": p["fc1_w"].T, "f1b": p["fc1_b"].reshape(1, 120),
        "f2w": p["fc2_w"].T, "f2b": p["fc2_b"].reshape(1, 84),
        "f3w": p["fc3_w"].T, "f3b": p["fc3_b"].reshape(1, 10),
    }


# ----------------------------------------------------------------------------
# Forward pass (mirrors Net.forward) -- one pallas_call, grid over batch
# ----------------------------------------------------------------------------

def net_forward(packed, x):
    """x: [B, 3, 32, 32] float32 (NCHW, like PyTorch).  Returns [B, 10]."""
    b = x.shape[0]
    assert x.shape[1:] == (3, 32, 32), x.shape
    xr = x.reshape(b, 3, 32 * 32)                   # contiguous -> free reshape

    order = ("w1", "b1", "s1", "w2", "b2", "s2",
             "f1w", "f1b", "f2w", "f2b", "f3w", "f3b")
    weights = tuple(packed[k] for k in order)

    def _resident(arr):
        nd = arr.ndim
        # Full-array block, constant index map -> stays resident in VMEM.
        return pl.BlockSpec(arr.shape, lambda i, _nd=nd: (0,) * _nd)

    out = pl.pallas_call(
        _net_kernel,
        out_shape=jax.ShapeDtypeStruct((b, 1, 10), jnp.float32),
        grid=(b,),
        in_specs=[pl.BlockSpec((1, 3, 32 * 32), lambda i: (i, 0, 0))]
                 + [_resident(w) for w in weights],
        out_specs=pl.BlockSpec((1, 1, 10), lambda i: (i, 0, 0)),
        compiler_params=pltpu.CompilerParams(
            dimension_semantics=("parallel",),        # v7x: 2 TCs split batch
            vmem_limit_bytes=32 * 1024 * 1024),
    )(xr, *weights)
    return out.reshape(b, 10)


# ----------------------------------------------------------------------------
# Parameter init (deterministic, PyTorch-default-style uniform)
# ----------------------------------------------------------------------------

def _uniform(key, shape, fan_in):
    bound = 1.0 / math.sqrt(fan_in)
    return jax.random.uniform(key, shape, jnp.float32, -bound, bound)


def init_params(key):
    ks = jax.random.split(key, 10)
    p = {}
    p["conv1_w"] = _uniform(ks[0], (6, 3, 5, 5), 3 * 5 * 5)
    p["conv1_b"] = _uniform(ks[1], (6,), 3 * 5 * 5)
    p["conv2_w"] = _uniform(ks[2], (16, 6, 5, 5), 6 * 5 * 5)
    p["conv2_b"] = _uniform(ks[3], (16,), 6 * 5 * 5)
    p["fc1_w"] = _uniform(ks[4], (120, 16 * 5 * 5), 16 * 5 * 5)   # [out, in] like torch
    p["fc1_b"] = _uniform(ks[5], (120,), 16 * 5 * 5)
    p["fc2_w"] = _uniform(ks[6], (84, 120), 120)
    p["fc2_b"] = _uniform(ks[7], (84,), 120)
    p["fc3_w"] = _uniform(ks[8], (10, 84), 84)
    p["fc3_b"] = _uniform(ks[9], (10,), 84)
    return p


# ----------------------------------------------------------------------------
# Pure-JAX reference (same math as Net.forward) for an in-script sanity check
# ----------------------------------------------------------------------------

def _reference_forward(p, x):
    hp = jax.lax.Precision.HIGHEST
    dn = ("NCHW", "OIHW", "NCHW")
    h = jax.lax.conv_general_dilated(x, p["conv1_w"], (1, 1), "VALID",
                                     dimension_numbers=dn, precision=hp)
    h = jax.nn.relu(h + p["conv1_b"].reshape(1, -1, 1, 1))
    h = jax.lax.reduce_window(h, -jnp.inf, jax.lax.max,
                              (1, 1, 2, 2), (1, 1, 2, 2), "VALID")
    h = jax.lax.conv_general_dilated(h, p["conv2_w"], (1, 1), "VALID",
                                     dimension_numbers=dn, precision=hp)
    h = jax.nn.relu(h + p["conv2_b"].reshape(1, -1, 1, 1))
    h = jax.lax.reduce_window(h, -jnp.inf, jax.lax.max,
                              (1, 1, 2, 2), (1, 1, 2, 2), "VALID")
    h = h.reshape(h.shape[0], 16 * 5 * 5)
    h = jax.nn.relu(jnp.dot(h, p["fc1_w"].T, precision=hp) + p["fc1_b"])
    h = jax.nn.relu(jnp.dot(h, p["fc2_w"].T, precision=hp) + p["fc2_b"])
    return jnp.dot(h, p["fc3_w"].T, precision=hp) + p["fc3_b"]


if __name__ == "__main__":
    key = jax.random.PRNGKey(0)
    pkey, xkey = jax.random.split(key)
    params = init_params(pkey)
    packed = pack_params(params)                      # one-time weight packing
    # Spatial size must be 32x32 so the flatten hits 16*5*5, exactly as in Net.
    x = jax.random.normal(xkey, (2, 3, 32, 32), jnp.float32)

    logits = jax.block_until_ready(jax.jit(net_forward)(packed, x))

    assert logits.shape == (2, 10), logits.shape
    assert logits.dtype == jnp.float32
    assert bool(jnp.all(jnp.isfinite(logits)))

    # Cross-check the fused kernel against an XLA reference of the same net.
    ref = jax.block_until_ready(jax.jit(_reference_forward)(params, x))
    err = float(jnp.max(jnp.abs(logits - ref)))
    tol = 1e-2 * (1.0 + float(jnp.max(jnp.abs(ref))))
    assert err < tol, (err, tol)

    print("KERNEL_OK")
</pallas_src>

<mosaic_0001>
module attributes {stable_mosaic.version = 11 : i64} {
  func.func @_net_kernel(%arg0: i32, %arg1: memref<1x3x1024xf32, #tpu.memory_space<vmem>>, %arg2: memref<6x75xf32, #tpu.memory_space<vmem>>, %arg3: memref<6x1xf32, #tpu.memory_space<vmem>>, %arg4: memref<1024x256xf32, #tpu.memory_space<vmem>>, %arg5: memref<16x150xf32, #tpu.memory_space<vmem>>, %arg6: memref<16x1xf32, #tpu.memory_space<vmem>>, %arg7: memref<256x25xf32, #tpu.memory_space<vmem>>, %arg8: memref<400x120xf32, #tpu.memory_space<vmem>>, %arg9: memref<1x120xf32, #tpu.memory_space<vmem>>, %arg10: memref<120x84xf32, #tpu.memory_space<vmem>>, %arg11: memref<1x84xf32, #tpu.memory_space<vmem>>, %arg12: memref<84x10xf32, #tpu.memory_space<vmem>>, %arg13: memref<1x10xf32, #tpu.memory_space<vmem>>, %arg14: memref<1x1x10xf32, #tpu.memory_space<vmem>>) attributes {dimension_semantics = [#tpu.dimension_semantics<parallel>], iteration_bounds = array<i64: 2>, scalar_prefetch = 0 : i64, scratch_operands = 0 : i64, tpu.core_type = #tpu.core_type<tc>, window_params = [{transform_indices = @transform_0, window_bounds = array<i64: 1, 3, 1024>}, {pipeline_mode = #tpu.pipeline_mode<synchronous>, transform_indices = @transform_1, window_bounds = array<i64: 6, 75>}, {pipeline_mode = #tpu.pipeline_mode<synchronous>, transform_indices = @transform_2, window_bounds = array<i64: 6, 1>}, {pipeline_mode = #tpu.pipeline_mode<synchronous>, transform_indices = @transform_3, window_bounds = array<i64: 1024, 256>}, {pipeline_mode = #tpu.pipeline_mode<synchronous>, transform_indices = @transform_4, window_bounds = array<i64: 16, 150>}, {pipeline_mode = #tpu.pipeline_mode<synchronous>, transform_indices = @transform_5, window_bounds = array<i64: 16, 1>}, {pipeline_mode = #tpu.pipeline_mode<synchronous>, transform_indices = @transform_6, window_bounds = array<i64: 256, 25>}, {pipeline_mode = #tpu.pipeline_mode<synchronous>, transform_indices = @transform_7, window_bounds = array<i64: 400, 120>}, {pipeline_mode = #tpu.pipeline_mode<synchronous>, transform_indices = @transform_8, window_bounds = array<i64: 1, 120>}, {pipeline_mode = #tpu.pipeline_mode<synchronous>, transform_indices = @transform_9, window_bounds = array<i64: 120, 84>}, {pipeline_mode = #tpu.pipeline_mode<synchronous>, transform_indices = @transform_10, window_bounds = array<i64: 1, 84>}, {pipeline_mode = #tpu.pipeline_mode<synchronous>, transform_indices = @transform_11, window_bounds = array<i64: 84, 10>}, {pipeline_mode = #tpu.pipeline_mode<synchronous>, transform_indices = @transform_12, window_bounds = array<i64: 1, 10>}, {transform_indices = @transform_13, window_bounds = array<i64: 1, 1, 10>}]} {
    %c0 = arith.constant 0 : index
    %c0_0 = arith.constant 0 : index
    %c0_1 = arith.constant 0 : index
    %0 = vector.load %arg1[%c0, %c0_0, %c0_1] : memref<1x3x1024xf32, #tpu.memory_space<vmem>>, vector<1x3x1024xf32>
    %1 = vector.shape_cast %0 : vector<1x3x1024xf32> to vector<3x1024xf32>
    %2 = vector.extract_strided_slice %1 {offsets = [0, 1], sizes = [3, 1023], strides = [1, 1]} : vector<3x1024xf32> to vector<3x1023xf32>
    %3 = vector.extract_strided_slice %1 {offsets = [0, 0], sizes = [3, 1], strides = [1, 1]} : vector<3x1024xf32> to vector<3x1xf32>
    %4 = tpu.concatenate %2, %3 in 1 : vector<3x1023xf32>, vector<3x1xf32> -> vector<3x1024xf32>
    %5 = vector.extract_strided_slice %1 {offsets = [0, 2], sizes = [3, 1022], strides = [1, 1]} : vector<3x1024xf32> to vector<3x1022xf32>
    %6 = vector.extract_strided_slice %1 {offsets = [0, 0], sizes = [3, 2], strides = [1, 1]} : vector<3x1024xf32> to vector<3x2xf32>
    %7 = tpu.concatenate %5, %6 in 1 : vector<3x1022xf32>, vector<3x2xf32> -> vector<3x1024xf32>
    %8 = vector.extract_strided_slice %1 {offsets = [0, 3], sizes = [3, 1021], strides = [1, 1]} : vector<3x1024xf32> to vector<3x1021xf32>
    %9 = vector.extract_strided_slice %1 {offsets = [0, 0], sizes = [3, 3], strides = [1, 1]} : vector<3x1024xf32> to vector<3x3xf32>
    %10 = tpu.concatenate %8, %9 in 1 : vector<3x1021xf32>, vector<3x3xf32> -> vector<3x1024xf32>
    %11 = vector.extract_strided_slice %1 {offsets = [0, 4], sizes = [3, 1020], strides = [1, 1]} : vector<3x1024xf32> to vector<3x1020xf32>
    %12 = vector.extract_strided_slice %1 {offsets = [0, 0], sizes = [3, 4], strides = [1, 1]} : vector<3x1024xf32> to vector<3x4xf32>
    %13 = tpu.concatenate %11, %12 in 1 : vector<3x1020xf32>, vector<3x4xf32> -> vector<3x1024xf32>
    %14 = vector.extract_strided_slice %1 {offsets = [0, 32], sizes = [3, 992], strides = [1, 1]} : vector<3x1024xf32> to vector<3x992xf32>
    %15 = vector.extract_strided_slice %1 {offsets = [0, 0], sizes = [3, 32], strides = [1, 1]} : vector<3x1024xf32> to vector<3x32xf32>
    %16 = tpu.concatenate %14, %15 in 1 : vector<3x992xf32>, vector<3x32xf32> -> vector<3x1024xf32>
    %17 = vector.extract_strided_slice %1 {offsets = [0, 33], sizes = [3, 991], strides = [1, 1]} : vector<3x1024xf32> to vector<3x991xf32>
    %18 = vector.extract_strided_slice %1 {offsets = [0, 0], sizes = [3, 33], strides = [1, 1]} : vector<3x1024xf32> to vector<3x33xf32>
    %19 = tpu.concatenate %17, %18 in 1 : vector<3x991xf32>, vector<3x33xf32> -> vector<3x1024xf32>
    %20 = vector.extract_strided_slice %1 {offsets = [0, 34], sizes = [3, 990], strides = [1, 1]} : vector<3x1024xf32> to vector<3x990xf32>
    %21 = vector.extract_strided_slice %1 {offsets = [0, 0], sizes = [3, 34], strides = [1, 1]} : vector<3x1024xf32> to vector<3x34xf32>
    %22 = tpu.concatenate %20, %21 in 1 : vector<3x990xf32>, vector<3x34xf32> -> vector<3x1024xf32>
    %23 = vector.extract_strided_slice %1 {offsets = [0, 35], sizes = [3, 989], strides = [1, 1]} : vector<3x1024xf32> to vector<3x989xf32>
    %24 = vector.extract_strided_slice %1 {offsets = [0, 0], sizes = [3, 35], strides = [1, 1]} : vector<3x1024xf32> to vector<3x35xf32>
    %25 = tpu.concatenate %23, %24 in 1 : vector<3x989xf32>, vector<3x35xf32> -> vector<3x1024xf32>
    %26 = vector.extract_strided_slice %1 {offsets = [0, 36], sizes = [3, 988], strides = [1, 1]} : vector<3x1024xf32> to vector<3x988xf32>
    %27 = vector.extract_strided_slice %1 {offsets = [0, 0], sizes = [3, 36], strides = [1, 1]} : vector<3x1024xf32> to vector<3x36xf32>
    %28 = tpu.concatenate %26, %27 in 1 : vector<3x988xf32>, vector<3x36xf32> -> vector<3x1024xf32>
    %29 = vector.extract_strided_slice %1 {offsets = [0, 64], sizes = [3, 960], strides = [1, 1]} : vector<3x1024xf32> to vector<3x960xf32>
    %30 = vector.extract_strided_slice %1 {offsets = [0, 0], sizes = [3, 64], strides = [1, 1]} : vector<3x1024xf32> to vector<3x64xf32>
    %31 = tpu.concatenate %29, %30 in 1 : vector<3x960xf32>, vector<3x64xf32> -> vector<3x1024xf32>
    %32 = vector.extract_strided_slice %1 {offsets = [0, 65], sizes = [3, 959], strides = [1, 1]} : vector<3x1024xf32> to vector<3x959xf32>
    %33 = vector.extract_strided_slice %1 {offsets = [0, 0], sizes = [3, 65], strides = [1, 1]} : vector<3x1024xf32> to vector<3x65xf32>
    %34 = tpu.concatenate %32, %33 in 1 : vector<3x959xf32>, vector<3x65xf32> -> vector<3x1024xf32>
    %35 = vector.extract_strided_slice %1 {offsets = [0, 66], sizes = [3, 958], strides = [1, 1]} : vector<3x1024xf32> to vector<3x958xf32>
    %36 = vector.extract_strided_slice %1 {offsets = [0, 0], sizes = [3, 66], strides = [1, 1]} : vector<3x1024xf32> to vector<3x66xf32>
    %37 = tpu.concatenate %35, %36 in 1 : vector<3x958xf32>, vector<3x66xf32> -> vector<3x1024xf32>
    %38 = vector.extract_strided_slice %1 {offsets = [0, 67], sizes = [3, 957], strides = [1, 1]} : vector<3x1024xf32> to vector<3x957xf32>
    %39 = vector.extract_strided_slice %1 {offsets = [0, 0], sizes = [3, 67], strides = [1, 1]} : vector<3x1024xf32> to vector<3x67xf32>
    %40 = tpu.concatenate %38, %39 in 1 : vector<3x957xf32>, vector<3x67xf32> -> vector<3x1024xf32>
    %41 = vector.extract_strided_slice %1 {offsets = [0, 68], sizes = [3, 956], strides = [1, 1]} : vector<3x1024xf32> to vector<3x956xf32>
    %42 = vector.extract_strided_slice %1 {offsets = [0, 0], sizes = [3, 68], strides = [1, 1]} : vector<3x1024xf32> to vector<3x68xf32>
    %43 = tpu.concatenate %41, %42 in 1 : vector<3x956xf32>, vector<3x68xf32> -> vector<3x1024xf32>
    %44 = vector.extract_strided_slice %1 {offsets = [0, 96], sizes = [3, 928], strides = [1, 1]} : vector<3x1024xf32> to vector<3x928xf32>
    %45 = vector.extract_strided_slice %1 {offsets = [0, 0], sizes = [3, 96], strides = [1, 1]} : vector<3x1024xf32> to vector<3x96xf32>
    %46 = tpu.concatenate %44, %45 in 1 : vector<3x928xf32>, vector<3x96xf32> -> vector<3x1024xf32>
    %47 = vector.extract_strided_slice %1 {offsets = [0, 97], sizes = [3, 927], strides = [1, 1]} : vector<3x1024xf32> to vector<3x927xf32>
    %48 = vector.extract_strided_slice %1 {offsets = [0, 0], sizes = [3, 97], strides = [1, 1]} : vector<3x1024xf32> to vector<3x97xf32>
    %49 = tpu.concatenate %47, %48 in 1 : vector<3x927xf32>, vector<3x97xf32> -> vector<3x1024xf32>
    %50 = vector.extract_strided_slice %1 {offsets = [0, 98], sizes = [3, 926], strides = [1, 1]} : vector<3x1024xf32> to vector<3x926xf32>
    %51 = vector.extract_strided_slice %1 {offsets = [0, 0], sizes = [3, 98], strides = [1, 1]} : vector<3x1024xf32> to vector<3x98xf32>
    %52 = tpu.concatenate %50, %51 in 1 : vector<3x926xf32>, vector<3x98xf32> -> vector<3x1024xf32>
    %53 = vector.extract_strided_slice %1 {offsets = [0, 99], sizes = [3, 925], strides = [1, 1]} : vector<3x1024xf32> to vector<3x925xf32>
    %54 = vector.extract_strided_slice %1 {offsets = [0, 0], sizes = [3, 99], strides = [1, 1]} : vector<3x1024xf32> to vector<3x99xf32>
    %55 = tpu.concatenate %53, %54 in 1 : vector<3x925xf32>, vector<3x99xf32> -> vector<3x1024xf32>
    %56 = vector.extract_strided_slice %1 {offsets = [0, 100], sizes = [3, 924], strides = [1, 1]} : vector<3x1024xf32> to vector<3x924xf32>
    %57 = vector.extract_strided_slice %1 {offsets = [0, 0], sizes = [3, 100], strides = [1, 1]} : vector<3x1024xf32> to vector<3x100xf32>
    %58 = tpu.concatenate %56, %57 in 1 : vector<3x924xf32>, vector<3x100xf32> -> vector<3x1024xf32>
    %59 = vector.extract_strided_slice %1 {offsets = [0, 128], sizes = [3, 896], strides = [1, 1]} : vector<3x1024xf32> to vector<3x896xf32>
    %60 = vector.extract_strided_slice %1 {offsets = [0, 0], sizes = [3, 128], strides = [1, 1]} : vector<3x1024xf32> to vector<3x128xf32>
    %61 = tpu.concatenate %59, %60 in 1 : vector<3x896xf32>, vector<3x128xf32> -> vector<3x1024xf32>
    %62 = vector.extract_strided_slice %1 {offsets = [0, 129], sizes = [3, 895], strides = [1, 1]} : vector<3x1024xf32> to vector<3x895xf32>
    %63 = vector.extract_strided_slice %1 {offsets = [0, 0], sizes = [3, 129], strides = [1, 1]} : vector<3x1024xf32> to vector<3x129xf32>
    %64 = tpu.concatenate %62, %63 in 1 : vector<3x895xf32>, vector<3x129xf32> -> vector<3x1024xf32>
    %65 = vector.extract_strided_slice %1 {offsets = [0, 130], sizes = [3, 894], strides = [1, 1]} : vector<3x1024xf32> to vector<3x894xf32>
    %66 = vector.extract_strided_slice %1 {offsets = [0, 0], sizes = [3, 130], strides = [1, 1]} : vector<3x1024xf32> to vector<3x130xf32>
    %67 = tpu.concatenate %65, %66 in 1 : vector<3x894xf32>, vector<3x130xf32> -> vector<3x1024xf32>
    %68 = vector.extract_strided_slice %1 {offsets = [0, 131], sizes = [3, 893], strides = [1, 1]} : vector<3x1024xf32> to vector<3x893xf32>
    %69 = vector.extract_strided_slice %1 {offsets = [0, 0], sizes = [3, 131], strides = [1, 1]} : vector<3x1024xf32> to vector<3x131xf32>
    %70 = tpu.concatenate %68, %69 in 1 : vector<3x893xf32>, vector<3x131xf32> -> vector<3x1024xf32>
    %71 = vector.extract_strided_slice %1 {offsets = [0, 132], sizes = [3, 892], strides = [1, 1]} : vector<3x1024xf32> to vector<3x892xf32>
    %72 = vector.extract_strided_slice %1 {offsets = [0, 0], sizes = [3, 132], strides = [1, 1]} : vector<3x1024xf32> to vector<3x132xf32>
    %73 = tpu.concatenate %71, %72 in 1 : vector<3x892xf32>, vector<3x132xf32> -> vector<3x1024xf32>
    %74 = tpu.concatenate %1, %4, %7, %10, %13, %16, %19, %22, %25, %28, %31, %34, %37, %40, %43, %46 in 0 : vector<3x1024xf32>, vector<3x1024xf32>, vector<3x1024xf32>, vector<3x1024xf32>, vector<3x1024xf32>, vector<3x1024xf32>, vector<3x1024xf32>, vector<3x1024xf32>, vector<3x1024xf32>, vector<3x1024xf32>, vector<3x1024xf32>, vector<3x1024xf32>, vector<3x1024xf32>, vector<3x1024xf32>, vector<3x1024xf32>, vector<3x1024xf32> -> vector<48x1024xf32>
    %75 = tpu.concatenate %49, %52, %55, %58, %61, %64, %67, %70, %73 in 0 : vector<3x1024xf32>, vector<3x1024xf32>, vector<3x1024xf32>, vector<3x1024xf32>, vector<3x1024xf32>, vector<3x1024xf32>, vector<3x1024xf32>, vector<3x1024xf32>, vector<3x1024xf32> -> vector<27x1024xf32>
    %76 = tpu.concatenate %74, %75 in 0 : vector<48x1024xf32>, vector<27x1024xf32> -> vector<75x1024xf32>
    %c0_2 = arith.constant 0 : index
    %c0_3 = arith.constant 0 : index
    %77 = vector.load %arg2[%c0_2, %c0_3] : memref<6x75xf32, #tpu.memory_space<vmem>>, vector<6x75xf32>
    %cst = arith.constant dense<0.000000e+00> : vector<6x1024xf32>
    %78 = tpu.matmul %77, %76, %cst {dimension_numbers = #tpu.dot_dimension_numbers<[1], [0], [0], [1], [0, 0, 1, 1], [], []>} : vector<6x75xf32>, vector<75x1024xf32>, vector<6x1024xf32> -> vector<6x1024xf32>
    %c0_4 = arith.constant 0 : index
    %c0_5 = arith.constant 0 : index
    %79 = vector.load %arg3[%c0_4, %c0_5] : memref<6x1xf32, #tpu.memory_space<vmem>>, vector<6x1xf32>
    %80 = vector.broadcast %79 : vector<6x1xf32> to vector<6x1024xf32>
    %81 = arith.addf %78, %80 : vector<6x1024xf32>
    %cst_6 = arith.constant 0.000000e+00 : f32
    %82 = vector.broadcast %cst_6 : f32 to vector<6x1024xf32>
    %83 = arith.maximumf %81, %82 : vector<6x1024xf32>
    %84 = vector.extract_strided_slice %83 {offsets = [0, 1], sizes = [6, 1023], strides = [1, 1]} : vector<6x1024xf32> to vector<6x1023xf32>
    %85 = vector.extract_strided_slice %83 {offsets = [0, 0], sizes = [6, 1], strides = [1, 1]} : vector<6x1024xf32> to vector<6x1xf32>
    %86 = tpu.concatenate %84, %85 in 1 : vector<6x1023xf32>, vector<6x1xf32> -> vector<6x1024xf32>
    %87 = arith.maximumf %83, %86 : vector<6x1024xf32>
    %88 = vector.extract_strided_slice %83 {offsets = [0, 32], sizes = [6, 992], strides = [1, 1]} : vector<6x1024xf32> to vector<6x992xf32>
    %89 = vector.extract_strided_slice %83 {offsets = [0, 0], sizes = [6, 32], strides = [1, 1]} : vector<6x1024xf32> to vector<6x32xf32>
    %90 = tpu.concatenate %88, %89 in 1 : vector<6x992xf32>, vector<6x32xf32> -> vector<6x1024xf32>
    %91 = vector.extract_strided_slice %83 {offsets = [0, 33], sizes = [6, 991], strides = [1, 1]} : vector<6x1024xf32> to vector<6x991xf32>
    %92 = vector.extract_strided_slice %83 {offsets = [0, 0], sizes = [6, 33], strides = [1, 1]} : vector<6x1024xf32> to vector<6x33xf32>
    %93 = tpu.concatenate %91, %92 in 1 : vector<6x991xf32>, vector<6x33xf32> -> vector<6x1024xf32>
    %94 = arith.maximumf %90, %93 : vector<6x1024xf32>
    %95 = arith.maximumf %87, %94 : vector<6x1024xf32>
    %c0_7 = arith.constant 0 : index
    %c0_8 = arith.constant 0 : index
    %96 = vector.load %arg4[%c0_7, %c0_8] : memref<1024x256xf32, #tpu.memory_space<vmem>>, vector<1024x256xf32>
    %cst_9 = arith.constant dense<0.000000e+00> : vector<6x256xf32>
    %97 = tpu.matmul %95, %96, %cst_9 {dimension_numbers = #tpu.dot_dimension_numbers<[1], [0], [0], [1], [0, 0, 1, 1], [], []>} : vector<6x1024xf32>, vector<1024x256xf32>, vector<6x256xf32> -> vector<6x256xf32>
    %98 = vector.extract_strided_slice %97 {offsets = [0, 1], sizes = [6, 255], strides = [1, 1]} : vector<6x256xf32> to vector<6x255xf32>
    %99 = vector.extract_strided_slice %97 {offsets = [0, 0], sizes = [6, 1], strides = [1, 1]} : vector<6x256xf32> to vector<6x1xf32>
    %100 = tpu.concatenate %98, %99 in 1 : vector<6x255xf32>, vector<6x1xf32> -> vector<6x256xf32>
    %101 = vector.extract_strided_slice %97 {offsets = [0, 2], sizes = [6, 254], strides = [1, 1]} : vector<6x256xf32> to vector<6x254xf32>
    %102 = vector.extract_strided_slice %97 {offsets = [0, 0], sizes = [6, 2], strides = [1, 1]} : vector<6x256xf32> to vector<6x2xf32>
    %103 = tpu.concatenate %101, %102 in 1 : vector<6x254xf32>, vector<6x2xf32> -> vector<6x256xf32>
    %104 = vector.extract_strided_slice %97 {offsets = [0, 3], sizes = [6, 253], strides = [1, 1]} : vector<6x256xf32> to vector<6x253xf32>
    %105 = vector.extract_strided_slice %97 {offsets = [0, 0], sizes = [6, 3], strides = [1, 1]} : vector<6x256xf32> to vector<6x3xf32>
    %106 = tpu.concatenate %104, %105 in 1 : vector<6x253xf32>, vector<6x3xf32> -> vector<6x256xf32>
    %107 = vector.extract_strided_slice %97 {offsets = [0, 4], sizes = [6, 252], strides = [1, 1]} : vector<6x256xf32> to vector<6x252xf32>
    %108 = vector.extract_strided_slice %97 {offsets = [0, 0], sizes = [6, 4], strides = [1, 1]} : vector<6x256xf32> to vector<6x4xf32>
    %109 = tpu.concatenate %107, %108 in 1 : vector<6x252xf32>, vector<6x4xf32> -> vector<6x256xf32>
    %110 = vector.extract_strided_slice %97 {offsets = [0, 16], sizes = [6, 240], strides = [1, 1]} : vector<6x256xf32> to vector<6x240xf32>
    %111 = vector.extract_strided_slice %97 {offsets = [0, 0], sizes = [6, 16], strides = [1, 1]} : vector<6x256xf32> to vector<6x16xf32>
    %112 = tpu.concatenate %110, %111 in 1 : vector<6x240xf32>, vector<6x16xf32> -> vector<6x256xf32>
    %113 = vector.extract_strided_slice %97 {offsets = [0, 17], sizes = [6, 239], strides = [1, 1]} : vector<6x256xf32> to vector<6x239xf32>
    %114 = vector.extract_strided_slice %97 {offsets = [0, 0], sizes = [6, 17], strides = [1, 1]} : vector<6x256xf32> to vector<6x17xf32>
    %115 = tpu.concatenate %113, %114 in 1 : vector<6x239xf32>, vector<6x17xf32> -> vector<6x256xf32>
    %116 = vector.extract_strided_slice %97 {offsets = [0, 18], sizes = [6, 238], strides = [1, 1]} : vector<6x256xf32> to vector<6x238xf32>
    %117 = vector.extract_strided_slice %97 {offsets = [0, 0], sizes = [6, 18], strides = [1, 1]} : vector<6x256xf32> to vector<6x18xf32>
    %118 = tpu.concatenate %116, %117 in 1 : vector<6x238xf32>, vector<6x18xf32> -> vector<6x256xf32>
    %119 = vector.extract_strided_slice %97 {offsets = [0, 19], sizes = [6, 237], strides = [1, 1]} : vector<6x256xf32> to vector<6x237xf32>
    %120 = vector.extract_strided_slice %97 {offsets = [0, 0], sizes = [6, 19], strides = [1, 1]} : vector<6x256xf32> to vector<6x19xf32>
    %121 = tpu.concatenate %119, %120 in 1 : vector<6x237xf32>, vector<6x19xf32> -> vector<6x256xf32>
    %122 = vector.extract_strided_slice %97 {offsets = [0, 20], sizes = [6, 236], strides = [1, 1]} : vector<6x256xf32> to vector<6x236xf32>
    %123 = vector.extract_strided_slice %97 {offsets = [0, 0], sizes = [6, 20], strides = [1, 1]} : vector<6x256xf32> to vector<6x20xf32>
    %124 = tpu.concatenate %122, %123 in 1 : vector<6x236xf32>, vector<6x20xf32> -> vector<6x256xf32>
    %125 = vector.extract_strided_slice %97 {offsets = [0, 32], sizes = [6, 224], strides = [1, 1]} : vector<6x256xf32> to vector<6x224xf32>
    %126 = vector.extract_strided_slice %97 {offsets = [0, 0], sizes = [6, 32], strides = [1, 1]} : vector<6x256xf32> to vector<6x32xf32>
    %127 = tpu.concatenate %125, %126 in 1 : vector<6x224xf32>, vector<6x32xf32> -> vector<6x256xf32>
    %128 = vector.extract_strided_slice %97 {offsets = [0, 33], sizes = [6, 223], strides = [1, 1]} : vector<6x256xf32> to vector<6x223xf32>
    %129 = vector.extract_strided_slice %97 {offsets = [0, 0], sizes = [6, 33], strides = [1, 1]} : vector<6x256xf32> to vector<6x33xf32>
    %130 = tpu.concatenate %128, %129 in 1 : vector<6x223xf32>, vector<6x33xf32> -> vector<6x256xf32>
    %131 = vector.extract_strided_slice %97 {offsets = [0, 34], sizes = [6, 222], strides = [1, 1]} : vector<6x256xf32> to vector<6x222xf32>
    %132 = vector.extract_strided_slice %97 {offsets = [0, 0], sizes = [6, 34], strides = [1, 1]} : vector<6x256xf32> to vector<6x34xf32>
    %133 = tpu.concatenate %131, %132 in 1 : vector<6x222xf32>, vector<6x34xf32> -> vector<6x256xf32>
    %134 = vector.extract_strided_slice %97 {offsets = [0, 35], sizes = [6, 221], strides = [1, 1]} : vector<6x256xf32> to vector<6x221xf32>
    %135 = vector.extract_strided_slice %97 {offsets = [0, 0], sizes = [6, 35], strides = [1, 1]} : vector<6x256xf32> to vector<6x35xf32>
    %136 = tpu.concatenate %134, %135 in 1 : vector<6x221xf32>, vector<6x35xf32> -> vector<6x256xf32>
    %137 = vector.extract_strided_slice %97 {offsets = [0, 36], sizes = [6, 220], strides = [1, 1]} : vector<6x256xf32> to vector<6x220xf32>
    %138 = vector.extract_strided_slice %97 {offsets = [0, 0], sizes = [6, 36], strides = [1, 1]} : vector<6x256xf32> to vector<6x36xf32>
    %139 = tpu.concatenate %137, %138 in 1 : vector<6x220xf32>, vector<6x36xf32> -> vector<6x256xf32>
    %140 = vector.extract_strided_slice %97 {offsets = [0, 48], sizes = [6, 208], strides = [1, 1]} : vector<6x256xf32> to vector<6x208xf32>
    %141 = vector.extract_strided_slice %97 {offsets = [0, 0], sizes = [6, 48], strides = [1, 1]} : vector<6x256xf32> to vector<6x48xf32>
    %142 = tpu.concatenate %140, %141 in 1 : vector<6x208xf32>, vector<6x48xf32> -> vector<6x256xf32>
    %143 = vector.extract_strided_slice %97 {offsets = [0, 49], sizes = [6, 207], strides = [1, 1]} : vector<6x256xf32> to vector<6x207xf32>
    %144 = vector.extract_strided_slice %97 {offsets = [0, 0], sizes = [6, 49], strides = [1, 1]} : vector<6x256xf32> to vector<6x49xf32>
    %145 = tpu.concatenate %143, %144 in 1 : vector<6x207xf32>, vector<6x49xf32> -> vector<6x256xf32>
    %146 = vector.extract_strided_slice %97 {offsets = [0, 50], sizes = [6, 206], strides = [1, 1]} : vector<6x256xf32> to vector<6x206xf32>
    %147 = vector.extract_strided_slice %97 {offsets = [0, 0], sizes = [6, 50], strides = [1, 1]} : vector<6x256xf32> to vector<6x50xf32>
    %148 = tpu.concatenate %146, %147 in 1 : vector<6x206xf32>, vector<6x50xf32> -> vector<6x256xf32>
    %149 = vector.extract_strided_slice %97 {offsets = [0, 51], sizes = [6, 205], strides = [1, 1]} : vector<6x256xf32> to vector<6x205xf32>
    %150 = vector.extract_strided_slice %97 {offsets = [0, 0], sizes = [6, 51], strides = [1, 1]} : vector<6x256xf32> to vector<6x51xf32>
    %151 = tpu.concatenate %149, %150 in 1 : vector<6x205xf32>, vector<6x51xf32> -> vector<6x256xf32>
    %152 = vector.extract_strided_slice %97 {offsets = [0, 52], sizes = [6, 204], strides = [1, 1]} : vector<6x256xf32> to vector<6x204xf32>
    %153 = vector.extract_strided_slice %97 {offsets = [0, 0], sizes = [6, 52], strides = [1, 1]} : vector<6x256xf32> to vector<6x52xf32>
    %154 = tpu.concatenate %152, %153 in 1 : vector<6x204xf32>, vector<6x52xf32> -> vector<6x256xf32>
    %155 = vector.extract_strided_slice %97 {offsets = [0, 64], sizes = [6, 192], strides = [1, 1]} : vector<6x256xf32> to vector<6x192xf32>
    %156 = vector.extract_strided_slice %97 {offsets = [0, 0], sizes = [6, 64], strides = [1, 1]} : vector<6x256xf32> to vector<6x64xf32>
    %157 = tpu.concatenate %155, %156 in 1 : vector<6x192xf32>, vector<6x64xf32> -> vector<6x256xf32>
    %158 = vector.extract_strided_slice %97 {offsets = [0, 65], sizes = [6, 191], strides = [1, 1]} : vector<6x256xf32> to vector<6x191xf32>
    %159 = vector.extract_strided_slice %97 {offsets = [0, 0], sizes = [6, 65], strides = [1, 1]} : vector<6x256xf32> to vector<6x65xf32>
    %160 = tpu.concatenate %158, %159 in 1 : vector<6x191xf32>, vector<6x65xf32> -> vector<6x256xf32>
    %161 = vector.extract_strided_slice %97 {offsets = [0, 66], sizes = [6, 190], strides = [1, 1]} : vector<6x256xf32> to vector<6x190xf32>
    %162 = vector.extract_strided_slice %97 {offsets = [0, 0], sizes = [6, 66], strides = [1, 1]} : vector<6x256xf32> to vector<6x66xf32>
    %163 = tpu.concatenate %161, %162 in 1 : vector<6x190xf32>, vector<6x66xf32> -> vector<6x256xf32>
    %164 = vector.extract_strided_slice %97 {offsets = [0, 67], sizes = [6, 189], strides = [1, 1]} : vector<6x256xf32> to vector<6x189xf32>
    %165 = vector.extract_strided_slice %97 {offsets = [0, 0], sizes = [6, 67], strides = [1, 1]} : vector<6x256xf32> to vector<6x67xf32>
    %166 = tpu.concatenate %164, %165 in 1 : vector<6x189xf32>, vector<6x67xf32> -> vector<6x256xf32>
    %167 = vector.extract_strided_slice %97 {offsets = [0, 68], sizes = [6, 188], strides = [1, 1]} : vector<6x256xf32> to vector<6x188xf32>
    %168 = vector.extract_strided_slice %97 {offsets = [0, 0], sizes = [6, 68], strides = [1, 1]} : vector<6x256xf32> to vector<6x68xf32>
    %169 = tpu.concatenate %167, %168 in 1 : vector<6x188xf32>, vector<6x68xf32> -> vector<6x256xf32>
    %170 = tpu.concatenate %97, %100, %103, %106, %109, %112, %115, %118, %121, %124, %127, %130, %133, %136, %139, %142 in 0 : vector<6x256xf32>, vector<6x256xf32>, vector<6x256xf32>, vector<6x256xf32>, vector<6x256xf32>, vector<6x256xf32>, vector<6x256xf32>, vector<6x256xf32>, vector<6x256xf32>, vector<6x256xf32>, vector<6x256xf32>, vector<6x256xf32>, vector<6x256xf32>, vector<6x256xf32>, vector<6x256xf32>, vector<6x256xf32> -> vector<96x256xf32>
    %171 = tpu.concatenate %145, %148, %151, %154, %157, %160, %163, %166, %169 in 0 : vector<6x256xf32>, vector<6x256xf32>, vector<6x256xf32>, vector<6x256xf32>, vector<6x256xf32>, vector<6x256xf32>, vector<6x256xf32>, vector<6x256xf32>, vector<6x256xf32> -> vector<54x256xf32>
    %172 = tpu.concatenate %170, %171 in 0 : vector<96x256xf32>, vector<54x256xf32> -> vector<150x256xf32>
    %c0_10 = arith.constant 0 : index
    %c0_11 = arith.constant 0 : index
    %173 = vector.load %arg5[%c0_10, %c0_11] : memref<16x150xf32, #tpu.memory_space<vmem>>, vector<16x150xf32>
    %cst_12 = arith.constant dense<0.000000e+00> : vector<16x256xf32>
    %174 = tpu.matmul %173, %172, %cst_12 {dimension_numbers = #tpu.dot_dimension_numbers<[1], [0], [0], [1], [0, 0, 1, 1], [], []>} : vector<16x150xf32>, vector<150x256xf32>, vector<16x256xf32> -> vector<16x256xf32>
    %c0_13 = arith.constant 0 : index
    %c0_14 = arith.constant 0 : index
    %175 = vector.load %arg6[%c0_13, %c0_14] : memref<16x1xf32, #tpu.memory_space<vmem>>, vector<16x1xf32>
    %176 = vector.broadcast %175 : vector<16x1xf32> to vector<16x256xf32>
    %177 = arith.addf %174, %176 : vector<16x256xf32>
    %cst_15 = arith.constant 0.000000e+00 : f32
    %178 = vector.broadcast %cst_15 : f32 to vector<16x256xf32>
    %179 = arith.maximumf %177, %178 : vector<16x256xf32>
    %180 = vector.extract_strided_slice %179 {offsets = [0, 1], sizes = [16, 255], strides = [1, 1]} : vector<16x256xf32> to vector<16x255xf32>
    %181 = vector.extract_strided_slice %179 {offsets = [0, 0], sizes = [16, 1], strides = [1, 1]} : vector<16x256xf32> to vector<16x1xf32>
    %182 = tpu.concatenate %180, %181 in 1 : vector<16x255xf32>, vector<16x1xf32> -> vector<16x256xf32>
    %183 = arith.maximumf %179, %182 : vector<16x256xf32>
    %184 = vector.extract_strided_slice %179 {offsets = [0, 16], sizes = [16, 240], strides = [1, 1]} : vector<16x256xf32> to vector<16x240xf32>
    %185 = vector.extract_strided_slice %179 {offsets = [0, 0], sizes = [16, 16], strides = [1, 1]} : vector<16x256xf32> to vector<16x16xf32>
    %186 = tpu.concatenate %184, %185 in 1 : vector<16x240xf32>, vector<16x16xf32> -> vector<16x256xf32>
    %187 = vector.extract_strided_slice %179 {offsets = [0, 17], sizes = [16, 239], strides = [1, 1]} : vector<16x256xf32> to vector<16x239xf32>
    %188 = vector.extract_strided_slice %179 {offsets = [0, 0], sizes = [16, 17], strides = [1, 1]} : vector<16x256xf32> to vector<16x17xf32>
    %189 = tpu.concatenate %187, %188 in 1 : vector<16x239xf32>, vector<16x17xf32> -> vector<16x256xf32>
    %190 = arith.maximumf %186, %189 : vector<16x256xf32>
    %191 = arith.maximumf %183, %190 : vector<16x256xf32>
    %c0_16 = arith.constant 0 : index
    %c0_17 = arith.constant 0 : index
    %192 = vector.load %arg7[%c0_16, %c0_17] : memref<256x25xf32, #tpu.memory_space<vmem>>, vector<256x25xf32>
    %cst_18 = arith.constant dense<0.000000e+00> : vector<16x25xf32>
    %193 = tpu.matmul %191, %192, %cst_18 {dimension_numbers = #tpu.dot_dimension_numbers<[1], [0], [0], [1], [0, 0, 1, 1], [], []>} : vector<16x256xf32>, vector<256x25xf32>, vector<16x25xf32> -> vector<16x25xf32>
    %194 = vector.extract_strided_slice %193 {offsets = [0, 0], sizes = [1, 25], strides = [1, 1]} : vector<16x25xf32> to vector<1x25xf32>
    %195 = vector.extract_strided_slice %193 {offsets = [1, 0], sizes = [1, 25], strides = [1, 1]} : vector<16x25xf32> to vector<1x25xf32>
    %196 = vector.extract_strided_slice %193 {offsets = [2, 0], sizes = [1, 25], strides = [1, 1]} : vector<16x25xf32> to vector<1x25xf32>
    %197 = vector.extract_strided_slice %193 {offsets = [3, 0], sizes = [1, 25], strides = [1, 1]} : vector<16x25xf32> to vector<1x25xf32>
    %198 = vector.extract_strided_slice %193 {offsets = [4, 0], sizes = [1, 25], strides = [1, 1]} : vector<16x25xf32> to vector<1x25xf32>
    %199 = vector.extract_strided_slice %193 {offsets = [5, 0], sizes = [1, 25], strides = [1, 1]} : vector<16x25xf32> to vector<1x25xf32>
    %200 = vector.extract_strided_slice %193 {offsets = [6, 0], sizes = [1, 25], strides = [1, 1]} : vector<16x25xf32> to vector<1x25xf32>
    %201 = vector.extract_strided_slice %193 {offsets = [7, 0], sizes = [1, 25], strides = [1, 1]} : vector<16x25xf32> to vector<1x25xf32>
    %202 = vector.extract_strided_slice %193 {offsets = [8, 0], sizes = [1, 25], strides = [1, 1]} : vector<16x25xf32> to vector<1x25xf32>
    %203 = vector.extract_strided_slice %193 {offsets = [9, 0], sizes = [1, 25], strides = [1, 1]} : vector<16x25xf32> to vector<1x25xf32>
    %204 = vector.extract_strided_slice %193 {offsets = [10, 0], sizes = [1, 25], strides = [1, 1]} : vector<16x25xf32> to vector<1x25xf32>
    %205 = vector.extract_strided_slice %193 {offsets = [11, 0], sizes = [1, 25], strides = [1, 1]} : vector<16x25xf32> to vector<1x25xf32>
    %206 = vector.extract_strided_slice %193 {offsets = [12, 0], sizes = [1, 25], strides = [1, 1]} : vector<16x25xf32> to vector<1x25xf32>
    %207 = vector.extract_strided_slice %193 {offsets = [13, 0], sizes = [1, 25], strides = [1, 1]} : vector<16x25xf32> to vector<1x25xf32>
    %208 = vector.extract_strided_slice %193 {offsets = [14, 0], sizes = [1, 25], strides = [1, 1]} : vector<16x25xf32> to vector<1x25xf32>
    %209 = vector.extract_strided_slice %193 {offsets = [15, 0], sizes = [1, 25], strides = [1, 1]} : vector<16x25xf32> to vector<1x25xf32>
    %210 = tpu.concatenate %194, %195, %196, %197, %198, %199, %200, %201, %202, %203, %204, %205, %206, %207, %208, %209 in 1 : vector<1x25xf32>, vector<1x25xf32>, vector<1x25xf32>, vector<1x25xf32>, vector<1x25xf32>, vector<1x25xf32>, vector<1x25xf32>, vector<1x25xf32>, vector<1x25xf32>, vector<1x25xf32>, vector<1x25xf32>, vector<1x25xf32>, vector<1x25xf32>, vector<1x25xf32>, vector<1x25xf32>, vector<1x25xf32> -> vector<1x400xf32>
    %c0_19 = arith.constant 0 : index
    %c0_20 = arith.constant 0 : index
    %211 = vector.load %arg8[%c0_19, %c0_20] : memref<400x120xf32, #tpu.memory_space<vmem>>, vector<400x120xf32>
    %cst_21 = arith.constant dense<0.000000e+00> : vector<1x120xf32>
    %212 = tpu.matmul %210, %211, %cst_21 {dimension_numbers = #tpu.dot_dimension_numbers<[1], [0], [0], [1], [0, 0, 1, 1], [], []>} : vector<1x400xf32>, vector<400x120xf32>, vector<1x120xf32> -> vector<1x120xf32>
    %c0_22 = arith.constant 0 : index
    %c0_23 = arith.constant 0 : index
    %213 = vector.load %arg9[%c0_22, %c0_23] : memref<1x120xf32, #tpu.memory_space<vmem>>, vector<1x120xf32>
    %214 = arith.addf %212, %213 : vector<1x120xf32>
    %cst_24 = arith.constant 0.000000e+00 : f32
    %215 = vector.broadcast %cst_24 : f32 to vector<1x120xf32>
    %216 = arith.maximumf %214, %215 : vector<1x120xf32>
    %c0_25 = arith.constant 0 : index
    %c0_26 = arith.constant 0 : index
    %217 = vector.load %arg10[%c0_25, %c0_26] : memref<120x84xf32, #tpu.memory_space<vmem>>, vector<120x84xf32>
    %cst_27 = arith.constant dense<0.000000e+00> : vector<1x84xf32>
    %218 = tpu.matmul %216, %217, %cst_27 {dimension_numbers = #tpu.dot_dimension_numbers<[1], [0], [0], [1], [0, 0, 1, 1], [], []>} : vector<1x120xf32>, vector<120x84xf32>, vector<1x84xf32> -> vector<1x84xf32>
    %c0_28 = arith.constant 0 : index
    %c0_29 = arith.constant 0 : index
    %219 = vector.load %arg11[%c0_28, %c0_29] : memref<1x84xf32, #tpu.memory_space<vmem>>, vector<1x84xf32>
    %220 = arith.addf %218, %219 : vector<1x84xf32>
    %cst_30 = arith.constant 0.000000e+00 : f32
    %221 = vector.broadcast %cst_30 : f32 to vector<1x84xf32>
    %222 = arith.maximumf %220, %221 : vector<1x84xf32>
    %c0_31 = arith.constant 0 : index
    %c0_32 = arith.constant 0 : index
    %223 = vector.load %arg12[%c0_31, %c0_32] : memref<84x10xf32, #tpu.memory_space<vmem>>, vector<84x10xf32>
    %cst_33 = arith.constant dense<0.000000e+00> : vector<1x10xf32>
    %224 = tpu.matmul %222, %223, %cst_33 {dimension_numbers = #tpu.dot_dimension_numbers<[1], [0], [0], [1], [0, 0, 1, 1], [], []>} : vector<1x84xf32>, vector<84x10xf32>, vector<1x10xf32> -> vector<1x10xf32>
    %c0_34 = arith.constant 0 : index
    %c0_35 = arith.constant 0 : index
    %225 = vector.load %arg13[%c0_34, %c0_35] : memref<1x10xf32, #tpu.memory_space<vmem>>, vector<1x10xf32>
    %226 = arith.addf %224, %225 : vector<1x10xf32>
    %c0_36 = arith.constant 0 : index
    %c0_37 = arith.constant 0 : index
    %c0_38 = arith.constant 0 : index
    %227 = vector.load %arg14[%c0_36, %c0_37, %c0_38] : memref<1x1x10xf32, #tpu.memory_space<vmem>>, vector<1x1x10xf32>
    %228 = vector.shape_cast %227 : vector<1x1x10xf32> to vector<1x10xf32>
    %229 = vector.shape_cast %226 : vector<1x10xf32> to vector<1x1x10xf32>
    tpu.vector_store %arg14[%c0_36, %c0_37, %c0_38], %229 {strides = array<i32>} : memref<1x1x10xf32, #tpu.memory_space<vmem>>, vector<1x1x10xf32>,
    return
  }
  func.func @transform_0(%arg0: i32) -> (i32, i32, i32) {
    %c0_i32 = arith.constant 0 : i32
    %c0_i32_0 = arith.constant 0 : i32
    %c0_i32_1 = arith.constant 0 : i32
    return %arg0, %c0_i32, %c0_i32_0 : i32, i32, i32
  }
  func.func @transform_1(%arg0: i32) -> (i32, i32) {
    %c0_i32 = arith.constant 0 : i32
    %c0_i32_0 = arith.constant 0 : i32
    %c0_i32_1 = arith.constant 0 : i32
    return %c0_i32, %c0_i32_0 : i32, i32
  }
  func.func @transform_2(%arg0: i32) -> (i32, i32) {
    %c0_i32 = arith.constant 0 : i32
    %c0_i32_0 = arith.constant 0 : i32
    %c0_i32_1 = arith.constant 0 : i32
    return %c0_i32, %c0_i32_0 : i32, i32
  }
  func.func @transform_3(%arg0: i32) -> (i32, i32) {
    %c0_i32 = arith.constant 0 : i32
    %c0_i32_0 = arith.constant 0 : i32
    %c0_i32_1 = arith.constant 0 : i32
    return %c0_i32, %c0_i32_0 : i32, i32
  }
  func.func @transform_4(%arg0: i32) -> (i32, i32) {
    %c0_i32 = arith.constant 0 : i32
    %c0_i32_0 = arith.constant 0 : i32
    %c0_i32_1 = arith.constant 0 : i32
    return %c0_i32, %c0_i32_0 : i32, i32
  }
  func.func @transform_5(%arg0: i32) -> (i32, i32) {
    %c0_i32 = arith.constant 0 : i32
    %c0_i32_0 = arith.constant 0 : i32
    %c0_i32_1 = arith.constant 0 : i32
    return %c0_i32, %c0_i32_0 : i32, i32
  }
  func.func @transform_6(%arg0: i32) -> (i32, i32) {
    %c0_i32 = arith.constant 0 : i32
    %c0_i32_0 = arith.constant 0 : i32
    %c0_i32_1 = arith.constant 0 : i32
    return %c0_i32, %c0_i32_0 : i32, i32
  }
  func.func @transform_7(%arg0: i32) -> (i32, i32) {
    %c0_i32 = arith.constant 0 : i32
    %c0_i32_0 = arith.constant 0 : i32
    %c0_i32_1 = arith.constant 0 : i32
    return %c0_i32, %c0_i32_0 : i32, i32
  }
  func.func @transform_8(%arg0: i32) -> (i32, i32) {
    %c0_i32 = arith.constant 0 : i32
    %c0_i32_0 = arith.constant 0 : i32
    %c0_i32_1 = arith.constant 0 : i32
    return %c0_i32, %c0_i32_0 : i32, i32
  }
  func.func @transform_9(%arg0: i32) -> (i32, i32) {
    %c0_i32 = arith.constant 0 : i32
    %c0_i32_0 = arith.constant 0 : i32
    %c0_i32_1 = arith.constant 0 : i32
    return %c0_i32, %c0_i32_0 : i32, i32
  }
  func.func @transform_10(%arg0: i32) -> (i32, i32) {
    %c0_i32 = arith.constant 0 : i32
    %c0_i32_0 = arith.constant 0 : i32
    %c0_i32_1 = arith.constant 0 : i32
    return %c0_i32, %c0_i32_0 : i32, i32
  }
  func.func @transform_11(%arg0: i32) -> (i32, i32) {
    %c0_i32 = arith.constant 0 : i32
    %c0_i32_0 = arith.constant 0 : i32
    %c0_i32_1 = arith.constant 0 : i32
    return %c0_i32, %c0_i32_0 : i32, i32
  }
  func.func @transform_12(%arg0: i32) -> (i32, i32) {
    %c0_i32 = arith.constant 0 : i32
    %c0_i32_0 = arith.constant 0 : i32
    %c0_i32_1 = arith.constant 0 : i32
    return %c0_i32, %c0_i32_0 : i32, i32
  }
  func.func @transform_13(%arg0: i32) -> (i32, i32, i32) {
    %c0_i32 = arith.constant 0 : i32
    %c0_i32_0 = arith.constant 0 : i32
    %c0_i32_1 = arith.constant 0 : i32
    return %arg0, %c0_i32, %c0_i32_0 : i32, i32, i32
  }
}

</mosaic_0001>

<bundles_post_ra>
// kernel: net_forward.1
= control target key start
LH: loop header
LB: loop body
LE: loop exit
PB: predicated region body
PF: predicated region fallthrough
CT: control target
= control target key end

     0   :  { %s7352_s0 = inlined_call_operand.vmem [shape: f32[2,3,1024], index: 0, kind: input, shape index: {}]   ;;  %s7353_s1 = inlined_call_operand.vmem [shape: f32[6,75], index: 1, kind: input, shape index: {}]   ;;  %s7354_s2 = inlined_call_operand.vmem [shape: f32[6,1], index: 2, kind: input, shape index: {}]   ;;  %s7355_s3 = inlined_call_operand.hbm [shape: f32[1024,256], index: 3, kind: input, shape index: {}]   ;;  %s7356_s4 = inlined_call_operand.vmem [shape: f32[16,150], index: 4, kind: input, shape index: {}]   ;;  %s7357_s5 = inlined_call_operand.vmem [shape: f32[16,1], index: 5, kind: input, shape index: {}]   ;;  %s7358_s6 = inlined_call_operand.vmem [shape: f32[256,25], index: 6, kind: input, shape index: {}]   ;;  %s7359_s7 = inlined_call_operand.vmem [shape: f32[400,120], index: 7, kind: input, shape index: {}]   ;;  %s7360_s8 = inlined_call_operand.vmem [shape: f32[1,120], index: 8, kind: input, shape index: {}]   ;;  %s7361_s9 = inlined_call_operand.vmem [shape: f32[120,84], index: 9, kind: input, shape index: {}]   ;;  %s7362_s10 = inlined_call_operand.vmem [shape: f32[1,84], index: 10, kind: input, shape index: {}]   ;;  %s7363_s11 = inlined_call_operand.vmem [shape: f32[84,10], index: 11, kind: input, shape index: {}]   ;;  %s7364_s12 = inlined_call_operand.vmem [shape: f32[1,10], index: 12, kind: input, shape index: {}]   ;;  %s7365_s13 = inlined_call_operand.hbm [shape: f32[2,1,10], index: 13, kind: output, shape index: {}]  }
   0x1   :  { %7515 = sst [smem:[#allocation34_spill]] %s7352_s0 }
   0x2   :  { %7516 = sst [smem:[#allocation35_spill]] %s7355_s3 }
   0x3   :  { %7517 = sst [smem:[#allocation36_spill]] %s7362_s10 }
   0x4   :  { %7518 = sst [smem:[#allocation37_spill]] %s7364_s12 }
   0x5   :  { %7519 = sst [smem:[#allocation38_spill]] %s7365_s13 }
   0x6   :  { %18 = vsyncpa [#allocation3], 0 }
   0x7   :  { %19 = vsyncpa [#allocation4], 0 }
   0x8   :  { %21 = vsyncpa [#allocation4 + $0x1], 0  ;;  %s5183_s25 = smov 0   ;;  %s5185_s26 = smov 0  }
   0x9   :  { %s5187_s27 = smov 0   ;;  %s5189_s28 = smov 0  }
   0xa LB: > { %7520 = sst [smem:[#allocation8_spill]] %s5048_s25  ;;  %s5204_s29 = sadd.s32 4294967295, %s5060_s28   ;;  %s5060_s28 = sphi %s5189_s28, %s7820_s28   ;;  %s5056_s27 = sphi %s5187_s27, %s7822_s27   ;;  %s5052_s26 = sphi %s5185_s26, %s7824_s26   ;;  %s5048_s25 = sphi %s5183_s25, %s7823_s25  }
   0xb   : > { %7521 = sst [smem:[#allocation9_spill]] %s5056_s27  ;;  %s3679_s30 = sadd.s32 4294967294, %s5060_s28  }
   0xc   : > { %7522 = sst [smem:[#allocation10_spill]] %s5060_s28  ;;  %s5208_s14 = sadd.s32 1, %s5060_s28  }
   0xd   : > { %7523 = sst [smem:[#allocation11_spill]] %s5208_s14  ;;  %s312_s15 = sadd.s32 1, %s5056_s27 }
   0xe   : > { %s309_s16 = ssub.s32 %s5060_s28, %s5208_s14  ;;  %p322_p0 = scmp.ne.s32.totalorder %s5056_s27, %s5052_s26 }
   0xf   : > { %p310_p1 = scmp.eq.s32.totalorder %s309_s16, 0  ;;  %p323_p2 = scmp.eq.s32.totalorder %s5204_s29, 1 }
  0x10   : > { %p328_p3 = scmp.ne.s32.totalorder %s5052_s26, %s5048_s25  ;;  %p329_p4 = scmp.eq.s32.totalorder %s3679_s30, 1 }
  0x11   : > { %s5219_s17 = scalar_select %p310_p1, %s5056_s27, %s312_s15  }
  0x12   : > { %p5221_p5 = por %p323_p2, %p322_p0  ;;  %p5225_p6 = por %p329_p4, %p328_p3 }
  0x13   : > { %7524 = sst [smem:[#allocation12_spill]] %s5219_s17  ;;  %p3680_p7 = scmp.ge.s32.totalorder %s5060_s28, 1 }
  0x14   : > { %s7525_s18 = scalar_select %p5221_p5, 1, 0 }
  0x15   : > { %s7527_s19 = scalar_select %p5225_p6, 1, 0 }
  0x16   : > { %7526 = sst [smem:[#allocation13_spill]] %s7525_s18  ;;  %p336_p8 = scmp.lt.s32.totalorder %s5060_s28, 3 }
  0x17   : > { %7528 = sst [smem:[#allocation14_spill]] %s7527_s19  ;;  %p7369_p9 = scmp.eq.s32.totalorder %s5204_s29, 0 }
  0x18   : > { %p5232_p10 = pnand %p3680_p7, %p336_p8  ;;  %s5062_s21 = smov [#allocation2]  }
  0x19   : > { %s354_s22 = sshll.u32 %s5062_s21, 4  ;;  %s7531_s3 = sld [smem:[#allocation35_spill]]  ;;  %s355_s22 = int_to_ptr.vmem [resolvable:$true] %s354_s22 }
  0x1a   : > { %s7529_s20 = scalar_select %p5232_p10, 1, 0 }
  0x1b   : > { %p4389_p11 = pneg %p5232_p10 }
  0x1d   : > { %p5240_p12 = pnand %p7369_p9, %p4389_p11 }
  0x1f   : > { %s4966_s15 = scalar_lea.hbm %s7531_s3, 32768  ;;  %p4968_p0 = pneg %p5240_p12 }
  0x20   : > { %p4967_p13 = scmp.ne.s32.totalorder %s7531_s3, %s4966_s15  ;;  %p4973_p3 = scmp.lt.u32.totalorder %s4966_s15, %s7531_s3 }
  0x22   : > { %p4969_p1 = pnand %p4968_p0, %p4967_p13 }
  0x24   : > { %p4970_p2 = pneg %p4969_p1 }
  0x26   : > { %p4975_p4 = pnand %p4973_p3, %p4970_p2 }
  0x28   : > { %4978 = shalt.err (!%p4975_p4)
}
  0x29   : > { %s4979_s14 = scalar_lea.vmem %s355_s22, 32768  ;;  %p4987_p9 = scmp.lt.s32.totalorder %s355_s22, %s355_s22 }
  0x2a   : > { %p4980_p7 = scmp.ne.s32.totalorder %s355_s22, %s4979_s14  ;;  %p4988_p6 = scmp.lt.s32.totalorder %s4979_s14, %s4979_s14 }
  0x2c   : > { %p4982_p8 = pnand %p4980_p7, %p4968_p0  ;;  %p4989_p5 = por %p4988_p6, %p4987_p9 }
  0x2e   : > { %p4983_p11 = pneg %p4982_p8 }
  0x30   : > { %p4990_p10 = pnand %p4989_p5, %p4983_p11 }
  0x32   : > { %4993 = shalt.err (!%p4990_p10)
}
  0x33   : > { %s5063_s17 = smov 256   ;;  %s5064_s24 = smov 16  }
  0x34   : > { %4392 = dma.hbm_to_vmem [thread:$0]  (!%p5240_p12), %s7531_s3, 32768, %s355_s22, [#allocation3], %s5063_s17, %s5063_s17, %s5064_s24  }
  0x35   : > { %p7532_p13 = scmp.ne.s32.totalorder %s7529_s20, 0 }
  0x37   : > { %405 = sbr.rel (%p7532_p13) target bundleno = 2658 (0xa62), region = 72 }
  0x3e   : > { %p7533_p1 = scmp.eq.s32.totalorder %s5204_s29, 0 }
  0x40   : > { %5039 = dma.done.wait (%p7533_p1), [#allocation3], 32768   ;;  %p7534_p0 = pmov %p7533_p1 }
  0x41   : > { %p448_p5 = scmp.lt.s32.totalorder %s5204_s29, 1  ;;  %s7535_s0 = sld [smem:[#allocation34_spill]]  ;;  %v7423_v9 = vmov 0.0   ;;  %vm7487_vm0 = vcmask 1039360   ;;  %vm7486_vm1 = vcmask 1031168   ;;  %vm7484_vm2 = vcmask 1022976  }
  0x42   : > { %5041 = vsyncadd (%p7534_p0), [#allocation3], 4294934528  ;;  %s7376_s20 = smov 127   ;;  %s7398_s22 = smov 126   ;;  %1615 = vmatprep.mubr.f32.mxu1 %v7423_v9  ;;  %vm7485_vm3 = vcmask 1014784   ;;  %vm1234_vm4 = vcmask 1042432  }
  0x43   : > { %s449_s27 = scalar_select %p448_p5, %s5204_s29, 1  ;;  %vm1243_vm5 = vcmask 1045504   ;;  %vm1252_vm6 = vcmask 1040384   ;;  %vm7416_vm7 = vcmask 785408   ;;  %vm1279_vm8 = vcmask 1041408  }
  0x44   : > { %s7396_s17 = smov 125   ;;  %s7402_s24 = smov 124   ;;  %vm616_vm9 = vcmask 777216   ;;  %vm1261_vm10 = vcmask 1043456   ;;  %vm1288_vm11 = vcmask 1044480   ;;  %vm1270_vm12 = vcmask 1046528  }
  0x45   : > { %s3710_s14 = sshll.u32 %s449_s27, 5  ;;  %s7372_s30 = smov 96   ;;  %vm7436_vm13 = vcmask 752640   ;;  %vm7432_vm14 = vcmask 769024   ;;  %vm7431_vm15 = vcmask 523264  }
  0x46   : > { %s7378_s16 = smov 92   ;;  %s7374_s27 = smov 95  }
  0x47   : > { %s5271_s21 = scalar_lea.vmem %s7535_s0, %s3710_s14  ;;  %s7406_s14 = smov 94  }
  0x48   : > { %v5274_v0 = vld [vmem:[%s5271_s21] sm:$0x77]  ;;  %v5277_v1 = vld [vmem:[%s5271_s21 + $0x8] sm:$0x77]  ;;  %s7380_s15 = smov 64   ;;  %s7384_s23 = smov 93  }
  0x49   : > { %v5281_v2 = vcombine.high %v5274_v0, %v5274_v0  ;;  %v5285_v3 = vcombine.high %v5277_v1, %v5277_v1  ;;  %v5328_v6 = vld [vmem:[%s5271_s21 + $0x10] sm:$0x77]  ;;  %s7546_s0 = smov 61   ;;  %s7548_s3 = smov 32   ;;  %v5372_v10 = vld [vmem:[%s5271_s21 + $0x18] sm:$0x77] }
  0x4a   : > { %7536 = vst [vmem:[#allocation15_spill] sm:$0xff] %v5328_v6  ;;  %v5335_v7 = vcombine.high %v5328_v6, %v5328_v6  ;;  %s7549_s19 = smov 30   ;;  %s7550_s25 = smov 28  }
  0x4b   : > { %v4492_v4 = vpack.i.bf16 %v5277_v1, %v5281_v2  ;;  %v4497_v5 = vpack.i.bf16 %v5285_v3, %v5274_v0  ;;  %v4672_v12 = vpack.i.bf16 %v5328_v6, %v5285_v3  ;;  %s7552_s28 = smov 31   ;;  %s7553_s13 = smov 124  }
  0x4c   : > { %7537 = vst [vmem:[#allocation16_spill] sm:$0xff] %v5335_v7  ;;  %v4667_v8 = vpack.i.bf16 %v5335_v7, %v5328_v6  ;;  %v5380_v11 = vpack.i.bf16 %v5372_v10, %v5335_v7  ;;  %s7554_s12 = smov 125   ;;  %s7557_s18 = smov 94  }
  0x4d   : > { %4493 = vrot.lane.b32.xlu1 %v4492_v4, %s7376_s20  ;;  %4483 = vrot.lane.b32.xlu0 %v4492_v4, %s7398_s22  ;;  %s7561_s10 = smov 60  }
  0x51   : > { %4498 = vrot.lane.b32.xlu1 %v4497_v5, %s7398_s22  ;;  %4488 = vrot.lane.b32.xlu0 %v4492_v4, %s7396_s17 }
  0x55   : > { %4508 = vrot.lane.b32.xlu1 %v4492_v4, %s7402_s24  ;;  %4503 = vrot.lane.b32.xlu0 %v4497_v5, %s7396_s17 }
  0x59   : > { %4518 = vrot.lane.b32.xlu1 %v4497_v5, %s7402_s24  ;;  %4513 = vrot.lane.b32.xlu0 %v4497_v5, %s7376_s20  ;;  %s7386_s20 = smov 62  }
  0x5d   : > { %4528 = vrot.lane.b32.xlu1 %v4497_v5, %s7372_s30  ;;  %4523 = vrot.lane.b32.xlu0 %v4492_v4, %s7372_s30  ;;  %s7382_s30 = smov 63  }
  0x61   : > { %4538 = vrot.lane.b32.xlu1 %v4492_v4, %s7378_s16  ;;  %4533 = vrot.lane.b32.xlu0 %v4492_v4, %s7374_s27 }
  0x65   : > { %4548 = vrot.lane.b32.xlu1 %v4492_v4, %s7406_s14  ;;  %4543 = vrot.lane.b32.xlu0 %v4497_v5, %s7374_s27  ;;  %s7388_s27 = smov 61  }
  0x69   : > { %4558 = vrot.lane.b32.xlu1 %v4492_v4, %s7380_s15  ;;  %4553 = vrot.lane.b32.xlu0 %v4497_v5, %s7378_s16  ;;  %s7410_s16 = smov 60  }
  0x6d   : > { %4568 = vrot.lane.b32.xlu1 %v4492_v4, %s7384_s23  ;;  %4563 = vrot.lane.b32.xlu0 %v4497_v5, %s7406_s14 }
  0x71   : > { %4578 = vrot.lane.b32.xlu1 %v4497_v5, %s7384_s23  ;;  %4573 = vrot.lane.b32.xlu0 %v4497_v5, %s7380_s15  ;;  %s7400_s15 = smov 32   ;;  %s7404_s23 = smov 29  }
  0x75   : > { %4588 = vrot.lane.b32.xlu1 %v4497_v5, %s7382_s30  ;;  %4583 = vrot.lane.b32.xlu0 %v4492_v4, %s7382_s30  ;;  %s7392_s30 = smov 28  }
  0x79   : > { %4598 = vrot.lane.b32.xlu1 %v4492_v4, %s7388_s27  ;;  %4593 = vrot.lane.b32.xlu0 %v4492_v4, %s7386_s20 }
  0x7d   : > { %4608 = vrot.lane.b32.xlu1 %v4497_v5, %s7386_s20  ;;  %4603 = vrot.lane.b32.xlu0 %v4492_v4, %s7410_s16  ;;  %s7394_s20 = smov 30  }
  0x81   : > { %4618 = vrot.lane.b32.xlu1 %v4497_v5, %s7410_s16  ;;  %4613 = vrot.lane.b32.xlu0 %v4497_v5, %s7388_s27  ;;  %s7390_s27 = smov 31  }
  0x85   : > { %4628 = vrot.lane.b32.xlu1 %v4497_v5, %s7400_s15  ;;  %4623 = vrot.lane.b32.xlu0 %v4492_v4, %s7400_s15  ;;  %s7543_s15 = smov 64  }
  0x89   : > { %4638 = vrot.lane.b32.xlu1 %v4492_v4, %s7392_s30  ;;  %4633 = vrot.lane.b32.xlu0 %v4492_v4, %s7404_s23 }
  0x8d   : > { %4648 = vrot.lane.b32.xlu1 %v4497_v5, %s7404_s23  ;;  %4643 = vrot.lane.b32.xlu0 %v4492_v4, %s7394_s20  ;;  %s7545_s23 = smov 63  }
  0x91   : > { %4658 = vrot.lane.b32.xlu1 %v4497_v5, %s7394_s20  ;;  %4653 = vrot.lane.b32.xlu0 %v4497_v5, %s7392_s30  ;;  %s7539_s30 = smov 95   ;;  %s7540_s20 = smov 96  }
  0x95   : > { %877 = vrot.lane.b32.xlu1 %v5274_v0, %s7390_s27  ;;  %4663 = vrot.lane.b32.xlu0 %v4492_v4, %s7390_s27  ;;  %s7538_s27 = smov 127  }
  0x99   : > { %527 = vrot.lane.b32.xlu1 %v5328_v6, %s7396_s17  ;;  %500 = vrot.lane.b32.xlu0 %v5328_v6, %s7398_s22  ;;  %s7541_s17 = smov 92   ;;  %s7542_s22 = smov 93  }
  0x9d   : > { %554 = vrot.lane.b32.xlu1 %v5328_v6, %s7402_s24  ;;  %4668 = vrot.lane.b32.xlu0 %v4667_v8, %s7538_s27  ;;  %s7544_s24 = smov 62  }
  0xa1   : > { %608 = vrot.lane.b32.xlu1 %v5328_v6, %s7539_s30  ;;  %581 = vrot.lane.b32.xlu0 %v5328_v6, %s7540_s20 }
  0xa5   : > { %635 = vrot.lane.b32.xlu1 %v5328_v6, %s7406_s14  ;;  %696 = vrot.lane.b32.xlu0 %v5328_v6, %s7541_s17  ;;  %s7547_s14 = smov 29  }
  0xa9   : > { %662 = vrot.lane.b32.xlu1 %v5328_v6, %s7542_s22  ;;  %723 = vrot.lane.b32.xlu0 %v5328_v6, %s7543_s15 }
  0xad   : > { %777 = vrot.lane.b32.xlu1 %v5328_v6, %s7544_s24  ;;  %750 = vrot.lane.b32.xlu0 %v5328_v6, %s7545_s23 }
  0xb1   : > { %831 = vrot.lane.b32.xlu1 %v5328_v6, %s7410_s16  ;;  %804 = vrot.lane.b32.xlu0 %v5328_v6, %s7546_s0  ;;  %s7551_s16 = smov 126  }
  0xb5   : > { %946 = vrot.lane.b32.xlu1 %v5328_v6, %s7547_s14  ;;  %858 = vrot.lane.b32.xlu0 %v5328_v6, %s7548_s3 }
  0xb9   : > { %919 = vrot.lane.b32.xlu1 %v5328_v6, %s7549_s19  ;;  %973 = vrot.lane.b32.xlu0 %v5328_v6, %s7550_s25 }
  0xbd   : > { %4678 = vrot.lane.b32.xlu1 %v5380_v11, %s7551_s16  ;;  %4673 = vrot.lane.b32.xlu0 %v4672_v12, %s7552_s28 }
  0xbf   : > { %v5387_v13 = vpop.permute.xlu1 %4493  ;;  %v5389_v14 = vpop.permute.xlu0 %4483 }
  0xc0   : > { %v7452_v19 = vunpack.i.h.bf16 %v5387_v13  ;;  %v4495_v20 = vunpack.i.l.bf16 %v5387_v13  ;;  %v7448_v24 = vunpack.i.h.bf16 %v5389_v14  ;;  %v4485_v25 = vunpack.i.l.bf16 %v5389_v14 }
  0xc1   : > { %4688 = vrot.lane.b32.xlu1 %v5380_v11, %s7553_s13  ;;  %4683 = vrot.lane.b32.xlu0 %v5380_v11, %s7554_s12 }
  0xc2   : > { %v5430_v33 = vsel %vm7487_vm0, %v4495_v20, %v7452_v19  ;;  %v5468_v41 = vsel %vm7486_vm1, %v4485_v25, %v7448_v24 }
  0xc3   : > { %v5395_v15 = vpop.permute.xlu1 %4498  ;;  %v5397_v16 = vpop.permute.xlu0 %4488  ;;  %v998_v44 = vrot.slane %v5430_v33, 5  ;;  %v1015_v51 = vrot.slane %v5468_v41, 2 }
  0xc4   : > { %v7446_v21 = vunpack.i.h.bf16 %v5397_v16  ;;  %v4490_v22 = vunpack.i.l.bf16 %v5397_v16  ;;  %v7421_v30 = vunpack.i.l.bf16 %v5395_v15 }
  0xc5   : > { %4693 = vrot.lane.b32.xlu1 %v5380_v11, %s7540_s20  ;;  %477 = vrot.lane.b32.xlu0 %v5372_v10, %s7538_s27  ;;  %v1236_v58 = vsel %vm1234_vm4, %v5281_v2, %v998_v44 }
  0xc6   : > { %v5435_v34 = vsel %vm7484_vm2, %v4490_v22, %v7446_v21  ;;  %v509_v45 = vsel %vm7486_vm1, %v7421_v30, %v4485_v25 }
  0xc7   : > { %v5403_v17 = vpop.permute.xlu1 %4508  ;;  %v5405_v18 = vpop.permute.xlu0 %4503  ;;  %v1032_v42 = vrot.slane %v5435_v34, 7  ;;  %v1014_v57 = vrot.slane %v509_v45, 2 }
  0xc8   : > { %7555 = vst [vmem:[#allocation17_spill] sm:$0xff] %v5405_v18  ;;  %v7419_v23 = vunpack.i.l.bf16 %v5405_v18  ;;  %v7443_v26 = vunpack.i.h.bf16 %v5403_v17  ;;  %v4510_v27 = vunpack.i.l.bf16 %v5403_v17 }
  0xc9   : > { %4703 = vrot.lane.b32.xlu1 %v5380_v11, %s7541_s17  ;;  %4698 = vrot.lane.b32.xlu0 %v5380_v11, %s7539_s30  ;;  %v1254_v59 = vsel %vm1252_vm6, %v1015_v51, %v1032_v42 }
  0xca   : > { %v5444_v35 = vsel %vm7484_vm2, %v7419_v23, %v4490_v22  ;;  %v5454_v37 = vsel %vm7485_vm3, %v4510_v27, %v7443_v26  ;;  %v1245_v22 = vsel %vm1243_vm5, %v1236_v58, %v1015_v51 }
  0xcb   : > { %v5420_v28 = vpop.permute.xlu1 %4518  ;;  %v5422_v29 = vpop.permute.xlu0 %4513  ;;  %v1031_v46 = vrot.slane %v5444_v35, 7  ;;  %v1049_v52 = vrot.slane %v5454_v37, 4 }
  0xcc   : > { %7556 = vst [vmem:[#allocation18_spill] sm:$0xff] %v5420_v28  ;;  %v7420_v31 = vunpack.i.l.bf16 %v5420_v28  ;;  %v7422_v32 = vunpack.i.l.bf16 %v5422_v29 }
  0xcd   : > { %4713 = vrot.lane.b32.xlu1 %v5380_v11, %s7543_s15  ;;  %4708 = vrot.lane.b32.xlu0 %v5380_v11, %s7557_s18  ;;  %v1253_v63 = vsel %vm1252_vm6, %v1014_v57, %v1031_v46  ;;  %v1263_v5 = vsel %vm1261_vm10, %v1254_v59, %v1049_v52  ;;  %v1443_v46 = vrot.slane %v509_v45, 6 }
  0xce   : > { %v5449_v36 = vsel %vm7487_vm0, %v7422_v32, %v4495_v20  ;;  %v5459_v38 = vsel %vm7485_vm3, %v7420_v31, %v4510_v27  ;;  %v1459_v27 = vrot.slane %v5444_v35, 3 }
  0xcf   : > { %7558 = vst [vmem:[#allocation19_spill] sm:$0xff] %v5449_v36  ;;  %7559 = vst [vmem:[#allocation20_spill] sm:$0xff] %v5459_v38  ;;  %v5461_v39 = vpop.permute.xlu1 %4528  ;;  %v5463_v40 = vpop.permute.xlu0 %4523  ;;  %v997_v47 = vrot.slane %v5449_v36, 5  ;;  %v1048_v50 = vrot.slane %v5459_v38, 4  ;;  %v7417_v4 = vrot.slane %v5449_v36, 1 }
  0xd0   : > { %7560 = vst [vmem:[#allocation21_spill] sm:$0xff] %v5461_v39  ;;  %v7418_v43 = vunpack.i.l.bf16 %v5461_v39  ;;  %v7442_v48 = vunpack.i.h.bf16 %v5463_v40  ;;  %v4525_v49 = vunpack.i.l.bf16 %v5463_v40 }
  0xd1   : > { %4723 = vrot.lane.b32.xlu1 %v5380_v11, %s7545_s23  ;;  %4718 = vrot.lane.b32.xlu0 %v5380_v11, %s7542_s22  ;;  %v1235_v62 = vsel %vm1234_vm4, %v5274_v0, %v997_v47  ;;  %v1262_v8 = vsel %vm1261_vm10, %v1253_v63, %v1048_v50  ;;  %v1515_v45 = vsel %vm1279_vm8, %v7417_v4, %v1443_v46 }
  0xd2   : > { %v5494_v55 = vsel %vm7416_vm7, %v4525_v49, %v7442_v48  ;;  %v5499_v56 = vsel %vm7416_vm7, %v7418_v43, %v4525_v49  ;;  %v1244_v44 = vsel %vm1243_vm5, %v1235_v62, %v1014_v57  ;;  %v5547_v62 = vsel %vm1288_vm11, %v1515_v45, %v1459_v27 }
  0xd3   : > { %v5487_v53 = vpop.permute.xlu1 %4538  ;;  %v5489_v54 = vpop.permute.xlu0 %4533  ;;  %v1066_v60 = vrot.slane %v5494_v55, 1  ;;  %v1065_v61 = vrot.slane %v5499_v56, 1  ;;  %7562 = vst [vmem:[#allocation22_spill] sm:$0xff] %v5547_v62  ;;  %vm7430_vm7 = vcmask 760832  }
  0xd4   : > { %v7429_v42 = vunpack.i.h.bf16 %v5487_v53  ;;  %v7439_v47 = vunpack.i.h.bf16 %v5489_v54  ;;  %v4535_v49 = vunpack.i.l.bf16 %v5489_v54  ;;  %v4540_v52 = vunpack.i.l.bf16 %v5487_v53 }
  0xd5   : > { %4733 = vrot.lane.b32.xlu1 %v5380_v11, %s7546_s0  ;;  %4728 = vrot.lane.b32.xlu0 %v5380_v11, %s7544_s24  ;;  %v1272_v25 = vsel %vm1270_vm12, %v1263_v5, %v1066_v60  ;;  %v1271_v0 = vsel %vm1270_vm12, %v1262_v8, %v1065_v61  ;;  %v5553_v8 = vcombine.high %v5372_v10, %v5372_v10 }
  0xd6   : > { %v3870_v50 = vpack.c.bf16 %v1272_v25, %v1245_v22  ;;  %v3872_v51 = vpack.c.bf16 %v1271_v0, %v1244_v44  ;;  %v618_v22 = vsel %vm616_vm9, %v4535_v49, %v7439_v47  ;;  %v706_v0 = vsel %vm7436_vm13, %v4540_v52, %v7429_v42 }
  0xd7   : > { %v5516_v12 = vpop.permute.xlu1 %4548  ;;  %v5518_v20 = vpop.permute.xlu0 %4543  ;;  %7563 = vst [vmem:[#allocation23_spill] sm:$0xff] %v5553_v8  ;;  %v1117_v43 = vrot.slane %v706_v0, 5 }
  0xd8   : > { %v7426_v35 = vunpack.i.h.bf16 %v5516_v12  ;;  %v4550_v58 = vunpack.i.l.bf16 %v5516_v12  ;;  %3871 = vmatprep.subr.bf16.mxu1 %v3870_v50  ;;  %v7427_v27 = vunpack.i.l.bf16 %v5518_v20 }
  0xd9   : > { %4743 = vrot.lane.b32.xlu1 %v5380_v11, %s7548_s3  ;;  %4738 = vrot.lane.b32.xlu0 %v5380_v11, %s7561_s10 }
  0xda   : > { %3873 = vmatpush1.bf16.msra.mxu1 %v3872_v51  ;;  %v645_v10 = vsel %vm7432_vm14, %v4550_v58, %v7426_v35  ;;  %v1083_v51 = vrot.slane %v618_v22, 6  ;;  %v617_v22 = vsel %vm616_vm9, %v7427_v27, %v4535_v49 }
  0xdb   : > { %v5542_v57 = vpop.permute.xlu1 %4558  ;;  %v5544_v59 = vpop.permute.xlu0 %4553  ;;  %v1100_v23 = vrot.slane %v645_v10, 3 }
  0xdc   : > { %v7425_v63 = vunpack.i.h.bf16 %v5542_v57  ;;  %v4560_v5 = vunpack.i.l.bf16 %v5542_v57  ;;  %v7435_v45 = vunpack.i.l.bf16 %v5544_v59  ;;  %v1281_v27 = vsel %vm1279_vm8, %v1066_v60, %v1083_v51 }
  0xdd   : > { %4753 = vrot.lane.b32.xlu1 %v5380_v11, %s7550_s25  ;;  %4748 = vrot.lane.b32.xlu0 %v5380_v11, %s7547_s14 }
  0xde   : > { %v5574_v44 = vsel %vm7431_vm15, %v4560_v5, %v7425_v63  ;;  %v705_v35 = vsel %vm7436_vm13, %v7435_v45, %v4540_v52  ;;  %vm7461_vm13 = vcmask 498688  }
  0xdf   : > { %v5576_v46 = vpop.permute.xlu1 %4568  ;;  %v5578_v50 = vpop.permute.xlu0 %4563  ;;  %v1134_v31 = vrot.slane %v5574_v44, 2 }
  0xe0   : > { %v7428_v25 = vunpack.i.h.bf16 %v5576_v46  ;;  %v4570_v4 = vunpack.i.l.bf16 %v5576_v46  ;;  %v7437_v30 = vunpack.i.l.bf16 %v5578_v50 }
  0xe1   : > { %479 = vrot.lane.b32.xlu1 %v5553_v8, %s7538_s27  ;;  %4758 = vrot.lane.b32.xlu0 %v5380_v11, %s7549_s19 }
  0xe2   : > { %v672_v32 = vsel %vm7430_vm7, %v4570_v4, %v7428_v25  ;;  %v644_v0 = vsel %vm7432_vm14, %v7437_v30, %v4550_v58  ;;  %v1082_v25 = vrot.slane %v617_v22, 6  ;;  %v1116_v58 = vrot.slane %v705_v35, 5 }
  0xe3   : > { %v5598_v10 = vpop.permute.xlu1 %4578  ;;  %v5600_v9 = vpop.permute.xlu0 %4573  ;;  %v1298_v63 = vsel %vm1234_vm4, %v672_v32, %v1117_v43  ;;  %v1290_v32 = vsel %vm1288_vm11, %v1281_v27, %v1100_v23  ;;  %v1099_v52 = vrot.slane %v644_v0, 3  ;;  %vm7450_vm14 = vcmask 490496  }
  0xe4   : > { %v7434_v49 = vunpack.i.l.bf16 %v5598_v10  ;;  %v7433_v42 = vunpack.i.l.bf16 %v5600_v9  ;;  %v1306_v43 = vsel %vm1243_vm5, %v1298_v63, %v1134_v31 }
  0xe5   : > { %506 = vrot.lane.b32.xlu1 %v5553_v8, %s7551_s16  ;;  %4763 = vrot.lane.b32.xlu0 %v5380_v11, %s7552_s28  ;;  %v3874_v60 = vpack.c.bf16 %v1306_v43, %v1290_v32 }
  0xe6   : > { %v671_v55 = vsel %vm7430_vm7, %v7434_v49, %v4570_v4  ;;  %v5625_v51 = vsel %vm7431_vm15, %v7433_v42, %v4560_v5  ;;  %v1280_v4 = vsel %vm1279_vm8, %v1065_v61, %v1082_v25  ;;  %vm7440_vm7 = vcmask 515072  }
  0xe7   : > { %v5627_v22 = vpop.permute.xlu1 %4588  ;;  %v5629_v11 = vpop.permute.xlu0 %4583  ;;  %v7453_v23 = vrot.slane %v5625_v51, 2  ;;  %3875 = vmatprep.subr.bf16.mxu1 %v3874_v60  ;;  %v1297_v35 = vsel %vm1234_vm4, %v671_v55, %v1116_v58  ;;  %v1289_v63 = vsel %vm1288_vm11, %v1280_v4, %v1099_v52  ;;  %vm7449_vm15 = vcmask 506880  }
  0xe8   : > { %v7438_v56 = vunpack.i.l.bf16 %v5627_v22  ;;  %v7441_v61 = vunpack.i.h.bf16 %v5629_v11  ;;  %v4585_v25 = vunpack.i.l.bf16 %v5629_v11 }
  0xe9   : > { %560 = vrot.lane.b32.xlu1 %v5553_v8, %s7553_s13  ;;  %533 = vrot.lane.b32.xlu0 %v5553_v8, %s7554_s12  ;;  %v1305_v5 = vsel %vm1243_vm5, %v1297_v35, %v7453_v23 }
  0xea   : > { %v3876_v32 = vpack.c.bf16 %v1305_v5, %v1289_v63  ;;  %v759_v63 = vsel %vm7440_vm7, %v7438_v56, %v4585_v25  ;;  %v760_v5 = vsel %vm7440_vm7, %v4585_v25, %v7441_v61  ;;  %vm7460_vm7 = vcmask 261120  }
  0xeb   : > { %v5644_v27 = vpop.permute.xlu1 %4598  ;;  %v5646_v0 = vpop.permute.xlu0 %4593  ;;  %v1150_v61 = vrot.slane %v759_v63, 7  ;;  %v1151_v48 = vrot.slane %v760_v5, 7 }
  0xec   : > { %3877 = vmatpush1.bf16.msra.mxu1 %v3876_v32  ;;  %v7444_v55 = vunpack.i.h.bf16 %v5646_v0  ;;  %v4595_v60 = vunpack.i.l.bf16 %v5646_v0  ;;  %v7455_v32 = vunpack.i.h.bf16 %v5644_v27  ;;  %v4600_v42 = vunpack.i.l.bf16 %v5644_v27 }
  0xed   : > { %614 = vrot.lane.b32.xlu1 %v5553_v8, %s7539_s30  ;;  %587 = vrot.lane.b32.xlu0 %v5553_v8, %s7540_s20 }
  0xee   : > { %v787_v30 = vsel %vm7449_vm15, %v4595_v60, %v7444_v55 }
  0xef   : > { %v5655_v43 = vpop.permute.xlu1 %4608  ;;  %v5657_v52 = vpop.permute.xlu0 %4603 }
  0xf0   : > { %v7445_v58 = vunpack.i.l.bf16 %v5655_v43  ;;  %v7447_v4 = vunpack.i.h.bf16 %v5657_v52  ;;  %v4605_v35 = vunpack.i.l.bf16 %v5657_v52 }
  0xf1   : > { %641 = vrot.lane.b32.xlu1 %v5553_v8, %s7557_s18  ;;  %702 = vrot.lane.b32.xlu0 %v5553_v8, %s7541_s17 }
  0xf2   : > { %v786_v56 = vsel %vm7449_vm15, %v7445_v58, %v4595_v60  ;;  %v841_v26 = vsel %vm7450_vm14, %v4605_v35, %v7447_v4  ;;  %v814_v60 = vsel %vm7461_vm13, %v4600_v42, %v7455_v32  ;;  %v1168_v58 = vrot.slane %v787_v30, 4 }
  0xf3   : > { %v5676_v49 = vpop.permute.xlu1 %4618  ;;  %v5678_v45 = vpop.permute.xlu0 %4613  ;;  %v1167_v21 = vrot.slane %v786_v56, 4  ;;  %vm7511_vm15 = vcmask 228352   ;;  %v1185_v56 = vrot.slane %v814_v60, 1  ;;  %v7567_v32 = vrot.slane %v5625_v51, 2 }
  0xf4   : > { %7564 = vst [vmem:[#allocation24_spill] sm:$0xff] %v5676_v49  ;;  %7565 = vst [vmem:[#allocation25_spill] sm:$0xff] %v5678_v45  ;;  %v7451_v47 = vunpack.i.l.bf16 %v5676_v49  ;;  %v7454_v25 = vunpack.i.l.bf16 %v5678_v45 }
  0xf5   : > { %668 = vrot.lane.b32.xlu1 %v5553_v8, %s7542_s22  ;;  %729 = vrot.lane.b32.xlu0 %v5553_v8, %s7543_s15 }
  0xf6   : > { %v840_v55 = vsel %vm7450_vm14, %v7451_v47, %v4605_v35  ;;  %v813_v63 = vsel %vm7461_vm13, %v7454_v25, %v4600_v42  ;;  %vm954_vm14 = vcmask 236544   ;;  %v1202_v47 = vrot.slane %v841_v26, 6 }
  0xf7   : > { %v5704_v5 = vpop.permute.xlu1 %4628  ;;  %v5706_v4 = vpop.permute.xlu0 %4623  ;;  %v1201_v19 = vrot.slane %v840_v55, 6  ;;  %v1184_v23 = vrot.slane %v813_v63, 1  ;;  %v1314_v25 = vsel %vm1252_vm6, %v1134_v31, %v1151_v48  ;;  %v1313_v26 = vsel %vm1252_vm6, %v7567_v32, %v1150_v61 }
  0xf8   : > { %7566 = vst [vmem:[#allocation26_spill] sm:$0xff] %v5704_v5  ;;  %v7456_v24 = vunpack.i.l.bf16 %v5704_v5  ;;  %v7458_v35 = vunpack.i.h.bf16 %v5706_v4  ;;  %v4625_v30 = vunpack.i.l.bf16 %v5706_v4  ;;  %v1322_v44 = vsel %vm1261_vm10, %v1314_v25, %v1168_v58 }
  0xf9   : > { %783 = vrot.lane.b32.xlu1 %v5553_v8, %s7544_s24  ;;  %756 = vrot.lane.b32.xlu0 %v5553_v8, %s7545_s23  ;;  %v1321_v31 = vsel %vm1261_vm10, %v1313_v26, %v1167_v21  ;;  %v1330_v21 = vsel %vm1270_vm12, %v1322_v44, %v1185_v56  ;;  %vm7482_vm13 = vcmask 252928  }
  0xfa   : > { %v867_v55 = vsel %vm7460_vm7, %v7456_v24, %v4625_v30  ;;  %v868_v63 = vsel %vm7460_vm7, %v4625_v30, %v7458_v35  ;;  %v1338_v30 = vsel %vm1279_vm8, %v1185_v56, %v1202_v47  ;;  %v1337_v35 = vsel %vm1279_vm8, %v1184_v23, %v1201_v19 }
  0xfb   : > { %v5728_v60 = vpop.permute.xlu1 %4638  ;;  %v5730_v42 = vpop.permute.xlu0 %4633  ;;  %v1218_v48 = vrot.slane %v867_v55, 3  ;;  %v1219_v51 = vrot.slane %v868_v63, 3  ;;  %v1329_v25 = vsel %vm1270_vm12, %v1321_v31, %v1184_v23  ;;  %v7462_v55 = vunpack.i.h.bf16 %v5395_v15 }
  0xfc   : > { %7568 = vst [vmem:[#allocation27_spill] sm:$0xff] %v5730_v42  ;;  %v4640_v32 = vunpack.i.l.bf16 %v5728_v60  ;;  %v4635_v62 = vunpack.i.l.bf16 %v5730_v42  ;;  %v7571_v19 = vunpack.i.h.bf16 %v5728_v60  ;;  %v7572_v56 = vunpack.i.h.bf16 %v5730_v42 }
  0xfd   : > { %837 = vrot.lane.b32.xlu1 %v5553_v8, %s7561_s10  ;;  %810 = vrot.lane.b32.xlu0 %v5553_v8, %s7546_s0  ;;  %v1346_v58 = vsel %vm1288_vm11, %v1338_v30, %v1219_v51  ;;  %v1345_v26 = vsel %vm1288_vm11, %v1337_v35, %v1218_v48  ;;  %v7465_v23 = vrot.slane %v5430_v33, 1  ;;  %v1436_v35 = vrot.slane %v5468_v41, 6 }
  0xfe   : > { %v3878_v47 = vpack.c.bf16 %v1346_v58, %v1330_v21  ;;  %v3880_v61 = vpack.c.bf16 %v1345_v26, %v1329_v25  ;;  %v983_v38 = vsel %vm7511_vm15, %v4640_v32, %v7571_v19  ;;  %v5759_v44 = vsel %vm954_vm14, %v4635_v62, %v7572_v56 }
  0xff   : > { %v5749_v63 = vpop.permute.xlu1 %4648  ;;  %v5751_v24 = vpop.permute.xlu0 %4643  ;;  %v7573_v48 = vunpack.i.h.bf16 %v5422_v29  ;;  %v7574_v51 = vunpack.i.h.bf16 %v5387_v13  ;;  %vm7483_vm7 = vcmask 244736   ;;  %v7575_v41 = vunpack.i.h.bf16 %v5389_v14 }
 0x100   : > { %7569 = vst [vmem:[#allocation28_spill] sm:$0xff] %v5749_v63  ;;  %7570 = vst [vmem:[#allocation29_spill] sm:$0xff] %v5751_v24  ;;  %v7464_v31 = vunpack.i.l.bf16 %v5749_v63  ;;  %3879 = vmatprep.subr.bf16.mxu1 %v3878_v47  ;;  %v7466_v21 = vunpack.i.h.bf16 %v5751_v24  ;;  %v4645_v58 = vunpack.i.l.bf16 %v5751_v24  ;;  %v4506_v13 = vunpack.i.h.bf16 %v5405_v18 }
 0x101   : > { %952 = vrot.lane.b32.xlu1 %v5553_v8, %s7547_s14  ;;  %v5771_v30 = vsel %vm7487_vm0, %v7574_v51, %v7573_v48  ;;  %864 = vrot.lane.b32.xlu0 %v5553_v8, %s7548_s3  ;;  %v5782_v25 = vsel %vm7486_vm1, %v7575_v41, %v7462_v55  ;;  %v1389_v26 = vrot.slane %v983_v38, 7  ;;  %v1372_v47 = vrot.slane %v5759_v44, 2  ;;  %s5088_s14 = smov 111   ;;  %s5089_s3 = smov 108  }
 0x102   : > { %3881 = vmatpush1.bf16.msra.mxu1 %v3880_v61  ;;  %v5085_v48 = vmov 0   ;;  %v1405_v14 = vrot.slane %v5277_v1, 4  ;;  %v1421_v51 = vrot.slane %v5771_v30, 1  ;;  %v955_v38 = vsel %vm954_vm14, %v7464_v31, %v4635_v62  ;;  %v1525_v31 = vld [vmem:[%s7354_s2] sm:$0x3f] }
 0x103   : > { %v5786_v19 = vpop.permute.xlu1 %4658  ;;  %v5788_v56 = vpop.permute.xlu0 %4653  ;;  %4767 = vset.pattern.permute.xlu1 %v5085_v48  ;;  %4928 = vset.pattern.permute.xlu0 %v5085_v48  ;;  %v1508_v41 = vsel %vm1279_vm8, %v7465_v23, %v1436_v35  ;;  %v1437_v48 = vrot.slane %v5782_v25, 6  ;;  %v1452_v55 = vrot.slane %v5435_v34, 3  ;;  %v929_v61 = vsel %vm7483_vm7, %v4645_v58, %v7466_v21 }
 0x104   : > { %7576 = vst [vmem:[#allocation30_spill] sm:$0xff] %v5786_v19  ;;  %7577 = vst [vmem:[#allocation31_spill] sm:$0xff] %v5788_v56  ;;  %v7476_v44 = vunpack.i.l.bf16 %v5788_v56  ;;  %v7578_v36 = vunpack.i.l.bf16 %v5786_v19  ;;  %v7579_v35 = vunpack.i.h.bf16 %v5397_v16  ;;  %v4521_v34 = vunpack.i.h.bf16 %v5420_v28 }
 0x105   : > { %925 = vrot.lane.b32.xlu1 %v5553_v8, %s7549_s19  ;;  %979 = vrot.lane.b32.xlu0 %v5553_v8, %s7550_s25  ;;  %v1371_v7 = vrot.slane %v955_v38, 2  ;;  %v1355_v19 = vrot.slane %v929_v61, 5  ;;  %v1509_v42 = vsel %vm1279_vm8, %v1421_v51, %v1437_v48  ;;  %s5090_s19 = smov 110   ;;  %s5091_s25 = smov 109  }
 0x106   : > { %v928_v62 = vsel %vm7483_vm7, %v7578_v36, %v4645_v58  ;;  %v5818_v23 = vsel %vm7484_vm2, %v7579_v35, %v4506_v13  ;;  %v982_v21 = vsel %vm7511_vm15, %v7476_v44, %v4640_v32  ;;  %v1485_v58 = vsel %vm1252_vm6, %v1372_v47, %v1389_v26 }
 0x107   : > { %v5824_v18 = vpop.permute.xlu1 %877  ;;  %v5826_v36 = vpop.permute.xlu0 %4663  ;;  %v1388_v6 = vrot.slane %v982_v21, 7  ;;  %v4531_v35 = vunpack.i.h.bf16 %v5461_v39  ;;  %v1354_v28 = vrot.slane %v928_v62, 5  ;;  %v1493_v21 = vsel %vm1261_vm10, %v1485_v58, %v1405_v14 }
 0x108   : > { %7580 = vst [vmem:[#allocation32_spill] sm:$0xff] %v5824_v18  ;;  %v7477_v24 = vunpack.i.h.bf16 %v5826_v36  ;;  %v4665_v16 = vunpack.i.l.bf16 %v5826_v36  ;;  %v1453_v61 = vrot.slane %v5818_v23, 3  ;;  %v1516_v58 = vsel %vm1288_vm11, %v1508_v41, %v1452_v55 }
 0x109   : > { %1528 = vperm.xlu1 %4767, %v1525_v31   ;;  %891 = vrot.lane.b32.xlu0 %v5553_v8, %s7552_s28  ;;  %v1484_v38 = vsel %vm1252_vm6, %v1371_v7, %v1388_v6  ;;  %v999_v8 = vrot.slane %v5771_v30, 5  ;;  %v7582_v39 = vunpack.i.h.bf16 %v5463_v40  ;;  %vm1531_vm7 = vcmask 613376   ;;  %s5093_s28 = smov 80  }
 0x10a   : > { %v894_v32 = vsel %vm7482_vm13, %v5824_v18, %v4665_v16  ;;  %v895_v26 = vsel %vm7482_vm13, %v4665_v16, %v7477_v24  ;;  %v1492_v16 = vsel %vm1261_vm10, %v1484_v38, %v5281_v2  ;;  %v7581_v24 = vunpack.i.h.bf16 %v5403_v17 }
 0x10b   : > { %v5843_v62 = vpop.permute.xlu1 %527  ;;  %v5845_v48 = vpop.permute.xlu0 %500  ;;  %v1469_v31 = vsel %vm1234_vm4, %v895_v26, %v1355_v19  ;;  %v1468_v44 = vsel %vm1234_vm4, %v894_v32, %v1354_v28  ;;  %vm7583_vm13 = vcmask 785408   ;;  %v1501_v28 = vsel %vm1270_vm12, %v1493_v21, %v1421_v51 }
 0x10c   : > { %v565_v18 = vsel %vm7485_vm3, %v7581_v24, %v4521_v34  ;;  %v1477_v14 = vsel %vm1243_vm5, %v1469_v31, %v1372_v47  ;;  %v1476_v6 = vsel %vm1243_vm5, %v1468_v44, %v1371_v7  ;;  %v5861_v19 = vsel %vm7583_vm13, %v7582_v39, %v4531_v35 }
 0x10d   : > { %v1517_v2 = vsel %vm1288_vm11, %v1509_v42, %v1453_v61  ;;  %v5867_v17 = vsel %vm7484_vm2, %v4506_v13, %v5843_v62  ;;  %v7584_v7 = vunpack.i.h.bf16 %v5395_v15  ;;  %v3882_v55 = vpack.c.bf16 %v1501_v28, %v1477_v14 }
 0x10e   : > { %v7585_v40 = vrot.slane %v5430_v33, 1  ;;  %v1016_v30 = vrot.slane %v5782_v25, 2  ;;  %v1033_v42 = vrot.slane %v5818_v23, 7  ;;  %vm5086_vm13 = vmmov 1  }
 0x10f   : > { %v5873_v24 = vsel %vm7486_vm1, %v7584_v7, %v5845_v48  ;;  %v5880_v47 = vpop.permute.xlu1 %554  ;;  %v5882_v51 = vpop.permute.xlu0 %4668  ;;  %vm5885_vm2 = vmpackc.low %vm1234_vm4, %vm5086_vm13  ;;  %v3889_v41 = vpack.c.bf16 %v5454_v37, %v1516_v58  ;;  %v1050_v33 = vrot.slane %v565_v18, 4  ;;  %3883 = vmatprep.subr.bf16.mxu1 %v3882_v55  ;;  %v3886_v25 = vpack.c.bf16 %v565_v18, %v1517_v2 }
 0x110   : > { %v1500_v39 = vsel %vm1270_vm12, %v1492_v16, %v7585_v40  ;;  %v5892_v32 = vsel %vm7485_vm3, %v4521_v34, %v5880_v47  ;;  %v7488_v23 = vunpack.i.l.bf16 %v5882_v51  ;;  %v7489_v26 = vrot.slane %v5861_v19, 1 }
 0x111   : > { %v3884_v13 = vpack.c.bf16 %v1500_v39, %v1476_v6  ;;  %v1034_v21 = vrot.slane %v5867_v17, 7  ;;  %v1017_v38 = vrot.slane %v5873_v24, 2  ;;  %v1237_v61 = vsel %vm1234_vm4, %v5277_v1, %v999_v8 }
 0x112   : > { %v4546_v37 = vunpack.i.h.bf16 %v5518_v20  ;;  %v4556_v31 = vunpack.i.h.bf16 %v5544_v59  ;;  %v1051_v34 = vrot.slane %v5892_v32, 4  ;;  %v7588_v18 = vunpack.i.h.bf16 %v5422_v29 }
 0x113   : > { %3885 = vmatpush1.bf16.msra.mxu1 %v3884_v13  ;;  %v4566_v14 = vunpack.i.h.bf16 %v5578_v50  ;;  %v4576_v1 = vunpack.i.h.bf16 %v5600_v9  ;;  %v5915_v6 = vpop.permute.xlu1 %608  ;;  %v5917_v58 = vpop.permute.xlu0 %581  ;;  %v1255_v28 = vsel %vm1252_vm6, %v1016_v30, %v1033_v42  ;;  %v4581_v2 = vunpack.i.h.bf16 %v5598_v10  ;;  %v5933_v42 = vld [vmem:[%s7353_s1] sm:$0x3f] }
 0x114   : > { %v5908_v16 = vsel %vm7487_vm0, %v7588_v18, %v7488_v23  ;;  %3888 = vmatprep.subr.msk.bf16.mxu1 %vm5885_vm2, %v3886_v25  ;;  %vm7589_vm13 = vcmask 785408   ;;  %v1246_v55 = vsel %vm1243_vm5, %v1237_v61, %v1016_v30  ;;  %v1264_v40 = vsel %vm1261_vm10, %v1255_v28, %v1050_v33  ;;  %7590 = vst [vmem:[#allocation33_spill] sm:$0xff] %v5933_v42 }
 0x115   : > { %v1000_v8 = vrot.slane %v5908_v16, 5  ;;  %v593_v7 = vsel %vm7589_vm13, %v4531_v35, %v5917_v58  ;;  %v1256_v39 = vsel %vm1252_vm6, %v1017_v38, %v1034_v21  ;;  %v1273_v35 = vsel %vm1270_vm12, %v1264_v40, %v7489_v26 }
 0x116   : > { %v1068_v13 = vrot.slane %v593_v7, 1  ;;  %v7591_v30 = vunpack.i.h.bf16 %v5489_v54  ;;  %v7592_v21 = vunpack.i.h.bf16 %v5487_v53  ;;  %vm7593_vm13 = vcmask 752640  }
 0x117   : > { %3891 = vmatpush1.bf16.msk.msra.mxu1 %vm5885_vm2, %v3889_v41  ;;  %v1238_v25 = vsel %vm1234_vm4, %v5285_v3, %v1000_v8  ;;  %v1265_v18 = vsel %vm1261_vm10, %v1256_v39, %v1051_v34  ;;  %v7594_v8 = vunpack.i.h.bf16 %v5516_v12  ;;  %vm7595_vm3 = vcmask 769024   ;;  %v5958_v53 = vpop.permute.xlu0 %696 }
 0x118   : > { %v619_v33 = vsel %vm616_vm9, %v7591_v30, %v4546_v37  ;;  %v707_v41 = vsel %vm7593_vm13, %v7592_v21, %v4556_v31  ;;  %v1247_v61 = vsel %vm1243_vm5, %v1238_v25, %v1017_v38  ;;  %v7596_v7 = vunpack.i.h.bf16 %v5542_v57  ;;  %v5956_v30 = vpop.permute.xlu1 %635 }
 0x119   : > { %v646_v28 = vsel %vm7595_vm3, %v7594_v8, %v4566_v14  ;;  %vm7597_vm1 = vcmask 523264   ;;  %v620_v54 = vsel %vm616_vm9, %v4546_v37, %v5915_v6  ;;  %v1274_v38 = vsel %vm1270_vm12, %v1265_v18, %v1068_v13 }
 0x11a   : > { %v5952_v40 = vsel %vm7597_vm1, %v7596_v7, %v4576_v1  ;;  %v7598_v34 = vunpack.i.h.bf16 %v5576_v46  ;;  %vm7599_vm13 = vcmask 760832   ;;  %v647_v39 = vsel %vm7595_vm3, %v4566_v14, %v5956_v30  ;;  %3689 = vmatmul.mubr.msk.f32.vlgmr.msra.gmra.mrb[0].mxu1 %vm1531_vm7, %v5933_v42 }
 0x11b   : > { %vm7600_vm0 = vcmask 752640   ;;  %v3892_v25 = vpack.c.bf16 %v1274_v38, %v1247_v61  ;;  %v1084_v37 = vrot.slane %v619_v33, 6  ;;  %v1118_v21 = vrot.slane %v707_v41, 5  ;;  %v5976_v38 = vpop.permute.xlu0 %723 }
 0x11c   : > { %v673_v12 = vsel %vm7599_vm13, %v7598_v34, %v4581_v2  ;;  %v708_v57 = vsel %vm7600_vm0, %v4556_v31, %v5958_v53  ;;  %v3894_v8 = vpack.c.bf16 %v1273_v35, %v1246_v55  ;;  %v7601_v7 = vmov 0.0   ;;  %v5974_v61 = vpop.permute.xlu1 %662  ;;  %vm7602_vm0 = vmmov %vm7599_vm13 }
 0x11d   : > { %1686 = vmatprep.mubr.f32.mxu1 %v7601_v7  ;;  %v1101_v18 = vrot.slane %v646_v28, 3  ;;  %v1135_v46 = vrot.slane %v5952_v40, 2  ;;  %v1085_v23 = vrot.slane %v620_v54, 6  ;;  %3893 = vmatprep.subr.bf16.mxu1 %v3892_v25  ;;  %v1299_v34 = vsel %vm1234_vm4, %v673_v12, %v1118_v21 }
 0x11e   : > { %v4591_v14 = vunpack.i.h.bf16 %v5627_v22  ;;  %v1102_v26 = vrot.slane %v647_v39, 3  ;;  %v1119_v31 = vrot.slane %v708_v57, 5  ;;  %3895 = vmatpush1.bf16.msra.mxu1 %v3894_v8  ;;  %v4621_v55 = vunpack.i.h.bf16 %v5676_v49 }
 0x11f   : > { %v4616_v35 = vunpack.i.h.bf16 %v5678_v45  ;;  %v674_v33 = vsel %vm7602_vm0, %v4581_v2, %v5974_v61  ;;  %v735_v41 = vsel %vm7597_vm1, %v4576_v1, %v5976_v38  ;;  %v4631_v28 = vunpack.i.h.bf16 %v5704_v5  ;;  %v7645_v45 = vld [vmem:[#allocation16_spill] sm:$0xff] }
 0x120   : > { %v1300_v40 = vsel %vm1234_vm4, %v674_v33, %v1119_v31  ;;  %v1136_v54 = vrot.slane %v735_v41, 2  ;;  %v7603_v12 = vrot.slane %v5861_v19, 1  ;;  %v1283_v57 = vsel %vm1279_vm8, %v1068_v13, %v1085_v23  ;;  %v5996_v5 = vpop.permute.xlu1 %777  ;;  %v5998_v31 = vpop.permute.xlu0 %750 }
 0x121   : > { %v1307_v21 = vsel %vm1243_vm5, %v1299_v34, %v1135_v46  ;;  %v7604_v2 = vunpack.i.h.bf16 %v5629_v11  ;;  %vm7605_vm13 = vcmask 515072   ;;  %v4611_v1 = vunpack.i.h.bf16 %v5655_v43 }
 0x122   : > { %v1282_v39 = vsel %vm1279_vm8, %v7603_v12, %v1084_v37  ;;  %v1292_v19 = vsel %vm1288_vm11, %v1283_v57, %v1102_v26  ;;  %v1308_v37 = vsel %vm1243_vm5, %v1300_v40, %v1136_v54  ;;  %v7606_v23 = vunpack.i.h.bf16 %v5657_v52  ;;  %vm7610_vm1 = vmmov %vm7605_vm13 }
 0x123   : > { %v1291_v25 = vsel %vm1288_vm11, %v1282_v39, %v1101_v18  ;;  %v761_v8 = vsel %vm7605_vm13, %v7604_v2, %v4591_v14  ;;  %vm7607_vm3 = vcmask 490496   ;;  %v7608_v18 = vunpack.i.h.bf16 %v5644_v27 }
 0x124   : > { %v842_v13 = vsel %vm7607_vm3, %v7606_v23, %v4621_v55  ;;  %vm7609_vm0 = vcmask 498688   ;;  %v762_v34 = vsel %vm7610_vm1, %v4591_v14, %v5998_v31  ;;  %v3896_v33 = vpack.c.bf16 %v1308_v37, %v1292_v19  ;;  %v6016_v23 = vpop.permute.xlu1 %831 }
 0x125   : > { %v815_v11 = vsel %vm7609_vm0, %v7608_v18, %v4616_v35  ;;  %v7611_v41 = vunpack.i.h.bf16 %v5706_v4  ;;  %vm7612_vm13 = vcmask 261120   ;;  %v3898_v39 = vpack.c.bf16 %v1307_v21, %v1291_v25  ;;  %v6018_v18 = vpop.permute.xlu0 %804 }
 0x126   : > { %v1152_v26 = vrot.slane %v761_v8, 7  ;;  %v4656_v40 = vunpack.i.h.bf16 %v5788_v56  ;;  %3897 = vmatprep.subr.bf16.mxu1 %v3896_v33  ;;  %v1203_v52 = vrot.slane %v842_v13, 6  ;;  %v1186_v57 = vrot.slane %v815_v11, 1 }
 0x127   : > { %v869_v12 = vsel %vm7612_vm13, %v7611_v41, %v4631_v28  ;;  %vm7613_vm3 = vcmask 506880   ;;  %v1153_v2 = vrot.slane %v762_v34, 7  ;;  %3899 = vmatpush1.bf16.msra.mxu1 %v3898_v39  ;;  %v7614_v4 = vunpack.i.h.bf16 %v5646_v0 }
 0x128   : > { %v789_v27 = vsel %vm7613_vm3, %v4611_v1, %v5996_v5  ;;  %vm7615_vm0 = vmmov %vm7613_vm3  ;;  %v1220_v25 = vrot.slane %v869_v12, 3  ;;  %vm7616_vm1 = vcmask 490496   ;;  %vm7617_vm13 = vcmask 498688  }
 0x129   : > { %v788_v14 = vsel %vm7615_vm0, %v7614_v4, %v4611_v1  ;;  %v843_v21 = vsel %vm7616_vm1, %v4621_v55, %v6016_v23  ;;  %v816_v8 = vsel %vm7617_vm13, %v4616_v35, %v6018_v18  ;;  %v4651_v19 = vunpack.i.h.bf16 %v5749_v63  ;;  %v6032_v1 = vpop.permute.xlu1 %946  ;;  %v6034_v12 = vpop.permute.xlu0 %858  ;;  %v7620_v4 = vld [vmem:[#allocation27_spill] sm:$0xff] }
 0x12a   : > { %v7618_v37 = vunpack.i.h.bf16 %v5728_v60  ;;  %v1170_v11 = vrot.slane %v789_v27, 4  ;;  %v1204_v34 = vrot.slane %v843_v21, 6  ;;  %v1187_v33 = vrot.slane %v816_v8, 1 }
 0x12b   : > { %v1169_v41 = vrot.slane %v788_v14, 4  ;;  %v1316_v0 = vsel %vm1252_vm6, %v1136_v54, %v1153_v2  ;;  %v1339_v55 = vsel %vm1279_vm8, %v1186_v57, %v1203_v52  ;;  %v1315_v35 = vsel %vm1252_vm6, %v1135_v46, %v1152_v26  ;;  %v7622_v14 = vld [vmem:[#allocation30_spill] sm:$0xff] }
 0x12c   : > { %v984_v13 = vsel %vm7511_vm15, %v7618_v37, %v4656_v40  ;;  %vm7619_vm3 = vcmask 261120   ;;  %v1347_v60 = vsel %vm1288_vm11, %v1339_v55, %v1220_v25  ;;  %v7621_v27 = vunpack.i.h.bf16 %v7620_v4 }
 0x12d   : > { %v870_v39 = vsel %vm7619_vm3, %v4631_v28, %v6034_v12  ;;  %v4661_v8 = vunpack.i.h.bf16 %v7622_v14  ;;  %v1390_v54 = vrot.slane %v984_v13, 7  ;;  %v958_v52 = vsel %vm954_vm14, %v4651_v19, %v6032_v1  ;;  %v6051_v25 = vpop.permute.xlu1 %919  ;;  %v6053_v55 = vpop.permute.xlu0 %973  ;;  %v7623_v14 = vld [vmem:[#allocation29_spill] sm:$0xff] }
 0x12e   : > { %v957_v21 = vsel %vm954_vm14, %v7621_v27, %v4651_v19  ;;  %v1221_v2 = vrot.slane %v870_v39, 3  ;;  %v1324_v46 = vsel %vm1261_vm10, %v1316_v0, %v1170_v11  ;;  %v1340_v26 = vsel %vm1279_vm8, %v1187_v33, %v1204_v34 }
 0x12f   : > { %v1422_v28 = vrot.slane %v5908_v16, 1  ;;  %v1332_v4 = vsel %vm1270_vm12, %v1324_v46, %v1187_v33  ;;  %v1323_v39 = vsel %vm1261_vm10, %v1315_v35, %v1169_v41  ;;  %v1373_v27 = vrot.slane %v957_v21, 2  ;;  %v7629_v21 = vld [vmem:[#allocation15_spill] sm:$0xff] }
 0x130   : > { %v1348_v13 = vsel %vm1288_vm11, %v1340_v26, %v1221_v2  ;;  %v985_v19 = vsel %vm7511_vm15, %v4656_v40, %v6053_v55  ;;  %v1331_v11 = vsel %vm1270_vm12, %v1323_v39, %v1186_v57  ;;  %v1438_v34 = vrot.slane %v5873_v24, 6 }
 0x131   : > { %v3900_v37 = vpack.c.bf16 %v1348_v13, %v1332_v4  ;;  %v1374_v16 = vrot.slane %v958_v52, 2  ;;  %v1391_v0 = vrot.slane %v985_v19, 7  ;;  %v3902_v56 = vpack.c.bf16 %v1347_v60, %v1331_v11 }
 0x132   : > { %v7624_v63 = vunpack.i.h.bf16 %v7623_v14  ;;  %vm7625_vm0 = vcmask 244736   ;;  %v1486_v2 = vsel %vm1252_vm6, %v1373_v27, %v1390_v54  ;;  %v7626_v41 = vunpack.i.h.bf16 %v5882_v51  ;;  %v6077_v14 = vpop.permute.xlu1 %4678  ;;  %v6079_v54 = vpop.permute.xlu0 %4673 }
 0x133   : > { %v7627_v35 = vunpack.i.l.bf16 %v5882_v51  ;;  %vm7628_vm1 = vcmask 1039360   ;;  %3901 = vmatprep.subr.bf16.mxu1 %v3900_v37  ;;  %v1407_v57 = vrot.slane %v7629_v21, 4  ;;  %v1454_v24 = vrot.slane %v5867_v17, 3  ;;  %vm7630_vm13 = vmmov %vm7625_vm0 }
 0x134   : > { %v930_v33 = vsel %vm7625_vm0, %v7624_v63, %v4661_v8  ;;  %v1510_v52 = vsel %vm1279_vm8, %v1422_v28, %v1438_v34  ;;  %v931_v60 = vsel %vm7630_vm13, %v4661_v8, %v6051_v25  ;;  %v1487_v63 = vsel %vm1252_vm6, %v1374_v16, %v1391_v0  ;;  %3903 = vmatpush1.bf16.msra.mxu1 %v3902_v56 }
 0x135   : > { %v486_v40 = vsel %vm7628_vm1, %v7627_v35, %v7626_v41  ;;  %v7497_v46 = vunpack.i.h.bf16 %v6077_v14  ;;  %v4680_v37 = vunpack.i.l.bf16 %v6077_v14  ;;  %v7494_v26 = vunpack.i.h.bf16 %v6079_v54 }
 0x136   : > { %v4675_v17 = vunpack.i.l.bf16 %v6079_v54  ;;  %v1356_v4 = vrot.slane %v930_v33, 5  ;;  %v1001_v13 = vrot.slane %v486_v40, 5  ;;  %v1423_v39 = vrot.slane %v486_v40, 1 }
 0x137   : > { %v1494_v8 = vsel %vm1261_vm10, %v1486_v2, %v5285_v3  ;;  %v7631_v19 = vunpack.i.h.bf16 %v5826_v36  ;;  %vm7632_vm3 = vcmask 252928   ;;  %v6095_v0 = vsel %vm1288_vm11, %v1510_v52, %v1454_v24  ;;  %v6106_v36 = vpop.permute.xlu1 %4688  ;;  %v6108_v2 = vpop.permute.xlu0 %4683 }
 0x138   : > { %vm7633_vm0 = vmmov %vm7632_vm3  ;;  %v1502_v34 = vsel %vm1270_vm12, %v1494_v8, %v1422_v28  ;;  %v1357_v33 = vrot.slane %v931_v60, 5  ;;  %vm7634_vm1 = vcmask 1031168   ;;  %v1495_v35 = vsel %vm1261_vm10, %v1487_v63, %v1407_v57 }
 0x139   : > { %v896_v11 = vsel %vm7632_vm3, %v7631_v19, %v4675_v17  ;;  %v897_v56 = vsel %vm7633_vm0, %v4675_v17, %v7494_v26  ;;  %v6099_v41 = vsel %vm7634_vm1, %v5845_v48, %v4680_v37  ;;  %vm7635_vm13 = vmmov %vm7634_vm1  ;;  %v7496_v40 = vunpack.i.h.bf16 %v6106_v36 }
 0x13a   : > { %v6104_v3 = vsel %vm7635_vm13, %v4680_v37, %v7497_v46  ;;  %v1470_v28 = vsel %vm1234_vm4, %v896_v11, %v1356_v4  ;;  %v4690_v21 = vunpack.i.l.bf16 %v6106_v36  ;;  %v7493_v48 = vunpack.i.h.bf16 %v6108_v2  ;;  %v4963_v37 = vld [vmem:[%s5271_s21 + $0x10] sm:$0x77] }
 0x13b   : > { %v4685_v24 = vunpack.i.l.bf16 %v6108_v2  ;;  %v1471_v52 = vsel %vm1234_vm4, %v897_v56, %v1357_v33  ;;  %v1478_v60 = vsel %vm1243_vm5, %v1470_v28, %v1373_v27  ;;  %v6120_v17 = vsel %vm1234_vm4, %v4963_v37, %v1001_v13  ;;  %v6139_v11 = vpop.permute.xlu1 %4693  ;;  %v6141_v56 = vpop.permute.xlu0 %477 }
 0x13c   : > { %v1019_v57 = vrot.slane %v6104_v3, 2  ;;  %v1439_v63 = vrot.slane %v6099_v41, 6  ;;  %v1479_v4 = vsel %vm1243_vm5, %v1471_v52, %v1374_v16  ;;  %v3911_v8 = vpack.c.bf16 %v5892_v32, %v6095_v0 }
 0x13d   : > { %vm7636_vm3 = vcmask 1014784   ;;  %vm7637_vm0 = vcmask 1022976   ;;  %v1503_v16 = vsel %vm1270_vm12, %v1495_v35, %v1423_v39  ;;  %v3906_v28 = vpack.c.bf16 %v1502_v34, %v1478_v60 }
 0x13e   : > { %v6130_v19 = vsel %vm7636_vm3, %v4690_v21, %v7496_v40  ;;  %v540_v27 = vsel %vm7637_vm0, %v5843_v62, %v4685_v24  ;;  %vm7638_vm1 = vmmov %vm7637_vm0  ;;  %v7495_v62 = vunpack.i.h.bf16 %v6139_v11  ;;  %v4695_v52 = vunpack.i.l.bf16 %v6139_v11 }
 0x13f   : > { %v6137_v13 = vsel %vm7638_vm1, %v4685_v24, %v7493_v48  ;;  %vm7639_vm13 = vmmov %vm7636_vm3  ;;  %v1455_v33 = vrot.slane %v540_v27, 3  ;;  %v7640_v24 = vunpack.i.h.bf16 %v5882_v51  ;;  %vm7641_vm3 = vcmask 1039360   ;;  %v6165_v51 = vpop.permute.xlu1 %4703 }
 0x140   : > { %v6146_v32 = vsel %vm7639_vm13, %v5880_v47, %v4690_v21  ;;  %v1036_v0 = vrot.slane %v6137_v13, 7  ;;  %v3904_v48 = vpack.c.bf16 %v1503_v16, %v1479_v4  ;;  %v1018_v35 = vrot.slane %v6099_v41, 2 }
 0x141   : > { %v6155_v37 = vsel %vm7641_vm3, %v7640_v24, %v6141_v56  ;;  %v1440_v47 = vrot.slane %v6104_v3, 6  ;;  %v1053_v21 = vrot.slane %v6130_v19, 4  ;;  %v1511_v26 = vsel %vm1279_vm8, %v1423_v39, %v1439_v63  ;;  %v6167_v24 = vpop.permute.xlu0 %4698 }
 0x142   : > { %vm7642_vm0 = vcmask 785408   ;;  %v1002_v60 = vrot.slane %v6155_v37, 5  ;;  %3905 = vmatprep.subr.bf16.mxu1 %v3904_v48  ;;  %v1519_v4 = vsel %vm1288_vm11, %v1511_v26, %v1455_v33  ;;  %v1258_v41 = vsel %vm1252_vm6, %v1019_v57, %v1036_v0 }
 0x143   : > { %v595_v34 = vsel %vm7642_vm0, %v4695_v52, %v7495_v62  ;;  %v1052_v3 = vrot.slane %v6146_v32, 4  ;;  %vm7643_vm1 = vmmov %vm7642_vm0  ;;  %3907 = vmatpush1.bf16.msra.mxu1 %v3906_v28  ;;  %v1035_v48 = vrot.slane %v540_v27, 7  ;;  %v4705_v62 = vunpack.i.l.bf16 %v6165_v51  ;;  %v6190_v16 = vpop.permute.xlu1 %4713 }
 0x144   : > { %v6174_v39 = vsel %vm7643_vm1, %v5917_v58, %v4695_v52  ;;  %v7499_v40 = vunpack.i.h.bf16 %v6167_v24  ;;  %v4700_v26 = vunpack.i.l.bf16 %v6167_v24  ;;  %v1070_v33 = vrot.slane %v595_v34, 1 }
 0x145   : > { %v3908_v46 = vpack.c.bf16 %v6146_v32, %v1519_v4  ;;  %v1267_v58 = vsel %vm1261_vm10, %v1258_v41, %v1053_v21  ;;  %v1069_v52 = vrot.slane %v6174_v39, 1  ;;  %vm7644_vm13 = vcmask 752640   ;;  %v6192_v63 = vpop.permute.xlu0 %4708 }
 0x146   : > { %v709_v28 = vsel %vm7644_vm13, %v5958_v53, %v4705_v62  ;;  %v622_v27 = vsel %vm616_vm9, %v4700_v26, %v7499_v40  ;;  %v1240_v34 = vsel %vm1234_vm4, %v7645_v45, %v1002_v60  ;;  %v7646_v32 = vrot.slane %v6155_v37, 1  ;;  %vm7648_vm3 = vmmov %vm7644_vm13 }
 0x147   : > { %v7647_v4 = vunpack.i.h.bf16 %v6165_v51  ;;  %v621_v41 = vsel %vm616_vm9, %v5915_v6, %v4700_v26  ;;  %v1087_v39 = vrot.slane %v622_v27, 6  ;;  %3910 = vmatprep.subr.msk.bf16.mxu1 %vm5885_vm2, %v3908_v46  ;;  %v4715_v40 = vunpack.i.l.bf16 %v6190_v16  ;;  %v6222_v60 = vpop.permute.xlu1 %4723 }
 0x148   : > { %v6199_v21 = vsel %vm1279_vm8, %v7646_v32, %v1440_v47  ;;  %3913 = vmatpush1.bf16.msk.msra.mxu1 %vm5885_vm2, %v3911_v8  ;;  %v7501_v47 = vunpack.i.h.bf16 %v6192_v63  ;;  %v4710_v32 = vunpack.i.l.bf16 %v6192_v63  ;;  %v1120_v0 = vrot.slane %v709_v28, 5 }
 0x149   : > { %v710_v53 = vsel %vm7648_vm3, %v4705_v62, %v7647_v4  ;;  %v1249_v62 = vsel %vm1243_vm5, %v1240_v34, %v1019_v57  ;;  %v1276_v6 = vsel %vm1270_vm12, %v1267_v58, %v1070_v33  ;;  %v1257_v26 = vsel %vm1252_vm6, %v1018_v35, %v1035_v48  ;;  %v6224_v49 = vpop.permute.xlu0 %4718 }
 0x14a   : > { %v1121_v27 = vrot.slane %v710_v53, 5  ;;  %v1086_v46 = vrot.slane %v621_v41, 6  ;;  %vm7649_vm0 = vcmask 769024   ;;  %v1248_v4 = vsel %vm1243_vm5, %v6120_v17, %v1018_v35 }
 0x14b   : > { %v649_v8 = vsel %vm7649_vm0, %v4710_v32, %v7501_v47  ;;  %vm7650_vm1 = vcmask 523264   ;;  %v7651_v58 = vunpack.i.h.bf16 %v6190_v16  ;;  %vm7653_vm3 = vmmov %vm7649_vm0  ;;  %3692 = vmatmul.mubr.msk.f32.vlgmr.msra.gmra.mrb[2].mxu1 %vm1531_vm7, %v5933_v42  ;;  %v1285_v34 = vsel %vm1279_vm8, %v1070_v33, %v1087_v39  ;;  %v6243_v39 = vpop.permute.xlu1 %4733 }
 0x14c   : > { %v736_v57 = vsel %vm7650_vm1, %v5976_v38, %v4715_v40  ;;  %vm7652_vm13 = vmmov %vm7650_vm1  ;;  %v648_v28 = vsel %vm7653_vm3, %v5956_v30, %v4710_v32  ;;  %v3914_v17 = vpack.c.bf16 %v1276_v6, %v1249_v62  ;;  %v1266_v35 = vsel %vm1261_vm10, %v1257_v26, %v1052_v3  ;;  %1757 = vmatprep.mubr.f32.mxu1 %v7601_v7 }
 0x14d   : > { %v737_v48 = vsel %vm7652_vm13, %v4715_v40, %v7651_v58  ;;  %v7504_v53 = vunpack.i.h.bf16 %v6222_v60  ;;  %v4725_v41 = vunpack.i.l.bf16 %v6222_v60  ;;  %v1104_v38 = vrot.slane %v649_v8, 3  ;;  %v6245_v3 = vpop.permute.xlu0 %4728 }
 0x14e   : > { %v1275_v40 = vsel %vm1270_vm12, %v1266_v35, %v1069_v52  ;;  %v7514_v58 = vunpack.i.h.bf16 %v6224_v49  ;;  %v4720_v30 = vunpack.i.l.bf16 %v6224_v49  ;;  %v1137_v32 = vrot.slane %v736_v57, 2  ;;  %3915 = vmatprep.subr.bf16.mxu1 %v3914_v17 }
 0x14f   : > { %v1138_v47 = vrot.slane %v737_v48, 2  ;;  %v1103_v42 = vrot.slane %v648_v28, 3  ;;  %v3916_v33 = vpack.c.bf16 %v1275_v40, %v1248_v4  ;;  %vm7654_vm0 = vcmask 515072  }
 0x150   : > { %v763_v62 = vsel %vm7654_vm0, %v5998_v31, %v4725_v41  ;;  %vm7655_vm1 = vmmov %vm7654_vm0  ;;  %vm7656_vm13 = vcmask 760832   ;;  %v7505_v57 = vunpack.i.h.bf16 %v6243_v39  ;;  %v4735_v48 = vunpack.i.l.bf16 %v6243_v39 }
 0x151   : > { %v764_v6 = vsel %vm7655_vm1, %v4725_v41, %v7504_v53  ;;  %v675_v26 = vsel %vm7656_vm13, %v5974_v61, %v4720_v30  ;;  %vm7657_vm3 = vmmov %vm7656_vm13  ;;  %3917 = vmatpush1.bf16.msra.mxu1 %v3916_v33  ;;  %v7506_v31 = vunpack.i.h.bf16 %v6245_v3  ;;  %v4730_v28 = vunpack.i.l.bf16 %v6245_v3  ;;  %v6267_v33 = vpop.permute.xlu0 %4738 }
 0x152   : > { %v676_v8 = vsel %vm7657_vm3, %v4720_v30, %v7514_v58  ;;  %v1301_v4 = vsel %vm1234_vm4, %v675_v26, %v1120_v0  ;;  %v1294_v17 = vsel %vm1288_vm11, %v1285_v34, %v1104_v38  ;;  %v1284_v61 = vsel %vm1279_vm8, %v1069_v52, %v1086_v46  ;;  %v6265_v30 = vpop.permute.xlu1 %4743 }
 0x153   : > { %v1302_v35 = vsel %vm1234_vm4, %v676_v8, %v1121_v27  ;;  %v1154_v41 = vrot.slane %v763_v62, 7  ;;  %v1155_v40 = vrot.slane %v764_v6, 7  ;;  %v1309_v26 = vsel %vm1243_vm5, %v1301_v4, %v1137_v32 }
 0x154   : > { %v1310_v0 = vsel %vm1243_vm5, %v1302_v35, %v1138_v47  ;;  %vm7658_vm0 = vcmask 498688   ;;  %vm7659_vm1 = vcmask 506880   ;;  %v1293_v27 = vsel %vm1288_vm11, %v1284_v61, %v1103_v42 }
 0x155   : > { %v817_v53 = vsel %vm7658_vm0, %v6018_v18, %v4735_v48  ;;  %v790_v34 = vsel %vm7659_vm1, %v5996_v5, %v4730_v28  ;;  %vm7660_vm13 = vmmov %vm7659_vm1  ;;  %v7508_v62 = vunpack.i.h.bf16 %v6265_v30  ;;  %v4745_v6 = vunpack.i.l.bf16 %v6265_v30 }
 0x156   : > { %v791_v52 = vsel %vm7660_vm13, %v4730_v28, %v7506_v31  ;;  %vm7661_vm3 = vmmov %vm7658_vm0  ;;  %v7510_v18 = vunpack.i.h.bf16 %v6267_v33  ;;  %v4740_v8 = vunpack.i.l.bf16 %v6267_v33  ;;  %v3918_v5 = vpack.c.bf16 %v1310_v0, %v1294_v17  ;;  %v6292_v61 = vpop.permute.xlu1 %4753 }
 0x157   : > { %v818_v46 = vsel %vm7661_vm3, %v4735_v48, %v7505_v57  ;;  %v1172_v38 = vrot.slane %v791_v52, 4  ;;  %v3920_v4 = vpack.c.bf16 %v1309_v26, %v1293_v27  ;;  %v7662_v35 = vrot.slane %v6137_v13, 3  ;;  %v6294_v48 = vpop.permute.xlu0 %4748 }
 0x158   : > { %v1171_v28 = vrot.slane %v790_v34, 4  ;;  %v1318_v52 = vsel %vm1252_vm6, %v1138_v47, %v1155_v40  ;;  %v1317_v57 = vsel %vm1252_vm6, %v1137_v32, %v1154_v41  ;;  %v1189_v31 = vrot.slane %v818_v46, 1  ;;  %3919 = vmatprep.subr.bf16.mxu1 %v3918_v5 }
 0x159   : > { %v6290_v42 = vsel %vm1288_vm11, %v6199_v21, %v7662_v35  ;;  %vm7663_vm0 = vcmask 261120   ;;  %vm7664_vm1 = vcmask 490496   ;;  %v1188_v21 = vrot.slane %v817_v53, 1  ;;  %3921 = vmatpush1.bf16.msra.mxu1 %v3920_v4 }
 0x15a   : > { %v872_v17 = vsel %vm7663_vm0, %v4745_v6, %v7508_v62  ;;  %v845_v13 = vsel %vm7664_vm1, %v4740_v8, %v7510_v18  ;;  %vm7665_vm13 = vmmov %vm7663_vm0  ;;  %v7507_v32 = vunpack.i.h.bf16 %v6292_v61  ;;  %v4755_v41 = vunpack.i.l.bf16 %v6292_v61  ;;  %v480_v46 = vpop.permute.xlu1 %479 }
 0x15b   : > { %v871_v0 = vsel %vm7665_vm13, %v6034_v12, %v4745_v6  ;;  %vm7666_vm3 = vmmov %vm7664_vm1  ;;  %v1206_v40 = vrot.slane %v845_v13, 6  ;;  %v4750_v26 = vunpack.i.l.bf16 %v6294_v48  ;;  %v1326_v34 = vsel %vm1261_vm10, %v1318_v52, %v1172_v38  ;;  %v6313_v5 = vpop.permute.xlu0 %4758 }
 0x15c   : > { %v844_v47 = vsel %vm7666_vm3, %v6016_v23, %v4740_v8  ;;  %v1223_v27 = vrot.slane %v872_v17, 3  ;;  %v7509_v53 = vunpack.i.h.bf16 %v6294_v48  ;;  %v1325_v12 = vsel %vm1261_vm10, %v1317_v57, %v1171_v28  ;;  %v6318_v8 = vld [vmem:[%s5271_s21 + $0x18] sm:$0x77] }
 0x15d   : > { %v1205_v6 = vrot.slane %v844_v47, 6  ;;  %v1342_v23 = vsel %vm1279_vm8, %v1189_v31, %v1206_v40  ;;  %v1222_v13 = vrot.slane %v871_v0, 3  ;;  %vm7667_vm0 = vcmask 1039360  }
 0x15e   : > { %v6325_v38 = vsel %vm7667_vm0, %v6141_v56, %v480_v46  ;;  %v1334_v52 = vsel %vm1270_vm12, %v1326_v34, %v1189_v31  ;;  %v986_v57 = vsel %vm7511_vm15, %v6053_v55, %v4755_v41  ;;  %v6333_v28 = vsel %vm7511_vm15, %v4755_v41, %v7507_v32  ;;  %v507_v40 = vpop.permute.xlu1 %506  ;;  %vm7669_vm1 = vmmov %vm7667_vm0 }
 0x15f   : > { %v6337_v17 = vsel %vm954_vm14, %v6032_v1, %v4750_v26  ;;  %v1333_v0 = vsel %vm1270_vm12, %v1325_v12, %v1188_v21  ;;  %v6343_v56 = vsel %vm954_vm14, %v4750_v26, %v7509_v53  ;;  %v1003_v31 = vrot.slane %v6325_v38, 5  ;;  %v6348_v41 = vpop.permute.xlu0 %4763 }
 0x160   : > { %v7512_v55 = vunpack.i.h.bf16 %v6313_v5  ;;  %v1350_v47 = vsel %vm1288_vm11, %v1342_v23, %v1223_v27  ;;  %v7668_v34 = vunpack.i.l.bf16 %v5422_v29  ;;  %v4760_v12 = vunpack.i.l.bf16 %v6313_v5 }
 0x161   : > { %v3922_v32 = vpack.c.bf16 %v1350_v47, %v1334_v52  ;;  %v1341_v26 = vsel %vm1279_vm8, %v1188_v21, %v1205_v6  ;;  %v1392_v62 = vrot.slane %v986_v57, 7  ;;  %v1393_v53 = vrot.slane %v6333_v28, 7  ;;  %v7693_v21 = vld [vmem:[#allocation21_spill] sm:$0xff] }
 0x162   : > { %v6353_v1 = vsel %vm7669_vm1, %v480_v46, %v7668_v34  ;;  %v1349_v18 = vsel %vm1288_vm11, %v1341_v26, %v1222_v13  ;;  %v7670_v27 = vunpack.i.h.bf16 %v6077_v14  ;;  %vm7671_vm13 = vcmask 1031168   ;;  %v561_v57 = vpop.permute.xlu1 %560  ;;  %v7678_v26 = vld [vmem:[#allocation18_spill] sm:$0xff] }
 0x163   : > { %v1375_v35 = vrot.slane %v6337_v17, 2  ;;  %v1376_v29 = vrot.slane %v6343_v56, 2  ;;  %vm7672_vm3 = vcmask 244736   ;;  %3923 = vmatprep.subr.bf16.mxu1 %v3922_v32  ;;  %v3924_v52 = vpack.c.bf16 %v1349_v18, %v1333_v0  ;;  %v534_v28 = vpop.permute.xlu0 %533  ;;  %vm7675_vm1 = vmmov %vm7671_vm13 }
 0x164   : > { %v515_v23 = vsel %vm7671_vm13, %v7670_v27, %v507_v40  ;;  %v933_v46 = vsel %vm7672_vm3, %v4760_v12, %v7512_v55  ;;  %v1241_v6 = vsel %vm1234_vm4, %v6318_v8, %v1003_v31  ;;  %v1425_v13 = vrot.slane %v6325_v38, 1  ;;  %vm7673_vm0 = vmmov %vm7672_vm3 }
 0x165   : > { %v7513_v14 = vunpack.i.h.bf16 %v6348_v41  ;;  %v932_v17 = vsel %vm7673_vm0, %v6051_v25, %v4760_v12  ;;  %3925 = vmatpush1.bf16.msra.mxu1 %v3924_v52  ;;  %v1020_v56 = vrot.slane %v515_v23, 2  ;;  %v1441_v47 = vrot.slane %v515_v23, 6 }
 0x166   : > { %v4765_v32 = vunpack.i.l.bf16 %v6348_v41  ;;  %v1359_v18 = vrot.slane %v933_v46, 5  ;;  %v7674_v0 = vunpack.i.l.bf16 %v5395_v15  ;;  %v7676_v38 = vunpack.i.h.bf16 %v6106_v36  ;;  %v7686_v46 = vld [vmem:[#allocation17_spill] sm:$0xff] }
 0x167   : > { %vm7677_vm13 = vcmask 1014784   ;;  %v7679_v27 = vunpack.i.l.bf16 %v7678_v26  ;;  %v7681_v12 = vunpack.i.h.bf16 %v6079_v54  ;;  %vm7682_vm0 = vcmask 252928  }
 0x168   : > { %v6378_v34 = vsel %vm7675_vm1, %v507_v40, %v7674_v0  ;;  %v6383_v31 = vsel %vm7677_vm13, %v7676_v38, %v561_v57  ;;  %vm7680_vm3 = vmmov %vm7677_vm13  ;;  %v7684_v40 = vunpack.i.h.bf16 %v6108_v2  ;;  %vm7685_vm1 = vcmask 1022976  }
 0x169   : > { %v6388_v25 = vsel %vm7680_vm3, %v561_v57, %v7679_v27  ;;  %v898_v23 = vsel %vm7682_vm0, %v7681_v12, %v4765_v32  ;;  %vm7683_vm15 = vmmov %vm7682_vm0  ;;  %v7687_v52 = vunpack.i.l.bf16 %v7686_v46  ;;  %v1358_v38 = vrot.slane %v932_v17, 5  ;;  %v615_v27 = vpop.permute.xlu1 %614 }
 0x16a   : > { %v899_v15 = vsel %vm7683_vm15, %v4765_v32, %v7513_v14  ;;  %v542_v36 = vsel %vm7685_vm1, %v7684_v40, %v534_v28  ;;  %vm7688_vm13 = vmmov %vm7685_vm1  ;;  %v1488_v12 = vsel %vm1252_vm6, %v1375_v35, %v1392_v62  ;;  %v1021_v55 = vrot.slane %v6378_v34, 2  ;;  %v588_v40 = vpop.permute.xlu0 %587 }
 0x16b   : > { %v6402_v0 = vsel %vm7688_vm13, %v534_v28, %v7687_v52  ;;  %v1037_v57 = vrot.slane %v542_v36, 7  ;;  %v1457_v54 = vrot.slane %v542_v36, 3  ;;  %v6408_v32 = vsel %vm1243_vm5, %v1241_v6, %v1020_v56 }
 0x16c   : > { %v1038_v26 = vrot.slane %v6402_v0, 7  ;;  %v1513_v2 = vsel %vm1279_vm8, %v1425_v13, %v1441_v47  ;;  %v1472_v46 = vsel %vm1234_vm4, %v898_v23, %v1358_v38  ;;  %v1054_v28 = vrot.slane %v6383_v31, 4 }
 0x16d   : > { %v1055_v17 = vrot.slane %v6388_v25, 4  ;;  %v1473_v52 = vsel %vm1234_vm4, %v899_v15, %v1359_v18  ;;  %v7689_v36 = vunpack.i.h.bf16 %v6167_v24  ;;  %v7690_v14 = vunpack.i.l.bf16 %v5518_v20 }
 0x16e   : > { %v7691_v58 = vunpack.i.h.bf16 %v6139_v11  ;;  %vm7692_vm15 = vcmask 785408   ;;  %v7694_v23 = vunpack.i.l.bf16 %v7693_v21  ;;  %v1259_v4 = vsel %vm1252_vm6, %v1020_v56, %v1037_v57  ;;  %v703_v21 = vpop.permute.xlu0 %702 }
 0x16f   : > { %v623_v62 = vsel %vm616_vm9, %v7689_v36, %v615_v27  ;;  %v626_v6 = vsel %vm616_vm9, %v615_v27, %v7690_v14  ;;  %vm7695_vm3 = vmmov %vm7692_vm15  ;;  %v1260_v18 = vsel %vm1252_vm6, %v1021_v55, %v1038_v26  ;;  %v1521_v24 = vsel %vm1288_vm11, %v1513_v2, %v1457_v54  ;;  %v642_v36 = vpop.permute.xlu1 %641 }
 0x170   : > { %v596_v47 = vsel %vm7692_vm15, %v7691_v58, %v588_v40  ;;  %v599_v38 = vsel %vm7695_vm3, %v588_v40, %v7694_v23  ;;  %v1481_v20 = vsel %vm1243_vm5, %v1473_v52, %v1376_v29  ;;  %v1489_v14 = vsel %vm1252_vm6, %v1376_v29, %v1393_v53 }
 0x171   : > { %v1071_v15 = vrot.slane %v596_v47, 1  ;;  %v1480_v11 = vsel %vm1243_vm5, %v1472_v46, %v1375_v35  ;;  %v1496_v58 = vsel %vm1261_vm10, %v1488_v12, %v7645_v45  ;;  %v1088_v27 = vrot.slane %v623_v62, 6 }
 0x172   : > { %v1089_v40 = vrot.slane %v626_v6, 6  ;;  %v1072_v23 = vrot.slane %v599_v38, 1  ;;  %v7696_v56 = vrot.slane %v6318_v8, 4  ;;  %v1268_v26 = vsel %vm1261_vm10, %v1259_v4, %v1054_v28  ;;  %v730_v47 = vpop.permute.xlu0 %729 }
 0x173   : > { %v7697_v2 = vrot.slane %v6155_v37, 1  ;;  %v7698_v35 = vunpack.i.h.bf16 %v6192_v63  ;;  %vm7699_vm0 = vcmask 769024   ;;  %v3930_v46 = vpack.c.bf16 %v6383_v31, %v1521_v24  ;;  %v669_v62 = vpop.permute.xlu1 %668 }
 0x174   : > { %v1497_v57 = vsel %vm1261_vm10, %v1489_v14, %v7696_v56  ;;  %v7700_v8 = vunpack.i.l.bf16 %v5578_v50  ;;  %vm7701_vm1 = vmmov %vm7699_vm0  ;;  %v1277_v4 = vsel %vm1270_vm12, %v1268_v26, %v1071_v15  ;;  %v7702_v37 = vunpack.i.h.bf16 %v6165_v51 }
 0x175   : > { %v1505_v54 = vsel %vm1270_vm12, %v1497_v57, %v1425_v13  ;;  %v1504_v53 = vsel %vm1270_vm12, %v1496_v58, %v7697_v2  ;;  %v650_v45 = vsel %vm7699_vm0, %v7698_v35, %v642_v36  ;;  %vm7703_vm13 = vcmask 752640  }
 0x176   : > { %v3926_v29 = vpack.c.bf16 %v1505_v54, %v1481_v20  ;;  %v3928_v12 = vpack.c.bf16 %v1504_v53, %v1480_v11  ;;  %v653_v52 = vsel %vm7701_vm1, %v642_v36, %v7700_v8  ;;  %v1105_v13 = vrot.slane %v650_v45, 3  ;;  %vm7705_vm15 = vmmov %vm7703_vm13  ;;  %v7707_v36 = vld [vmem:[#allocation23_spill] sm:$0xff]  ;;  %v757_v35 = vpop.permute.xlu0 %756 }
 0x177   : > { %v711_v28 = vsel %vm7703_vm13, %v7702_v37, %v703_v21  ;;  %v7704_v63 = vunpack.i.l.bf16 %v5544_v59  ;;  %v1106_v38 = vrot.slane %v653_v52, 3  ;;  %v7706_v50 = vrot.slane %v6353_v1, 5 }
 0x178   : > { %3927 = vmatprep.subr.bf16.mxu1 %v3926_v29  ;;  %v1122_v31 = vrot.slane %v711_v28, 5  ;;  %v1269_v14 = vsel %vm1261_vm10, %v1260_v18, %v1055_v17  ;;  %v7708_v51 = vunpack.i.h.bf16 %v6224_v49  ;;  %vm7709_vm3 = vcmask 760832  }
 0x179   : > { %v714_v6 = vsel %vm7705_vm15, %v703_v21, %v7704_v63  ;;  %v1242_v20 = vsel %vm1234_vm4, %v7707_v36, %v7706_v50  ;;  %3929 = vmatpush1.bf16.msra.mxu1 %v3928_v12  ;;  %v7710_v59 = vunpack.i.l.bf16 %v5598_v10  ;;  %vm7711_vm0 = vmmov %vm7709_vm3  ;;  %v7712_v21 = vunpack.i.h.bf16 %v6190_v16  ;;  %v784_v10 = vpop.permute.xlu1 %783 }
 0x17a   : > { %v1123_v24 = vrot.slane %v714_v6, 5  ;;  %v677_v11 = vsel %vm7709_vm3, %v7708_v51, %v669_v62  ;;  %vm7713_vm1 = vcmask 523264   ;;  %3932 = vmatprep.subr.msk.bf16.mxu1 %vm5885_vm2, %v3930_v46  ;;  %v1251_v57 = vsel %vm1243_vm5, %v1242_v20, %v1021_v55  ;;  %v7727_v6 = vld [vmem:[#allocation24_spill] sm:$0xff]  ;;  %v7733_v51 = vld [vmem:[#allocation25_spill] sm:$0xff] }
 0x17b   : > { %v687_v58 = vsel %vm7711_vm0, %v669_v62, %v7710_v59  ;;  %v738_v56 = vsel %vm7713_vm1, %v7712_v21, %v730_v47  ;;  %v1278_v26 = vsel %vm1270_vm12, %v1269_v14, %v1072_v23  ;;  %v1303_v17 = vsel %vm1234_vm4, %v677_v11, %v1122_v31  ;;  %vm7715_vm13 = vmmov %vm7713_vm1 }
 0x17c   : > { %v7714_v49 = vunpack.i.l.bf16 %v5600_v9  ;;  %v3936_v54 = vpack.c.bf16 %v1278_v26, %v1251_v57  ;;  %v1304_v2 = vsel %vm1234_vm4, %v687_v58, %v1123_v24  ;;  %v1139_v16 = vrot.slane %v738_v56, 2  ;;  %v7730_v24 = vld [vmem:[#allocation33_spill] sm:$0xff] }
 0x17d   : > { %v1286_v45 = vsel %vm1279_vm8, %v1071_v15, %v1088_v27  ;;  %v1287_v29 = vsel %vm1279_vm8, %v1072_v23, %v1089_v40  ;;  %v7716_v55 = vunpack.i.h.bf16 %v6222_v60  ;;  %vm7717_vm15 = vcmask 515072  }
 0x17e   : > { %v741_v18 = vsel %vm7715_vm13, %v730_v47, %v7714_v49  ;;  %v7718_v46 = vunpack.i.l.bf16 %v5627_v22  ;;  %vm7719_vm3 = vmmov %vm7717_vm15  ;;  %v1295_v8 = vsel %vm1288_vm11, %v1286_v45, %v1105_v13  ;;  %v7720_v52 = vpack.c.bf16 %v6130_v19, %v6290_v42  ;;  %v838_v42 = vpop.permute.xlu1 %837 }
 0x17f   : > { %v1140_v53 = vrot.slane %v741_v18, 2  ;;  %v765_v12 = vsel %vm7717_vm15, %v7716_v55, %v757_v35  ;;  %v1311_v15 = vsel %vm1243_vm5, %v1303_v17, %v1139_v16  ;;  %v7721_v27 = vunpack.i.h.bf16 %v6245_v3  ;;  %v7737_v18 = vld [vmem:[#allocation28_spill] sm:$0xff] }
 0x180   : > { %v768_v9 = vsel %vm7719_vm3, %v757_v35, %v7718_v46  ;;  %3935 = vmatpush1.bf16.msk.msra.mxu1 %vm5885_vm2, %v7720_v52  ;;  %vm7722_vm0 = vcmask 506880   ;;  %v1156_v40 = vrot.slane %v765_v12, 7  ;;  %v7723_v22 = vunpack.i.l.bf16 %v5655_v43  ;;  %v811_v43 = vpop.permute.xlu0 %810 }
 0x181   : > { %v792_v60 = vsel %vm7722_vm0, %v7721_v27, %v784_v10  ;;  %3937 = vmatprep.subr.bf16.mxu1 %v3936_v54  ;;  %vm7724_vm1 = vmmov %vm7722_vm0  ;;  %v1157_v62 = vrot.slane %v768_v9, 7  ;;  %v1296_v13 = vsel %vm1288_vm11, %v1287_v29, %v1106_v38  ;;  %v1312_v19 = vsel %vm1243_vm5, %v1304_v2, %v1140_v53  ;;  %v7741_v29 = vld [vmem:[#allocation26_spill] sm:$0xff] }
 0x182   : > { %v795_v23 = vsel %vm7724_vm1, %v784_v10, %v7723_v22  ;;  %v3938_v37 = vpack.c.bf16 %v1277_v4, %v6408_v32  ;;  %v3940_v28 = vpack.c.bf16 %v1312_v19, %v1296_v13  ;;  %v7725_v63 = vunpack.i.h.bf16 %v6267_v33  ;;  %v953_v57 = vpop.permute.xlu1 %952  ;;  %v7746_v19 = vld [vmem:[#allocation30_spill] sm:$0xff] }
 0x183   : > { %vm7726_vm13 = vcmask 490496   ;;  %v7728_v47 = vunpack.i.l.bf16 %v7727_v6  ;;  %3695 = vmatmul.mubr.msk.f32.vlgmr.msra.gmra.mrb[4].mxu1 %vm1531_vm7, %v7730_v24  ;;  %v1173_v50 = vrot.slane %v792_v60, 4  ;;  %v7731_v38 = vunpack.i.h.bf16 %v6243_v39 }
 0x184   : > { %v846_v3 = vsel %vm7726_vm13, %v7725_v63, %v838_v42  ;;  %vm7729_vm15 = vmmov %vm7726_vm13  ;;  %vm7732_vm3 = vcmask 498688   ;;  %v3942_v14 = vpack.c.bf16 %v1311_v15, %v1295_v8  ;;  %3939 = vmatpush1.bf16.msra.mxu1 %v3938_v37  ;;  %v1174_v32 = vrot.slane %v795_v23, 4  ;;  %1828 = vmatprep.mubr.f32.mxu1 %v7601_v7  ;;  %v865_v26 = vpop.permute.xlu0 %864 }
 0x185   : > { %v849_v31 = vsel %vm7729_vm15, %v838_v42, %v7728_v47  ;;  %v819_v20 = vsel %vm7732_vm3, %v7731_v38, %v811_v43  ;;  %v1319_v33 = vsel %vm1252_vm6, %v1139_v16, %v1156_v40  ;;  %v1320_v4 = vsel %vm1252_vm6, %v1140_v53, %v1157_v62  ;;  %vm7735_vm0 = vmmov %vm7732_vm3  ;;  %3941 = vmatprep.subr.bf16.mxu1 %v3940_v28  ;;  %v4965_v53 = vld [vmem:[%s5271_s21] sm:$0x77]  ;;  %s5087_s21 = smov 112  }
 0x186   : > { %v7734_v11 = vunpack.i.l.bf16 %v7733_v51  ;;  %v1207_v58 = vrot.slane %v846_v3, 6  ;;  %v1208_v21 = vrot.slane %v849_v31, 6  ;;  %v1190_v39 = vrot.slane %v819_v20, 1  ;;  %v926_v15 = vpop.permute.xlu1 %925  ;;  %v7751_v3 = vld [vmem:[#allocation31_spill] sm:$0xff] }
 0x187   : > { %v7736_v17 = vunpack.i.h.bf16 %v6294_v48  ;;  %v7738_v10 = vunpack.i.l.bf16 %v7737_v18  ;;  %v7739_v2 = vunpack.i.h.bf16 %v6265_v30  ;;  %vm7740_vm1 = vcmask 261120  }
 0x188   : > { %v822_v59 = vsel %vm7735_vm0, %v811_v43, %v7734_v11  ;;  %v1411_v35 = vrot.slane %v4965_v53, 4  ;;  %v1327_v45 = vsel %vm1261_vm10, %v1319_v33, %v1173_v50  ;;  %3943 = vmatpush1.bf16.msra.mxu1 %v3942_v14  ;;  %v7742_v55 = vunpack.i.l.bf16 %v7741_v29  ;;  %vm7743_vm13 = vmmov %vm7740_vm1  ;;  %v980_v22 = vpop.permute.xlu0 %979  ;;  %v7761_v53 = vld [vmem:[#allocation22_spill] sm:$0xff]  ;;  %v1975_v29 = vld [vmem:[#allocation2 + $0x8] sm:$0xff] }
 0x189   : > { %v1191_v56 = vrot.slane %v822_v59, 1  ;;  %v961_v49 = vsel %vm954_vm14, %v7736_v17, %v953_v57  ;;  %v964_v54 = vsel %vm954_vm14, %v953_v57, %v7738_v10  ;;  %v873_v16 = vsel %vm7740_vm1, %v7739_v2, %v865_v26 }
 0x18a   : > { %v876_v12 = vsel %vm7743_vm13, %v865_v26, %v7742_v55  ;;  %v1224_v48 = vrot.slane %v873_v16, 3  ;;  %v1328_v46 = vsel %vm1261_vm10, %v1320_v4, %v1174_v32  ;;  %v1335_v9 = vsel %vm1270_vm12, %v1327_v45, %v1190_v39  ;;  %v7758_v26 = vld [vmem:[#allocation19_spill] sm:$0xff]  ;;  %v7760_v16 = vld [vmem:[#allocation20_spill] sm:$0xff]  ;;  %v1977_v55 = vld [vmem:[#allocation2 + $0x18] sm:$0xff] }
 0x18b   : > { %v1343_v8 = vsel %vm1279_vm8, %v1190_v39, %v1207_v58  ;;  %v1344_v30 = vsel %vm1279_vm8, %v1191_v56, %v1208_v21  ;;  %v1225_v52 = vrot.slane %v876_v12, 3  ;;  %v1377_v27 = vrot.slane %v961_v49, 2  ;;  %v7756_v21 = vld [vmem:[#allocation32_spill] sm:$0xff]  ;;  %v1974_v12 = vld [vmem:[#allocation2] sm:$0xff] }
 0x18c   : > { %v1378_v60 = vrot.slane %v964_v54, 2  ;;  %v1351_v40 = vsel %vm1288_vm11, %v1343_v8, %v1224_v48  ;;  %v1336_v23 = vsel %vm1270_vm12, %v1328_v46, %v1191_v56  ;;  %v7744_v62 = vunpack.i.h.bf16 %v6313_v5  ;;  %v892_v11 = vpop.permute.xlu0 %891  ;;  %v1976_v46 = vld [vmem:[#allocation2 + $0x10] sm:$0xff]  ;;  %v1979_v8 = vld [vmem:[#allocation2 + $0x28] sm:$0xff] }
 0x18d   : > { %vm7745_vm14 = vcmask 244736   ;;  %v7747_v42 = vunpack.i.l.bf16 %v7746_v19  ;;  %v7749_v28 = vunpack.i.h.bf16 %v6292_v61  ;;  %vm7750_vm3 = vcmask 228352  }
 0x18e   : > { %v934_v13 = vsel %vm7745_vm14, %v7744_v62, %v926_v15  ;;  %vm7748_vm15 = vmmov %vm7745_vm14  ;;  %v7752_v6 = vunpack.i.l.bf16 %v7751_v3  ;;  %v1352_v50 = vsel %vm1288_vm11, %v1344_v30, %v1225_v52  ;;  %v3946_v38 = vpack.c.bf16 %v1351_v40, %v1335_v9  ;;  %v1981_v30 = vld [vmem:[#allocation2 + $0x38] sm:$0xff]  ;;  %v1978_v52 = vld [vmem:[#allocation2 + $0x20] sm:$0xff]  ;;  %v6587_v3 = vpop.permute.xlu1 %1528 }
 0x18f   : > { %v937_v37 = vsel %vm7748_vm15, %v926_v15, %v7747_v42  ;;  %v988_v63 = vsel %vm7750_vm3, %v7749_v28, %v980_v22  ;;  %vm7753_vm0 = vmmov %vm7750_vm3  ;;  %v1426_v5 = vrot.slane %v6353_v1, 1  ;;  %v1442_v20 = vrot.slane %v6378_v34, 6  ;;  %v1989_v62 = vld [vmem:[#allocation2 + $0x78] sm:$0xff]  ;;  %v1986_v42 = vld [vmem:[#allocation2 + $0x60] sm:$0xff] }
 0x190   : > { %v991_v47 = vsel %vm7753_vm0, %v980_v22, %v7752_v6  ;;  %v1394_v31 = vrot.slane %v988_v63, 7  ;;  %v1458_v14 = vrot.slane %v6402_v0, 3  ;;  %v3944_v32 = vpack.c.bf16 %v1352_v50, %v1336_v23  ;;  %v1982_v22 = vld [vmem:[#allocation2 + $0x40] sm:$0xff]  ;;  %v1984_v23 = vld [vmem:[#allocation2 + $0x50] sm:$0xff]  ;;  %v1991_v28 = vld [vmem:[#allocation2 + $0x88] sm:$0xff] }
 0x191   : > { %v1395_v43 = vrot.slane %v991_v47, 7  ;;  %v1360_v33 = vrot.slane %v934_v13, 5  ;;  %v1361_v61 = vrot.slane %v937_v37, 5  ;;  %v7754_v58 = vunpack.i.h.bf16 %v6348_v41  ;;  %v1988_v37 = vld [vmem:[#allocation2 + $0x70] sm:$0xff]  ;;  %v1993_v63 = vld [vmem:[#allocation2 + $0x98] sm:$0xff] }
 0x192   : > { %v1490_v4 = vsel %vm1252_vm6, %v1377_v27, %v1394_v31  ;;  %3945 = vmatprep.subr.bf16.mxu1 %v3944_v32  ;;  %vm7755_vm1 = vcmask 252928   ;;  %v7759_v17 = vrot.slane %v7758_v26, 1  ;;  %v1514_v54 = vsel %vm1279_vm8, %v1426_v5, %v1442_v20  ;;  %v1990_v31 = vld [vmem:[#allocation2 + $0x80] sm:$0xff]  ;;  %v1995_v20 = vld [vmem:[#allocation2 + $0xa8] sm:$0xff] }
 0x193   : > { %v1491_v51 = vsel %vm1252_vm6, %v1378_v60, %v1395_v43  ;;  %v1498_v59 = vsel %vm1261_vm10, %v1490_v4, %v7707_v36  ;;  %v900_v1 = vsel %vm7755_vm1, %v7754_v58, %v892_v11  ;;  %vm7757_vm13 = vmmov %vm7755_vm1  ;;  %3947 = vmatpush1.bf16.msra.mxu1 %v3946_v38  ;;  %v1522_v2 = vsel %vm1288_vm11, %v1514_v54, %v1458_v14  ;;  %v1992_v43 = vld [vmem:[#allocation2 + $0x90] sm:$0xff]  ;;  %v1997_v14 = vld [vmem:[#allocation2 + $0xb8] sm:$0xff] }
 0x194   : > { %v910_v34 = vsel %vm7757_vm13, %v892_v11, %v7756_v21  ;;  %v1499_v0 = vsel %vm1261_vm10, %v1491_v51, %v1411_v35  ;;  %v1474_v39 = vsel %vm1234_vm4, %v900_v1, %v1360_v33  ;;  %v1506_v57 = vsel %vm1270_vm12, %v1498_v59, %v1426_v5  ;;  %v1994_v4 = vld [vmem:[#allocation2 + $0xa0] sm:$0xff]  ;;  %v1996_v51 = vld [vmem:[#allocation2 + $0xb0] sm:$0xff]  ;;  %v1999_v11 = vld [vmem:[#allocation2 + $0xc8] sm:$0xff] }
 0x195   : > { %v1475_v56 = vsel %vm1234_vm4, %v910_v34, %v1361_v61  ;;  %v1507_v36 = vsel %vm1270_vm12, %v1499_v0, %v7759_v17  ;;  %v1482_v41 = vsel %vm1243_vm5, %v1474_v39, %v1377_v27  ;;  %v7762_v35 = vpack.c.bf16 %v7760_v16, %v7761_v53  ;;  %v1980_v27 = vld [vmem:[#allocation2 + $0x30] sm:$0xff]  ;;  %v2001_v59 = vld [vmem:[#allocation2 + $0xd8] sm:$0xff]  ;;  %v1998_v21 = vld [vmem:[#allocation2 + $0xc0] sm:$0xff] }
 0x196   : > { %v1483_v49 = vsel %vm1243_vm5, %v1475_v56, %v1378_v60  ;;  %v3950_v18 = vpack.c.bf16 %v1506_v57, %v1482_v41  ;;  %v3955_v45 = vpack.c.bf16 %v6388_v25, %v1522_v2  ;;  %v3958_v48 = vpack.c.bf16 %v1977_v55, %v1975_v29  ;;  %v1983_v25 = vld [vmem:[#allocation2 + $0x48] sm:$0xff]  ;;  %v1985_v60 = vld [vmem:[#allocation2 + $0x58] sm:$0xff]  ;;  %v2000_v34 = vld [vmem:[#allocation2 + $0xd0] sm:$0xff] }
 0x197   : > { %v3948_v10 = vpack.c.bf16 %v1507_v36, %v1483_v49  ;;  %v3960_v9 = vpack.c.bf16 %v1976_v46, %v1974_v12  ;;  %v3962_v15 = vpack.c.bf16 %v1981_v30, %v1979_v8  ;;  %v3964_v44 = vpack.c.bf16 %v1980_v27, %v1978_v52  ;;  %v2003_v0 = vld [vmem:[#allocation2 + $0xe8] sm:$0xff]  ;;  %v2005_v39 = vld [vmem:[#allocation2 + $0xf8] sm:$0xff]  ;;  %v2002_v26 = vld [vmem:[#allocation2 + $0xe0] sm:$0xff] }
 0x198   : > { %3959 = vmatprep.subr.bf16.mxu0 %v3958_v48  ;;  %v3966_v40 = vpack.c.bf16 %v1985_v60, %v1983_v25  ;;  %v3968_v13 = vpack.c.bf16 %v1984_v23, %v1982_v22  ;;  %v3972_v6 = vpack.c.bf16 %v1988_v37, %v1986_v42  ;;  %v3974_v47 = vpack.c.bf16 %v1993_v63, %v1991_v28  ;;  %v2004_v17 = vld [vmem:[#allocation2 + $0xf0] sm:$0xff]  ;;  %v2007_v36 = vld [vmem:[#allocation2 + $0x108] sm:$0xff]  ;;  %v2009_v41 = vld [vmem:[#allocation2 + $0x118] sm:$0xff] }
 0x199   : > { %3949 = vmatprep.subr.bf16.mxu1 %v3948_v10  ;;  %3961 = vmatpush1.bf16.msra.mxu0 %v3960_v9  ;;  %v3976_v32 = vpack.c.bf16 %v1992_v43, %v1990_v31  ;;  %v3978_v61 = vpack.c.bf16 %v1997_v14, %v1995_v20  ;;  %v3980_v58 = vpack.c.bf16 %v1996_v51, %v1994_v4  ;;  %v2006_v10 = vld [vmem:[#allocation2 + $0x100] sm:$0xff]  ;;  %v2008_v54 = vld [vmem:[#allocation2 + $0x110] sm:$0xff]  ;;  %v2011_v2 = vld [vmem:[#allocation2 + $0x128] sm:$0xff]  ;;  %vm7765_vm6 = vcmask 785408  }
 0x19a   : > { %3951 = vmatpush1.bf16.msra.mxu1 %v3950_v18  ;;  %3963 = vmatprep.subr.bf16.mxu0 %v3962_v15  ;;  %v3982_v1 = vpack.c.bf16 %v2001_v59, %v1999_v11  ;;  %v3984_v56 = vpack.c.bf16 %v2000_v34, %v1998_v21  ;;  %v3986_v57 = vpack.c.bf16 %v2005_v39, %v2003_v0  ;;  %v2013_v16 = vld [vmem:[#allocation2 + $0x138] sm:$0xff]  ;;  %v2012_v29 = vld [vmem:[#allocation2 + $0x130] sm:$0xff]  ;;  %v2015_v55 = vld [vmem:[#allocation2 + $0x148] sm:$0xff] }
 0x19b   : > { %3954 = vmatprep.subr.msk.bf16.mxu1 %vm5885_vm2, %v7762_v35  ;;  %v3988_v49 = vpack.c.bf16 %v2004_v17, %v2002_v26  ;;  %v3990_v18 = vpack.c.bf16 %v2009_v41, %v2007_v36  ;;  %v3992_v53 = vpack.c.bf16 %v2008_v54, %v2006_v10  ;;  %v3994_v35 = vpack.c.bf16 %v2013_v16, %v2011_v2  ;;  %v2017_v12 = vld [vmem:[#allocation2 + $0x158] sm:$0xff]  ;;  %v2014_v9 = vld [vmem:[#allocation2 + $0x140] sm:$0xff]  ;;  %v2016_v8 = vld [vmem:[#allocation2 + $0x150] sm:$0xff] }
 0x19c   : > { %v3998_v46 = vpack.c.bf16 %v2017_v12, %v2015_v55  ;;  %v2019_v30 = vld [vmem:[#allocation2 + $0x168] sm:$0xff]  ;;  %v2021_v52 = vld [vmem:[#allocation2 + $0x178] sm:$0xff]  ;;  %v4000_v15 = vpack.c.bf16 %v2016_v8, %v2014_v9  ;;  %v2018_v25 = vld [vmem:[#allocation2 + $0x160] sm:$0xff] }
 0x19d   : > { %3965 = vmatpush1.bf16.msra.mxu0 %v3964_v44  ;;  %v4002_v27 = vpack.c.bf16 %v2021_v52, %v2019_v30  ;;  %v2020_v60 = vld [vmem:[#allocation2 + $0x170] sm:$0xff]  ;;  %v2023_v44 = vld [vmem:[#allocation2 + $0x188] sm:$0xff]  ;;  %v2029_v42 = vld [vmem:[#allocation2 + $0x1b8] sm:$0xff] }
 0x19e   : > { %3957 = vmatpush1.bf16.msk.msra.mxu1 %vm5885_vm2, %v3955_v45  ;;  %3967 = vmatprep.subr.bf16.mxu0 %v3966_v40  ;;  %v2010_v45 = vld [vmem:[#allocation2 + $0x120] sm:$0xff]  ;;  %v2025_v40 = vld [vmem:[#allocation2 + $0x198] sm:$0xff]  ;;  %v4004_v22 = vpack.c.bf16 %v2020_v60, %v2018_v25  ;;  %v2028_v63 = vld [vmem:[#allocation2 + $0x1b0] sm:$0xff]  ;;  %vm7763_vm2 = vcmask 1039360  }
 0x19f   : > { %v3996_v48 = vpack.c.bf16 %v2012_v29, %v2010_v45  ;;  %v4006_v23 = vpack.c.bf16 %v2025_v40, %v2023_v44  ;;  %v2026_v37 = vld [vmem:[#allocation2 + $0x1a0] sm:$0xff]  ;;  %v2031_v43 = vld [vmem:[#allocation2 + $0x1c8] sm:$0xff]  ;;  %v2037_v59 = vld [vmem:[#allocation2 + $0x1f8] sm:$0xff] }
 0x1a0   : > { %v2036_v21 = vld [vmem:[#allocation2 + $0x1f0] sm:$0xff]  ;;  %v2039_v39 = vld [vmem:[#allocation2 + $0x208] sm:$0xff]  ;;  %vm7764_vm4 = vmmov %vm7763_vm2 }
 0x1a1   : > { %3698 = vmatmul.mubr.msk.f32.vlgmr.msra.gmra.mrb[6].mxu1 %vm1531_vm7, %v7730_v24  ;;  %v1987_v24 = vld [vmem:[#allocation2 + $0x68] sm:$0xff]  ;;  %3969 = vmatpush1.bf16.msra.mxu0 %v3968_v13  ;;  %vm7766_vm11 = vmmov %vm7765_vm6 }
 0x1a2   : > { %v3970_v19 = vpack.c.bf16 %v1989_v62, %v1987_v24  ;;  %v2022_v24 = vld [vmem:[#allocation2 + $0x180] sm:$0xff]  ;;  %v2024_v62 = vld [vmem:[#allocation2 + $0x190] sm:$0xff]  ;;  %vm7767_vm12 = vmmov %vm7763_vm2 }
 0x1a3   : > { %v4008_v13 = vpack.c.bf16 %v2024_v62, %v2022_v24  ;;  %vm7768_vm14 = vmmov %vm7763_vm2 }
 0x1a4   : > { %3971 = vmatprep.subr.bf16.mxu0 %v3970_v19  ;;  %v2027_v19 = vld [vmem:[#allocation2 + $0x1a8] sm:$0xff]  ;;  %vm7769_vm15 = vmmov %vm7765_vm6 }
 0x1a5   : > { %3973 = vmatpush1.bf16.msra.mxu0 %v3972_v6  ;;  %v4010_v28 = vpack.c.bf16 %v2029_v42, %v2027_v19  ;;  %v4012_v6 = vpack.c.bf16 %v2028_v63, %v2026_v37  ;;  %v2038_v19 = vld [vmem:[#allocation2 + $0x200] sm:$0xff]  ;;  %v2040_v42 = vld [vmem:[#allocation2 + $0x210] sm:$0xff]  ;;  %v2043_v63 = vld [vmem:[#allocation2 + $0x228] sm:$0xff] }
 0x1a6   : > { %3975 = vmatprep.subr.bf16.mxu0 %v3974_v47  ;;  %vm7770_vm3 = vmmov %vm7765_vm6 }
 0x1a7   : > { %vm7771_vm0 = vmmov %vm7763_vm2 }
 0x1a8   : > { %vm7772_vm1 = vmmov %vm7771_vm0 }
 0x1a9   : > { %3977 = vmatpush1.bf16.msra.mxu0 %v3976_v32  ;;  %vm7773_vm13 = vmmov %vm7771_vm0 }
 0x1aa   : > { %3979 = vmatprep.subr.bf16.mxu0 %v3978_v61  ;;  %v2032_v61 = vld [vmem:[#allocation2 + $0x1d0] sm:$0xff] }
 0x1ad   : > { %3981 = vmatpush1.bf16.msra.mxu0 %v3980_v58  ;;  %v2034_v58 = vld [vmem:[#allocation2 + $0x1e0] sm:$0xff] }
 0x1ae   : > { %3983 = vmatprep.subr.bf16.mxu0 %v3982_v1  ;;  %v4020_v0 = vpack.c.bf16 %v2036_v21, %v2034_v58  ;;  %v2046_v58 = vld [vmem:[#allocation2 + $0x240] sm:$0xff]  ;;  %v2051_v21 = vld [vmem:[#allocation2 + $0x268] sm:$0xff] }
 0x1b1   : > { %3985 = vmatpush1.bf16.msra.mxu0 %v3984_v56  ;;  %v2041_v56 = vld [vmem:[#allocation2 + $0x218] sm:$0xff] }
 0x1b2   : > { %3987 = vmatprep.subr.bf16.mxu0 %v3986_v57  ;;  %v4022_v57 = vpack.c.bf16 %v2041_v56, %v2039_v39  ;;  %v2050_v39 = vld [vmem:[#allocation2 + $0x260] sm:$0xff]  ;;  %v2052_v56 = vld [vmem:[#allocation2 + $0x270] sm:$0xff] }
 0x1b5   : > { %3989 = vmatpush1.bf16.msra.mxu0 %v3988_v49 }
 0x1b6   : > { %3991 = vmatprep.subr.bf16.mxu0 %v3990_v18 }
 0x1b9   : > { %3993 = vmatpush1.bf16.msra.mxu0 %v3992_v53 }
 0x1ba   : > { %3995 = vmatprep.subr.bf16.mxu0 %v3994_v35 }
 0x1bd   : > { %3997 = vmatpush1.bf16.msra.mxu0 %v3996_v48 }
 0x1be   : > { %3999 = vmatprep.subr.bf16.mxu0 %v3998_v46 }
 0x1c1   : > { %4001 = vmatpush1.bf16.msra.mxu0 %v4000_v15 }
 0x1c2   : > { %4003 = vmatprep.subr.bf16.mxu0 %v4002_v27 }
 0x1c5   : > { %4005 = vmatpush1.bf16.msra.mxu0 %v4004_v22 }
 0x1c6   : > { %4007 = vmatprep.subr.bf16.mxu0 %v4006_v23 }
 0x1c9   : > { %4009 = vmatpush1.bf16.msra.mxu0 %v4008_v13 }
 0x1ca   : > { %4011 = vmatprep.subr.bf16.mxu0 %v4010_v28 }
 0x1cd   : > { %4013 = vmatpush1.bf16.msra.mxu0 %v4012_v6  ;;  %v2045_v6 = vld [vmem:[#allocation2 + $0x238] sm:$0xff] }
 0x1ed   : > { %v1617_v50 = vpop.f32.mrb[0].mxu1 }
 0x1ee   : > { %v6589_v38 = vpop.f32.mrb[1].mxu1  ;;  %v1618_v5 = vadd.f32 %v1617_v50, %v6587_v3  ;;  %v2033_v50 = vld [vmem:[#allocation2 + $0x1d8] sm:$0xff] }
 0x1ef   : > { %v6598_v47 = vadd.f32 %v6589_v38, %v6587_v3  ;;  %v4014_v32 = vpack.c.bf16 %v2033_v50, %v2031_v43  ;;  %v2035_v38 = vld [vmem:[#allocation2 + $0x1e8] sm:$0xff] }
 0x1f0   : > { %v6592_v33 = vmax.f32 %v1618_v5, 0.0  ;;  %v2030_v5 = vld [vmem:[#allocation2 + $0x1c0] sm:$0xff]  ;;  %v4018_v1 = vpack.c.bf16 %v2037_v59, %v2035_v38 }
 0x1f1   : > { %v4016_v4 = vpack.c.bf16 %v2032_v61, %v2030_v5  ;;  %v1836_v51 = vmax.f32 %v6598_v47, 0.0  ;;  %4015 = vmatprep.subr.bf16.mxu0 %v4014_v32  ;;  %v4024_v5 = vpack.c.bf16 %v2040_v42, %v2038_v19  ;;  %v4026_v47 = vpack.c.bf16 %v2045_v6, %v2043_v63  ;;  %v2042_v32 = vld [vmem:[#allocation2 + $0x220] sm:$0xff]  ;;  %v2044_v61 = vld [vmem:[#allocation2 + $0x230] sm:$0xff]  ;;  %v2067_v42 = vld [vmem:[#allocation2 + $0x2e8] sm:$0xff] }
 0x1f2   : > { %1851 = vrot.lane.b32.xlu1 %v6592_v33, %s7538_s27  ;;  %v4028_v38 = vpack.c.bf16 %v2044_v61, %v2042_v32  ;;  %v2064_v19 = vld [vmem:[#allocation2 + $0x2d0] sm:$0xff]  ;;  %v2066_v6 = vld [vmem:[#allocation2 + $0x2e0] sm:$0xff]  ;;  %v2075_v61 = vld [vmem:[#allocation2 + $0x328] sm:$0xff] }
 0x1f3   : > { %4017 = vmatpush1.bf16.msra.mxu0 %v4016_v4  ;;  %v2047_v4 = vld [vmem:[#allocation2 + $0x248] sm:$0xff]  ;;  %v2072_v32 = vld [vmem:[#allocation2 + $0x310] sm:$0xff] }
 0x1f4   : > { %4019 = vmatprep.subr.bf16.mxu0 %v4018_v1  ;;  %v2048_v1 = vld [vmem:[#allocation2 + $0x250] sm:$0xff] }
 0x1f7   : > { %4021 = vmatpush1.bf16.msra.mxu0 %v4020_v0  ;;  %v4032_v0 = vpack.c.bf16 %v2048_v1, %v2046_v58  ;;  %v2076_v58 = vld [vmem:[#allocation2 + $0x330] sm:$0xff] }
 0x1f8   : > { %4023 = vmatprep.subr.bf16.mxu0 %v4022_v57  ;;  %v2055_v57 = vld [vmem:[#allocation2 + $0x288] sm:$0xff] }
 0x21e   : > { %v1688_v31 = vpop.f32.mrb[2].mxu1 }
 0x21f   : > { %v6601_v20 = vadd.f32 %v1688_v31, %v6587_v3  ;;  %v1690_v14 = vpop.f32.mrb[3].mxu1 }
 0x220   : > { %v6617_v26 = vadd.f32 %v1690_v14, %v6587_v3 }
 0x221   : > { %v1837_v11 = vmax.f32 %v6601_v20, 0.0  ;;  %v2093_v20 = vld [vmem:[#allocation2 + $0x3b8] sm:$0xff] }
 0x222   : > { %v1838_v49 = vmax.f32 %v6617_v26, 0.0 }
 0x223   : > { %v4768_v34 = vpack.i.bf16 %v1837_v11, %v1836_v51 }
 0x225   : > { %4769 = vrot.lane.b32.xlu0 %v4768_v34, %s7538_s27  ;;  %4774 = vrot.lane.b32.xlu1 %v4768_v34, %s7540_s20 }
 0x229   : > { %4779 = vrot.lane.b32.xlu0 %v4768_v34, %s7539_s30  ;;  %1925 = vrot.lane.b32.xlu1 %v6592_v33, %s7539_s30  ;;  %v2053_v34 = vld [vmem:[#allocation2 + $0x278] sm:$0xff] }
 0x22d   : > { %1892 = vrot.lane.b32.xlu0 %v6592_v33, %s7540_s20 }
 0x256   : > { %v1759_v17 = vpop.f32.mrb[4].mxu1 }
 0x257   : > { %v6620_v36 = vadd.f32 %v1759_v17, %v6587_v3  ;;  %v1761_v41 = vpop.f32.mrb[5].mxu1  ;;  %v2057_v17 = vld [vmem:[#allocation2 + $0x298] sm:$0xff] }
 0x258   : > { %v6632_v54 = vadd.f32 %v1761_v41, %v6587_v3  ;;  %v4036_v41 = vpack.c.bf16 %v2052_v56, %v2050_v39 }
 0x259   : > { %v1839_v18 = vmax.f32 %v6620_v36, 0.0 }
 0x25a   : > { %v1840_v35 = vmax.f32 %v6632_v54, 0.0 }
 0x25b   : > { %v4783_v10 = vpack.i.bf16 %v1839_v18, %v1838_v49 }
 0x25d   : > { %4784 = vrot.lane.b32.xlu0 %v4783_v10, %s7538_s27  ;;  %4789 = vrot.lane.b32.xlu1 %v4783_v10, %s7540_s20 }
 0x261   : > { %4794 = vrot.lane.b32.xlu0 %v4783_v10, %s7539_s30  ;;  %v4038_v10 = vpack.c.bf16 %v2057_v17, %v2055_v57  ;;  %v2078_v57 = vld [vmem:[#allocation2 + $0x340] sm:$0xff] }
 0x274   : > { %v1830_v2 = vpop.f32.mrb[6].mxu1 }
 0x275   : > { %v6635_v16 = vadd.f32 %v1830_v2, %v6587_v3  ;;  %v1832_v53 = vpop.f32.mrb[7].mxu1  ;;  %v2054_v2 = vld [vmem:[#allocation2 + $0x280] sm:$0xff] }
 0x276   : > { %v1833_v29 = vadd.f32 %v1832_v53, %v6587_v3  ;;  %v6655_v3 = vpop.permute.xlu1 %1851  ;;  %v2056_v53 = vld [vmem:[#allocation2 + $0x290] sm:$0xff] }
 0x277   : > { %v1841_v45 = vmax.f32 %v6635_v16, 0.0  ;;  %v2119_v16 = vld [vmem:[#allocation2 + $0x488] sm:$0xff] }
 0x278   : > { %v6646_v12 = vmax.f32 %v1833_v29, 0.0  ;;  %v2059_v29 = vld [vmem:[#allocation2 + $0x2a8] sm:$0xff] }
 0x279   : > { %v4803_v55 = vpack.i.bf16 %v1841_v45, %v1840_v35 }
 0x27b   : > { %4804 = vrot.lane.b32.xlu0 %v4803_v55, %s7540_s20  ;;  %4799 = vrot.lane.b32.xlu1 %v4803_v55, %s7538_s27 }
 0x27f   : > { %1865 = vrot.lane.b32.xlu0 %v6646_v12, %s7538_s27  ;;  %4809 = vrot.lane.b32.xlu1 %v4803_v55, %s7539_s30  ;;  %v2061_v55 = vld [vmem:[#allocation2 + $0x2b8] sm:$0xff] }
 0x283   : > { %1939 = vrot.lane.b32.xlu0 %v6646_v12, %s7539_s30  ;;  %1906 = vrot.lane.b32.xlu1 %v6646_v12, %s7540_s20 }
 0x297   : > { %v6657_v48 = vpop.permute.xlu0 %4769  ;;  %v6659_v46 = vpop.permute.xlu1 %4774 }
 0x298   : > { %v4772_v9 = vunpack.i.h.bf16 %v6657_v48  ;;  %v4771_v8 = vunpack.i.l.bf16 %v6657_v48  ;;  %v4777_v30 = vunpack.i.h.bf16 %v6659_v46  ;;  %v4776_v52 = vunpack.i.l.bf16 %v6659_v46 }
 0x29a   : > { %v1868_v60 = vsel %vm7763_vm2, %v4771_v8, %v4772_v9  ;;  %v1867_v44 = vsel %vm7764_vm4, %v6655_v3, %v4771_v8  ;;  %v1909_v40 = vsel %vm7765_vm6, %v4776_v52, %v4777_v30  ;;  %v4040_v8 = vpack.c.bf16 %v2056_v53, %v2054_v2  ;;  %v2080_v2 = vld [vmem:[#allocation2 + $0x350] sm:$0xff]  ;;  %v2083_v53 = vld [vmem:[#allocation2 + $0x368] sm:$0xff]  ;;  %vm7774_vm2 = vmmov %vm7770_vm3 }
 0x29b   : > { %v6665_v15 = vpop.permute.xlu0 %4779  ;;  %v6680_v23 = vpop.permute.xlu1 %1925  ;;  %v1885_v62 = vmax.f32 %v1836_v51, %v1868_v60  ;;  %v1884_v50 = vmax.f32 %v6592_v33, %v1867_v44  ;;  %v2049_v51 = vld [vmem:[#allocation2 + $0x258] sm:$0xff]  ;;  %v4034_v33 = vpack.c.bf16 %v2053_v34, %v2051_v21  ;;  %v2060_v60 = vld [vmem:[#allocation2 + $0x2b0] sm:$0xff]  ;;  %v2063_v44 = vld [vmem:[#allocation2 + $0x2c8] sm:$0xff] }
 0x29c   : > { %v4782_v27 = vunpack.i.h.bf16 %v6665_v15  ;;  %v4781_v25 = vunpack.i.l.bf16 %v6665_v15  ;;  %v4030_v59 = vpack.c.bf16 %v2049_v51, %v2047_v4  ;;  %v2077_v4 = vld [vmem:[#allocation2 + $0x338] sm:$0xff]  ;;  %v2079_v34 = vld [vmem:[#allocation2 + $0x348] sm:$0xff]  ;;  %vm7775_vm4 = vmmov %vm7774_vm2 }
 0x29d   : > { %vm7776_vm6 = vmmov %vm7774_vm2 }
 0x29e   : > { %v1942_v22 = vsel %vm616_vm9, %v4781_v25, %v4782_v27  ;;  %v1941_v37 = vsel %vm616_vm9, %v6680_v23, %v4781_v25  ;;  %v2058_v25 = vld [vmem:[#allocation2 + $0x2a0] sm:$0xff] }
 0x29f   : > { %v6682_v24 = vpop.permute.xlu0 %1892  ;;  %v1959_v13 = vmax.f32 %v1909_v40, %v1942_v22  ;;  %v2065_v40 = vld [vmem:[#allocation2 + $0x2d8] sm:$0xff]  ;;  %v4044_v22 = vpack.c.bf16 %v2060_v60, %v2058_v25 }
 0x2a0   : > { %v1908_v28 = vsel %vm7766_vm11, %v6682_v24, %v4776_v52  ;;  %v4042_v52 = vpack.c.bf16 %v2061_v55, %v2059_v29  ;;  %v2085_v29 = vld [vmem:[#allocation2 + $0x378] sm:$0xff]  ;;  %vm7777_vm11 = vmmov %vm7774_vm2 }
 0x2a1   : > { %v1958_v31 = vmax.f32 %v1908_v28, %v1941_v37  ;;  %v1967_v43 = vmax.f32 %v1885_v62, %v1959_v13  ;;  %v4046_v62 = vpack.c.bf16 %v2065_v40, %v2063_v44  ;;  %v2062_v13 = vld [vmem:[#allocation2 + $0x2c0] sm:$0xff]  ;;  %v2069_v37 = vld [vmem:[#allocation2 + $0x2f8] sm:$0xff]  ;;  %v4064_v44 = vpack.c.bf16 %v2080_v2, %v2078_v57  ;;  %v2103_v57 = vld [vmem:[#allocation2 + $0x408] sm:$0xff] }
 0x2a2   : > { %v4048_v28 = vpack.c.bf16 %v2064_v19, %v2062_v13  ;;  %v4050_v63 = vpack.c.bf16 %v2069_v37, %v2067_v42  ;;  %v4066_v40 = vpack.c.bf16 %v2085_v29, %v2083_v53  ;;  %v2082_v13 = vld [vmem:[#allocation2 + $0x360] sm:$0xff]  ;;  %v2084_v19 = vld [vmem:[#allocation2 + $0x370] sm:$0xff] }
 0x2a3   : > { %2294 = vmatprep.mubr.f32.mxu0 %v1967_v43  ;;  %v1966_v14 = vmax.f32 %v1884_v50, %v1958_v31  ;;  %v2068_v31 = vld [vmem:[#allocation2 + $0x2f0] sm:$0xff]  ;;  %v2071_v43 = vld [vmem:[#allocation2 + $0x308] sm:$0xff]  ;;  %v2073_v50 = vld [vmem:[#allocation2 + $0x318] sm:$0xff] }
 0x2a5   : > { %2295 = vmatmul.mubr.f32.vlgmr.msra.gmra.mrb[0].mxu0 %v1966_v14  ;;  %v4054_v14 = vpack.c.bf16 %v2073_v50, %v2071_v43  ;;  %v2086_v43 = vld [vmem:[#allocation2 + $0x380] sm:$0xff]  ;;  %v2088_v50 = vld [vmem:[#allocation2 + $0x390] sm:$0xff] }
 0x2a6   : > { %4025 = vmatpush1.bf16.msra.mxu0 %v4024_v5  ;;  %v4052_v5 = vpack.c.bf16 %v2068_v31, %v2066_v6 }
 0x2a7   : > { %4027 = vmatprep.subr.bf16.mxu0 %v4026_v47  ;;  %v2070_v47 = vld [vmem:[#allocation2 + $0x300] sm:$0xff] }
 0x2a8   : > { %v4056_v51 = vpack.c.bf16 %v2072_v32, %v2070_v47  ;;  %v2095_v47 = vld [vmem:[#allocation2 + $0x3c8] sm:$0xff]  ;;  %v2097_v32 = vld [vmem:[#allocation2 + $0x3d8] sm:$0xff] }
 0x2aa   : > { %4029 = vmatpush1.bf16.msra.mxu0 %v4028_v38  ;;  %v4058_v38 = vpack.c.bf16 %v2077_v4, %v2075_v61  ;;  %v4078_v4 = vpack.c.bf16 %v2097_v32, %v2095_v47  ;;  %v2110_v32 = vld [vmem:[#allocation2 + $0x440] sm:$0xff] }
 0x2ab   : > { %4031 = vmatprep.subr.bf16.mxu0 %v4030_v59  ;;  %v2074_v59 = vld [vmem:[#allocation2 + $0x320] sm:$0xff] }
 0x2ac   : > { %v4060_v56 = vpack.c.bf16 %v2076_v58, %v2074_v59  ;;  %v2099_v59 = vld [vmem:[#allocation2 + $0x3e8] sm:$0xff]  ;;  %v2101_v58 = vld [vmem:[#allocation2 + $0x3f8] sm:$0xff] }
 0x2ae   : > { %4033 = vmatpush1.bf16.msra.mxu0 %v4032_v0  ;;  %v2081_v0 = vld [vmem:[#allocation2 + $0x358] sm:$0xff] }
 0x2af   : > { %4035 = vmatprep.subr.bf16.mxu0 %v4034_v33 }
 0x2b2   : > { %4037 = vmatpush1.bf16.msra.mxu0 %v4036_v41 }
 0x2b3   : > { %4039 = vmatprep.subr.bf16.mxu0 %v4038_v10  ;;  %v4062_v10 = vpack.c.bf16 %v2081_v0, %v2079_v34  ;;  %v4082_v0 = vpack.c.bf16 %v2101_v58, %v2099_v59  ;;  %v2114_v58 = vld [vmem:[#allocation2 + $0x460] sm:$0xff] }
 0x2b6   : > { %4041 = vmatpush1.bf16.msra.mxu0 %v4040_v8 }
 0x2b7   : > { %4043 = vmatprep.subr.bf16.mxu0 %v4042_v52 }
 0x2ba   : > { %4045 = vmatpush1.bf16.msra.mxu0 %v4044_v22 }
 0x2bb   : > { %4047 = vmatprep.subr.bf16.mxu0 %v4046_v62 }
 0x2be   : > { %4049 = vmatpush1.bf16.msra.mxu0 %v4048_v28  ;;  %v2087_v28 = vld [vmem:[#allocation2 + $0x388] sm:$0xff] }
 0x2bf   : > { %4051 = vmatprep.subr.bf16.mxu0 %v4050_v63  ;;  %v2089_v63 = vld [vmem:[#allocation2 + $0x398] sm:$0xff] }
 0x2c0   : > { %v4070_v31 = vpack.c.bf16 %v2089_v63, %v2087_v28  ;;  %v2106_v63 = vld [vmem:[#allocation2 + $0x420] sm:$0xff] }
 0x2c2   : > { %4053 = vmatpush1.bf16.msra.mxu0 %v4052_v5  ;;  %v2091_v5 = vld [vmem:[#allocation2 + $0x3a8] sm:$0xff] }
 0x2c3   : > { %4055 = vmatprep.subr.bf16.mxu0 %v4054_v14  ;;  %v4074_v26 = vpack.c.bf16 %v2093_v20, %v2091_v5  ;;  %v2092_v14 = vld [vmem:[#allocation2 + $0x3b0] sm:$0xff] }
 0x2c6   : > { %4057 = vmatpush1.bf16.msra.mxu0 %v4056_v51  ;;  %v2094_v51 = vld [vmem:[#allocation2 + $0x3c0] sm:$0xff] }
 0x2c7   : > { %4059 = vmatprep.subr.bf16.mxu0 %v4058_v38  ;;  %v2096_v38 = vld [vmem:[#allocation2 + $0x3d0] sm:$0xff] }
 0x2c8   : > { %v4080_v34 = vpack.c.bf16 %v2096_v38, %v2094_v51 }
 0x2ca   : > { %4061 = vmatpush1.bf16.msra.mxu0 %v4060_v56  ;;  %v2100_v56 = vld [vmem:[#allocation2 + $0x3f0] sm:$0xff] }
 0x2cb   : > { %4063 = vmatprep.subr.bf16.mxu0 %v4062_v10 }
 0x2ce   : > { %4065 = vmatpush1.bf16.msra.mxu0 %v4064_v44 }
 0x2cf   : > { %v6691_v1 = vpop.permute.xlu0 %4784  ;;  %v6693_v21 = vpop.permute.xlu1 %4789  ;;  %4067 = vmatprep.subr.bf16.mxu0 %v4066_v40 }
 0x2d0   : > { %v4787_v33 = vunpack.i.h.bf16 %v6691_v1  ;;  %v4786_v39 = vunpack.i.l.bf16 %v6691_v1  ;;  %v4792_v17 = vunpack.i.h.bf16 %v6693_v21  ;;  %v4791_v41 = vunpack.i.l.bf16 %v6693_v21  ;;  %v2113_v1 = vld [vmem:[#allocation2 + $0x458] sm:$0xff] }
 0x2d2   : > { %v1869_v8 = vsel %vm7767_vm12, %v4772_v9, %v4786_v39  ;;  %v1870_v52 = vsel %vm7768_vm14, %v4786_v39, %v4787_v33  ;;  %v1910_v22 = vsel %vm7769_vm15, %v4777_v30, %v4791_v41  ;;  %v1911_v48 = vsel %vm7770_vm3, %v4791_v41, %v4792_v17  ;;  %v2098_v39 = vld [vmem:[#allocation2 + $0x3e0] sm:$0xff]  ;;  %v2105_v41 = vld [vmem:[#allocation2 + $0x418] sm:$0xff]  ;;  %vm7778_vm12 = vmmov %vm7771_vm0 }
 0x2d3   : > { %v6699_v55 = vpop.permute.xlu0 %4794  ;;  %v1886_v46 = vmax.f32 %v1837_v11, %v1869_v8  ;;  %v1887_v30 = vmax.f32 %v1838_v49, %v1870_v52  ;;  %v4072_v11 = vpack.c.bf16 %v2088_v50, %v2086_v43  ;;  %v2090_v49 = vld [vmem:[#allocation2 + $0x3a0] sm:$0xff]  ;;  %v4084_v8 = vpack.c.bf16 %v2100_v56, %v2098_v39 }
 0x2d4   : > { %v4797_v25 = vunpack.i.h.bf16 %v6699_v55  ;;  %v4796_v60 = vunpack.i.l.bf16 %v6699_v55  ;;  %v4076_v61 = vpack.c.bf16 %v2092_v14, %v2090_v49  ;;  %v2102_v52 = vld [vmem:[#allocation2 + $0x400] sm:$0xff]  ;;  %v4086_v44 = vpack.c.bf16 %v2105_v41, %v2103_v57  ;;  %v2120_v57 = vld [vmem:[#allocation2 + $0x490] sm:$0xff]  ;;  %v2123_v41 = vld [vmem:[#allocation2 + $0x4a8] sm:$0xff] }
 0x2d5   : > { %v2118_v56 = vld [vmem:[#allocation2 + $0x480] sm:$0xff]  ;;  %vm2865_vm14 = vcmask 179200   ;;  %vm2553_vm15 = vcmask 916480   ;;  %vm2562_vm3 = vcmask 908288  }
 0x2d6   : > { %v1943_v9 = vsel %vm616_vm9, %v4782_v27, %v4796_v60  ;;  %v1944_v62 = vsel %vm616_vm9, %v4796_v60, %v4797_v25  ;;  %v4068_v27 = vpack.c.bf16 %v2084_v19, %v2082_v13  ;;  %v2104_v60 = vld [vmem:[#allocation2 + $0x410] sm:$0xff] }
 0x2d7   : > { %v1960_v42 = vmax.f32 %v1910_v22, %v1943_v9  ;;  %v1961_v37 = vmax.f32 %v1911_v48, %v1944_v62  ;;  %v2107_v48 = vld [vmem:[#allocation2 + $0x428] sm:$0xff]  ;;  %v2109_v9 = vld [vmem:[#allocation2 + $0x438] sm:$0xff] }
 0x2d8   : > { %4069 = vmatpush1.bf16.msra.mxu0 %v4068_v27  ;;  %v2108_v27 = vld [vmem:[#allocation2 + $0x430] sm:$0xff] }
 0x2d9   : > { %v1969_v15 = vmax.f32 %v1887_v30, %v1961_v37  ;;  %v6725_v6 = vmax.f32 %v1886_v46, %v1960_v42  ;;  %4071 = vmatprep.subr.bf16.mxu0 %v4070_v31  ;;  %v4088_v46 = vpack.c.bf16 %v2104_v60, %v2102_v52  ;;  %v2111_v31 = vld [vmem:[#allocation2 + $0x448] sm:$0xff]  ;;  %v4092_v36 = vpack.c.bf16 %v2108_v27, %v2106_v63  ;;  %v2129_v60 = vld [vmem:[#allocation2 + $0x4d8] sm:$0xff]  ;;  %v2134_v27 = vld [vmem:[#allocation2 + $0x500] sm:$0xff] }
 0x2da   : > { %v2127_v52 = vld [vmem:[#allocation2 + $0x4c8] sm:$0xff] }
 0x2db   : > { %2365 = vmatprep.mubr.f32.mxu0 %v1969_v15  ;;  %v4090_v15 = vpack.c.bf16 %v2109_v9, %v2107_v48  ;;  %v2128_v48 = vld [vmem:[#allocation2 + $0x4d0] sm:$0xff]  ;;  %v2131_v9 = vld [vmem:[#allocation2 + $0x4e8] sm:$0xff] }
 0x2dc   : > { %4073 = vmatpush1.bf16.msra.mxu0 %v4072_v11 }
 0x2dd   : > { %4075 = vmatprep.subr.bf16.mxu0 %v4074_v26 }
 0x2e0   : > { %4077 = vmatpush1.bf16.msra.mxu0 %v4076_v61  ;;  %v2112_v61 = vld [vmem:[#allocation2 + $0x450] sm:$0xff] }
 0x2e1   : > { %4079 = vmatprep.subr.bf16.mxu0 %v4078_v4  ;;  %v2117_v4 = vld [vmem:[#allocation2 + $0x478] sm:$0xff]  ;;  %v4096_v38 = vpack.c.bf16 %v2112_v61, %v2110_v32  ;;  %v2146_v32 = vld [vmem:[#allocation2 + $0x560] sm:$0xff]  ;;  %v2148_v61 = vld [vmem:[#allocation2 + $0x570] sm:$0xff] }
 0x2e4   : > { %4081 = vmatpush1.bf16.msra.mxu0 %v4080_v34  ;;  %v2116_v34 = vld [vmem:[#allocation2 + $0x470] sm:$0xff] }
 0x2e5   : > { %4083 = vmatprep.subr.bf16.mxu0 %v4082_v0  ;;  %v4100_v0 = vpack.c.bf16 %v2116_v34, %v2114_v58  ;;  %v2150_v58 = vld [vmem:[#allocation2 + $0x580] sm:$0xff]  ;;  %v2152_v34 = vld [vmem:[#allocation2 + $0x590] sm:$0xff] }
 0x2e8   : > { %4085 = vmatpush1.bf16.msra.mxu0 %v4084_v8  ;;  %v2124_v8 = vld [vmem:[#allocation2 + $0x4b0] sm:$0xff] }
 0x2e9   : > { %4087 = vmatprep.subr.bf16.mxu0 %v4086_v44 }
 0x2eb   : > { %2366 = vmatmul.mubr.f32.vlgmr.msra.gmra.mrb[0].mxu0 %v6725_v6 }
 0x2ec   : > { %4089 = vmatpush1.bf16.msra.mxu0 %v4088_v46 }
 0x2ed   : > { %v4805_v10 = vpop.permute.xlu0 %4804  ;;  %v4800_v2 = vpop.permute.xlu1 %4799  ;;  %4091 = vmatprep.subr.bf16.mxu0 %v4090_v15 }
 0x2ee   : > { %v4802_v53 = vunpack.i.h.bf16 %v4800_v2  ;;  %v4801_v29 = vunpack.i.l.bf16 %v4800_v2  ;;  %v4807_v40 = vunpack.i.h.bf16 %v4805_v10  ;;  %v4806_v22 = vunpack.i.l.bf16 %v4805_v10  ;;  %v2125_v10 = vld [vmem:[#allocation2 + $0x4b8] sm:$0xff] }
 0x2ef   : > { %v4104_v2 = vpack.c.bf16 %v2120_v57, %v2118_v56  ;;  %v2154_v56 = vld [vmem:[#allocation2 + $0x5a0] sm:$0xff]  ;;  %v2156_v57 = vld [vmem:[#allocation2 + $0x5b0] sm:$0xff] }
 0x2f0   : > { %v1871_v62 = vsel %vm7771_vm0, %v4787_v33, %v4801_v29  ;;  %v1872_v42 = vsel %vm7772_vm1, %v4801_v29, %v4802_v53  ;;  %v1912_v33 = vsel %vm7774_vm2, %v4792_v17, %v4806_v22  ;;  %v1913_v43 = vsel %vm7775_vm4, %v4806_v22, %v4807_v40  ;;  %4093 = vmatpush1.bf16.msra.mxu0 %v4092_v36  ;;  %v2122_v29 = vld [vmem:[#allocation2 + $0x4a0] sm:$0xff]  ;;  %v2144_v36 = vld [vmem:[#allocation2 + $0x550] sm:$0xff]  ;;  %vm7782_vm2 = vmmov %vm7778_vm12 }
 0x2f1   : > { %v6730_v13 = vpop.permute.xlu0 %1865  ;;  %v4810_v19 = vpop.permute.xlu1 %4809  ;;  %v1888_v20 = vmax.f32 %v1839_v18, %v1871_v62  ;;  %v1889_v21 = vmax.f32 %v1840_v35, %v1872_v42  ;;  %v4094_v18 = vpack.c.bf16 %v2113_v1, %v2111_v31  ;;  %v2115_v35 = vld [vmem:[#allocation2 + $0x468] sm:$0xff]  ;;  %v4108_v44 = vpack.c.bf16 %v2124_v8, %v2122_v29  ;;  %v2126_v22 = vld [vmem:[#allocation2 + $0x4c0] sm:$0xff]  ;;  %v2133_v62 = vld [vmem:[#allocation2 + $0x4f8] sm:$0xff] }
 0x2f2   : > { %v1873_v30 = vsel %vm7773_vm13, %v4802_v53, %v6730_v13  ;;  %v4812_v37 = vunpack.i.h.bf16 %v4810_v19  ;;  %v4811_v28 = vunpack.i.l.bf16 %v4810_v19  ;;  %v4098_v59 = vpack.c.bf16 %v2117_v4, %v2115_v35  ;;  %v2130_v42 = vld [vmem:[#allocation2 + $0x4e0] sm:$0xff]  ;;  %v2136_v31 = vld [vmem:[#allocation2 + $0x510] sm:$0xff]  ;;  %v2139_v1 = vld [vmem:[#allocation2 + $0x528] sm:$0xff] }
 0x2f3   : > { %v1890_v6 = vmax.f32 %v1841_v45, %v1873_v30  ;;  %4095 = vmatprep.subr.bf16.mxu0 %v4094_v18  ;;  %v2121_v45 = vld [vmem:[#allocation2 + $0x498] sm:$0xff]  ;;  %v4106_v53 = vpack.c.bf16 %v2125_v10, %v2123_v41  ;;  %v4112_v19 = vpack.c.bf16 %v2128_v48, %v2126_v22  ;;  %v4114_v46 = vpack.c.bf16 %v2133_v62, %v2131_v9  ;;  %v2132_v30 = vld [vmem:[#allocation2 + $0x4f0] sm:$0xff]  ;;  %v2147_v18 = vld [vmem:[#allocation2 + $0x568] sm:$0xff] }
 0x2f4   : > { %v1945_v50 = vsel %vm616_vm9, %v4797_v25, %v4811_v28  ;;  %v1946_v5 = vsel %vm616_vm9, %v4811_v28, %v4812_v37  ;;  %4097 = vmatpush1.bf16.msra.mxu0 %v4096_v38  ;;  %v4102_v39 = vpack.c.bf16 %v2121_v45, %v2119_v16  ;;  %v2137_v28 = vld [vmem:[#allocation2 + $0x518] sm:$0xff]  ;;  %v4116_v63 = vpack.c.bf16 %v2132_v30, %v2130_v42  ;;  %v2151_v35 = vld [vmem:[#allocation2 + $0x588] sm:$0xff]  ;;  %v2158_v29 = vld [vmem:[#allocation2 + $0x5c0] sm:$0xff] }
 0x2f5   : > { %v1962_v11 = vmax.f32 %v1912_v33, %v1945_v50  ;;  %v6746_v26 = vpop.permute.xlu0 %1939  ;;  %v6748_v49 = vpop.permute.xlu1 %1906  ;;  %v1963_v17 = vmax.f32 %v1913_v43, %v1946_v5  ;;  %4099 = vmatprep.subr.bf16.mxu0 %v4098_v59  ;;  %v2141_v33 = vld [vmem:[#allocation2 + $0x538] sm:$0xff]  ;;  %v4120_v43 = vpack.c.bf16 %v2136_v31, %v2134_v27  ;;  %v2138_v5 = vld [vmem:[#allocation2 + $0x520] sm:$0xff]  ;;  %v4132_v38 = vpack.c.bf16 %v2148_v61, %v2146_v32  ;;  %v2155_v16 = vld [vmem:[#allocation2 + $0x5a8] sm:$0xff] }
 0x2f6   : > { %v1947_v55 = vsel %vm616_vm9, %v4812_v37, %v6746_v26  ;;  %v1914_v25 = vsel %vm7776_vm6, %v4807_v40, %v6748_v49  ;;  %v4110_v40 = vpack.c.bf16 %v2129_v60, %v2127_v52  ;;  %v2135_v37 = vld [vmem:[#allocation2 + $0x508] sm:$0xff]  ;;  %v4122_v50 = vpack.c.bf16 %v2141_v33, %v2139_v1  ;;  %v2153_v4 = vld [vmem:[#allocation2 + $0x598] sm:$0xff]  ;;  %v2160_v8 = vld [vmem:[#allocation2 + $0x5d0] sm:$0xff] }
 0x2f7   : > { %v1964_v14 = vmax.f32 %v1914_v25, %v1947_v55  ;;  %v1971_v47 = vmax.f32 %v1889_v21, %v1963_v17  ;;  %v6758_v54 = vmax.f32 %v1888_v20, %v1962_v11  ;;  %v4118_v15 = vpack.c.bf16 %v2137_v28, %v2135_v37  ;;  %v2140_v20 = vld [vmem:[#allocation2 + $0x530] sm:$0xff]  ;;  %v2143_v11 = vld [vmem:[#allocation2 + $0x548] sm:$0xff]  ;;  %v2145_v21 = vld [vmem:[#allocation2 + $0x558] sm:$0xff] }
 0x2f8   : > { %4101 = vmatpush1.bf16.msra.mxu0 %v4100_v0  ;;  %v4124_v17 = vpack.c.bf16 %v2140_v20, %v2138_v5  ;;  %v4126_v55 = vpack.c.bf16 %v2145_v21, %v2143_v11  ;;  %v2142_v25 = vld [vmem:[#allocation2 + $0x540] sm:$0xff]  ;;  %v4134_v59 = vpack.c.bf16 %v2153_v4, %v2151_v35  ;;  %v2157_v45 = vld [vmem:[#allocation2 + $0x5b8] sm:$0xff]  ;;  %v4136_v0 = vpack.c.bf16 %v2152_v34, %v2150_v58  ;;  %v2159_v41 = vld [vmem:[#allocation2 + $0x5c8] sm:$0xff] }
 0x2f9   : > { %v6760_v51 = vmax.f32 %v1890_v6, %v1964_v14  ;;  %2436 = vmatprep.mubr.f32.mxu0 %v1971_v47  ;;  %4103 = vmatprep.subr.bf16.mxu0 %v4102_v39  ;;  %v2149_v6 = vld [vmem:[#allocation2 + $0x578] sm:$0xff]  ;;  %v4128_v14 = vpack.c.bf16 %v2144_v36, %v2142_v25  ;;  %v4138_v39 = vpack.c.bf16 %v2157_v45, %v2155_v16  ;;  %v2163_v52 = vld [vmem:[#allocation2 + $0x5e8] sm:$0xff]  ;;  %v2162_v22 = vld [vmem:[#allocation2 + $0x5e0] sm:$0xff]  ;;  %vm7779_vm0 = vcmask 1031168  }
 0x2fa   : > { %v4130_v47 = vpack.c.bf16 %v2149_v6, %v2147_v18  ;;  %v2161_v10 = vld [vmem:[#allocation2 + $0x5d8] sm:$0xff]  ;;  %v2164_v48 = vld [vmem:[#allocation2 + $0x5f0] sm:$0xff]  ;;  %v2167_v9 = vld [vmem:[#allocation2 + $0x608] sm:$0xff]  ;;  %v1883_v30 = vsel %vm7778_vm12, %v6730_v13, %v6655_v3  ;;  %vm2590_vm4 = vcmask 883712   ;;  %vm2571_vm6 = vcmask 900096  }
 0x2fb   : > { %v2165_v60 = vld [vmem:[#allocation2 + $0x5f8] sm:$0xff]  ;;  %v4148_v42 = vpack.c.bf16 %v2164_v48, %v2162_v22  ;;  %v2166_v28 = vld [vmem:[#allocation2 + $0x600] sm:$0xff]  ;;  %v2171_v27 = vld [vmem:[#allocation2 + $0x628] sm:$0xff]  ;;  %v1891_v1 = vmax.f32 %v6646_v12, %v1883_v30 }
 0x2fc   : > { %4105 = vmatpush1.bf16.msra.mxu0 %v4104_v2  ;;  %v4140_v2 = vpack.c.bf16 %v2156_v57, %v2154_v56  ;;  %v2169_v62 = vld [vmem:[#allocation2 + $0x618] sm:$0xff]  ;;  %v2174_v5 = vld [vmem:[#allocation2 + $0x640] sm:$0xff]  ;;  %v2176_v20 = vld [vmem:[#allocation2 + $0x650] sm:$0xff] }
 0x2fd   : > { %4107 = vmatprep.subr.bf16.mxu0 %v4106_v53  ;;  %v4142_v53 = vpack.c.bf16 %v2161_v10, %v2159_v41  ;;  %v4150_v37 = vpack.c.bf16 %v2169_v62, %v2167_v9  ;;  %v2173_v31 = vld [vmem:[#allocation2 + $0x638] sm:$0xff]  ;;  %v2179_v11 = vld [vmem:[#allocation2 + $0x668] sm:$0xff]  ;;  %v4160_v21 = vpack.c.bf16 %v2176_v20, %v2174_v5  ;;  %v2180_v25 = vld [vmem:[#allocation2 + $0x670] sm:$0xff] }
 0x2fe   : > { %v2181_v12 = vld [vmem:[#allocation2 + $0x678] sm:$0xff]  ;;  %v2183_v36 = vld [vmem:[#allocation2 + $0x688] sm:$0xff]  ;;  %vm7780_vm1 = vmmov %vm7779_vm0 }
 0x2ff   : > { %v2185_v18 = vld [vmem:[#allocation2 + $0x698] sm:$0xff]  ;;  %v2187_v32 = vld [vmem:[#allocation2 + $0x6a8] sm:$0xff]  ;;  %vm7781_vm13 = vmmov %vm7778_vm12 }
 0x300   : > { %4109 = vmatpush1.bf16.msra.mxu0 %v4108_v44  ;;  %v4144_v44 = vpack.c.bf16 %v2160_v8, %v2158_v29  ;;  %v2189_v61 = vld [vmem:[#allocation2 + $0x6b8] sm:$0xff]  ;;  %v2191_v58 = vld [vmem:[#allocation2 + $0x6c8] sm:$0xff] }
 0x301   : > { %4111 = vmatprep.subr.bf16.mxu0 %v4110_v40  ;;  %v4146_v40 = vpack.c.bf16 %v2165_v60, %v2163_v52  ;;  %v4170_v4 = vpack.c.bf16 %v2189_v61, %v2187_v32  ;;  %v2193_v34 = vld [vmem:[#allocation2 + $0x6d8] sm:$0xff]  ;;  %v2195_v56 = vld [vmem:[#allocation2 + $0x6e8] sm:$0xff] }
 0x302   : > { %v4174_v45 = vpack.c.bf16 %v2193_v34, %v2191_v58  ;;  %v2197_v57 = vld [vmem:[#allocation2 + $0x6f8] sm:$0xff]  ;;  %v2199_v29 = vld [vmem:[#allocation2 + $0x708] sm:$0xff] }
 0x303   : > { %v4178_v10 = vpack.c.bf16 %v2197_v57, %v2195_v56  ;;  %v2201_v8 = vld [vmem:[#allocation2 + $0x718] sm:$0xff]  ;;  %v2203_v22 = vld [vmem:[#allocation2 + $0x728] sm:$0xff] }
 0x304   : > { %4113 = vmatpush1.bf16.msra.mxu0 %v4112_v19  ;;  %v1957_v19 = vsel %vm616_vm9, %v6746_v26, %v6680_v23  ;;  %v4154_v26 = vpack.c.bf16 %v2173_v31, %v2171_v27  ;;  %v4182_v60 = vpack.c.bf16 %v2201_v8, %v2199_v29  ;;  %v2205_v48 = vld [vmem:[#allocation2 + $0x738] sm:$0xff]  ;;  %v2211_v27 = vld [vmem:[#allocation2 + $0x768] sm:$0xff] }
 0x305   : > { %4115 = vmatprep.subr.bf16.mxu0 %v4114_v46  ;;  %v1924_v46 = vsel %vm7777_vm11, %v6748_v49, %v6682_v24  ;;  %v2170_v24 = vld [vmem:[#allocation2 + $0x620] sm:$0xff]  ;;  %v2172_v49 = vld [vmem:[#allocation2 + $0x630] sm:$0xff]  ;;  %v4186_v62 = vpack.c.bf16 %v2205_v48, %v2203_v22  ;;  %v2209_v30 = vld [vmem:[#allocation2 + $0x758] sm:$0xff]  ;;  %vm7783_vm11 = vcmask 1022976  }
 0x306   : > { %v4156_v3 = vpack.c.bf16 %v2172_v49, %v2170_v24  ;;  %v2213_v31 = vld [vmem:[#allocation2 + $0x778] sm:$0xff]  ;;  %v2212_v24 = vld [vmem:[#allocation2 + $0x770] sm:$0xff]  ;;  %v2215_v49 = vld [vmem:[#allocation2 + $0x788] sm:$0xff] }
 0x307   : > { %v2219_v5 = vld [vmem:[#allocation2 + $0x7a8] sm:$0xff]  ;;  %v2221_v20 = vld [vmem:[#allocation2 + $0x7b8] sm:$0xff]  ;;  %vm7784_vm12 = vmmov %vm7783_vm11 }
 0x308   : > { %4117 = vmatpush1.bf16.msra.mxu0 %v4116_v63  ;;  %v2168_v63 = vld [vmem:[#allocation2 + $0x610] sm:$0xff] }
 0x309   : > { %4119 = vmatprep.subr.bf16.mxu0 %v4118_v15  ;;  %v1965_v15 = vmax.f32 %v1924_v46, %v1957_v19  ;;  %v4152_v23 = vpack.c.bf16 %v2168_v63, %v2166_v28  ;;  %v2202_v19 = vld [vmem:[#allocation2 + $0x720] sm:$0xff]  ;;  %v2204_v46 = vld [vmem:[#allocation2 + $0x730] sm:$0xff] }
 0x30a   : > { %v2206_v63 = vld [vmem:[#allocation2 + $0x740] sm:$0xff] }
 0x30b   : > { %v1973_v33 = vmax.f32 %v1891_v1, %v1965_v15  ;;  %v2208_v15 = vld [vmem:[#allocation2 + $0x750] sm:$0xff] }
 0x30c   : > { %4121 = vmatpush1.bf16.msra.mxu0 %v4120_v43  ;;  %v2175_v43 = vld [vmem:[#allocation2 + $0x648] sm:$0xff]  ;;  %v4192_v1 = vpack.c.bf16 %v2208_v15, %v2206_v63 }
 0x30d   : > { %4123 = vmatprep.subr.bf16.mxu0 %v4122_v50  ;;  %v2177_v50 = vld [vmem:[#allocation2 + $0x658] sm:$0xff] }
 0x30e   : > { %v4158_v13 = vpack.c.bf16 %v2177_v50, %v2175_v43 }
 0x310   : > { %4125 = vmatpush1.bf16.msra.mxu0 %v4124_v17  ;;  %v4162_v17 = vpack.c.bf16 %v2181_v12, %v2179_v11  ;;  %v4202_v12 = vpack.c.bf16 %v2221_v20, %v2219_v5 }
 0x311   : > { %4127 = vmatprep.subr.bf16.mxu0 %v4126_v55  ;;  %v2178_v55 = vld [vmem:[#allocation2 + $0x660] sm:$0xff] }
 0x312   : > { %v4164_v6 = vpack.c.bf16 %v2180_v25, %v2178_v55  ;;  %v2223_v55 = vld [vmem:[#allocation2 + $0x7c8] sm:$0xff]  ;;  %v2225_v25 = vld [vmem:[#allocation2 + $0x7d8] sm:$0xff] }
 0x314   : > { %4129 = vmatpush1.bf16.msra.mxu0 %v4128_v14  ;;  %v2182_v14 = vld [vmem:[#allocation2 + $0x680] sm:$0xff] }
 0x315   : > { %4131 = vmatprep.subr.bf16.mxu0 %v4130_v47  ;;  %v2184_v47 = vld [vmem:[#allocation2 + $0x690] sm:$0xff] }
 0x316   : > { %v4168_v35 = vpack.c.bf16 %v2184_v47, %v2182_v14  ;;  %v2227_v14 = vld [vmem:[#allocation2 + $0x7e8] sm:$0xff]  ;;  %v2229_v47 = vld [vmem:[#allocation2 + $0x7f8] sm:$0xff] }
 0x317   : > { %v4210_v61 = vpack.c.bf16 %v2229_v47, %v2227_v14 }
 0x318   : > { %4133 = vmatpush1.bf16.msra.mxu0 %v4132_v38  ;;  %v2186_v38 = vld [vmem:[#allocation2 + $0x6a0] sm:$0xff] }
 0x319   : > { %4135 = vmatprep.subr.bf16.mxu0 %v4134_v59  ;;  %v2188_v59 = vld [vmem:[#allocation2 + $0x6b0] sm:$0xff] }
 0x31a   : > { %v4172_v16 = vpack.c.bf16 %v2188_v59, %v2186_v38 }
 0x31c   : > { %4137 = vmatpush1.bf16.msra.mxu0 %v4136_v0  ;;  %v2190_v0 = vld [vmem:[#allocation2 + $0x6c0] sm:$0xff] }
 0x31d   : > { %4139 = vmatprep.subr.bf16.mxu0 %v4138_v39  ;;  %v2192_v39 = vld [vmem:[#allocation2 + $0x6d0] sm:$0xff] }
 0x31e   : > { %v4176_v41 = vpack.c.bf16 %v2192_v39, %v2190_v0 }
 0x320   : > { %4141 = vmatpush1.bf16.msra.mxu0 %v4140_v2  ;;  %v2194_v2 = vld [vmem:[#allocation2 + $0x6e0] sm:$0xff] }
 0x321   : > { %4143 = vmatprep.subr.bf16.mxu0 %v4142_v53  ;;  %v2196_v53 = vld [vmem:[#allocation2 + $0x6f0] sm:$0xff] }
 0x322   : > { %v4180_v52 = vpack.c.bf16 %v2196_v53, %v2194_v2 }
 0x324   : > { %4145 = vmatpush1.bf16.msra.mxu0 %v4144_v44  ;;  %v2198_v44 = vld [vmem:[#allocation2 + $0x700] sm:$0xff] }
 0x325   : > { %4147 = vmatprep.subr.bf16.mxu0 %v4146_v40  ;;  %v2200_v40 = vld [vmem:[#allocation2 + $0x710] sm:$0xff] }
 0x326   : > { %v4184_v9 = vpack.c.bf16 %v2200_v40, %v2198_v44 }
 0x328   : > { %4149 = vmatpush1.bf16.msra.mxu0 %v4148_v42  ;;  %v2207_v42 = vld [vmem:[#allocation2 + $0x748] sm:$0xff] }
 0x329   : > { %4151 = vmatprep.subr.bf16.mxu0 %v4150_v37  ;;  %v4188_v37 = vpack.c.bf16 %v2204_v46, %v2202_v19  ;;  %v4190_v28 = vpack.c.bf16 %v2209_v30, %v2207_v42 }
 0x32b   : > { %2437 = vmatmul.mubr.f32.vlgmr.msra.gmra.mrb[0].mxu0 %v6758_v54  ;;  %v4166_v54 = vpack.c.bf16 %v2185_v18, %v2183_v36  ;;  %v4206_v18 = vpack.c.bf16 %v2225_v25, %v2223_v55 }
 0x32c   : > { %4153 = vmatpush1.bf16.msra.mxu0 %v4152_v23  ;;  %2507 = vmatprep.mubr.f32.mxu0 %v1973_v33  ;;  %v4194_v23 = vpack.c.bf16 %v2213_v31, %v2211_v27  ;;  %v2217_v33 = vld [vmem:[#allocation2 + $0x798] sm:$0xff] }
 0x32d   : > { %4155 = vmatprep.subr.bf16.mxu0 %v4154_v26  ;;  %v2210_v26 = vld [vmem:[#allocation2 + $0x760] sm:$0xff]  ;;  %v4198_v50 = vpack.c.bf16 %v2217_v33, %v2215_v49 }
 0x32e   : > { %v4196_v43 = vpack.c.bf16 %v2212_v24, %v2210_v26 }
 0x330   : > { %4157 = vmatpush1.bf16.msra.mxu0 %v4156_v3  ;;  %v2214_v3 = vld [vmem:[#allocation2 + $0x780] sm:$0xff] }
 0x331   : > { %4159 = vmatprep.subr.bf16.mxu0 %v4158_v13  ;;  %v2216_v13 = vld [vmem:[#allocation2 + $0x790] sm:$0xff] }
 0x332   : > { %v4200_v11 = vpack.c.bf16 %v2216_v13, %v2214_v3 }
 0x334   : > { %4161 = vmatpush1.bf16.msra.mxu0 %v4160_v21  ;;  %v2218_v21 = vld [vmem:[#allocation2 + $0x7a0] sm:$0xff] }
 0x335   : > { %4163 = vmatprep.subr.bf16.mxu0 %v4162_v17  ;;  %v2220_v17 = vld [vmem:[#allocation2 + $0x7b0] sm:$0xff] }
 0x336   : > { %v4204_v36 = vpack.c.bf16 %v2220_v17, %v2218_v21 }
 0x338   : > { %4165 = vmatpush1.bf16.msra.mxu0 %v4164_v6  ;;  %v2222_v6 = vld [vmem:[#allocation2 + $0x7c0] sm:$0xff] }
 0x339   : > { %4167 = vmatprep.subr.bf16.mxu0 %v4166_v54  ;;  %v2224_v54 = vld [vmem:[#allocation2 + $0x7d0] sm:$0xff] }
 0x33a   : > { %v4208_v32 = vpack.c.bf16 %v2224_v54, %v2222_v6 }
 0x33c   : > { %4169 = vmatpush1.bf16.msra.mxu0 %v4168_v35  ;;  %v2226_v35 = vld [vmem:[#allocation2 + $0x7e0] sm:$0xff] }
 0x33d   : > { %4171 = vmatprep.subr.bf16.mxu0 %v4170_v4  ;;  %v2228_v4 = vld [vmem:[#allocation2 + $0x7f0] sm:$0xff] }
 0x33e   : > { %v4212_v38 = vpack.c.bf16 %v2228_v4, %v2226_v35 }
 0x340   : > { %4173 = vmatpush1.bf16.msra.mxu0 %v4172_v16  ;;  %v2854_v16 = vld [vmem:[%s7357_s5 + $0x8] sm:$0xff] }
 0x341   : > { %4175 = vmatprep.subr.bf16.mxu0 %v4174_v45  ;;  %v2853_v45 = vld [vmem:[%s7357_s5] sm:$0xff] }
 0x344   : > { %4177 = vmatpush1.bf16.msra.mxu0 %v4176_v41 }
 0x345   : > { %4179 = vmatprep.subr.bf16.mxu0 %v4178_v10 }
 0x348   : > { %4181 = vmatpush1.bf16.msra.mxu0 %v4180_v52 }
 0x349   : > { %4183 = vmatprep.subr.bf16.mxu0 %v4182_v60 }
 0x34c   : > { %4185 = vmatpush1.bf16.msra.mxu0 %v4184_v9 }
 0x34d   : > { %4187 = vmatprep.subr.bf16.mxu0 %v4186_v62 }
 0x350   : > { %4189 = vmatpush1.bf16.msra.mxu0 %v4188_v37 }
 0x351   : > { %4191 = vmatprep.subr.bf16.mxu0 %v4190_v28 }
 0x354   : > { %4193 = vmatpush1.bf16.msra.mxu0 %v4192_v1 }
 0x355   : > { %4195 = vmatprep.subr.bf16.mxu0 %v4194_v23 }
 0x358   : > { %4197 = vmatpush1.bf16.msra.mxu0 %v4196_v43 }
 0x359   : > { %4199 = vmatprep.subr.bf16.mxu0 %v4198_v50 }
 0x35c   : > { %4201 = vmatpush1.bf16.msra.mxu0 %v4200_v11 }
 0x35d   : > { %4203 = vmatprep.subr.bf16.mxu0 %v4202_v12 }
 0x360   : > { %4205 = vmatpush1.bf16.msra.mxu0 %v4204_v36 }
 0x361   : > { %4207 = vmatprep.subr.bf16.mxu0 %v4206_v18 }
 0x364   : > { %4209 = vmatpush1.bf16.msra.mxu0 %v4208_v32 }
 0x365   : > { %4211 = vmatprep.subr.bf16.mxu0 %v4210_v61 }
 0x368   : > { %4213 = vmatpush1.bf16.msra.mxu0 %v4212_v38 }
 0x36b   : > { %2508 = vmatmul.mubr.f32.vlgmr.msra.gmra.mrb[0].mxu0 %v6760_v51  ;;  %v2850_v51 = vld [vmem:[%s7356_s4 + $0x8] sm:$0xff] }
 0x36c   : > { %3701 = vmatprep.mubr.msk.f32.mxu1 %vm2865_vm14, %v2850_v51 }
 0x43e   : > { %v6774_v59 = vpop.f32.mrb[0].mxu0 }
 0x43f   : > { %v6776_v58 = vpop.f32.mrb[1].mxu0 }
 0x440   : > { %v4818_v34 = vpack.i.bf16 %v6776_v58, %v6774_v59 }
 0x442   : > { %4819 = vrot.lane.b32.xlu0 %v4818_v34, %s7551_s16  ;;  %4814 = vrot.lane.b32.xlu1 %v4818_v34, %s7538_s27  ;;  %s5092_s16 = smov 78  }
 0x446   : > { %4829 = vrot.lane.b32.xlu0 %v4818_v34, %s5087_s21  ;;  %4824 = vrot.lane.b32.xlu1 %v4818_v34, %s7554_s12 }
 0x44a   : > { %4839 = vrot.lane.b32.xlu0 %v4818_v34, %s5088_s14  ;;  %4834 = vrot.lane.b32.xlu1 %v4818_v34, %s7553_s13  ;;  %s5094_s13 = smov 79  }
 0x44e   : > { %4849 = vrot.lane.b32.xlu0 %v4818_v34, %s5089_s3  ;;  %4844 = vrot.lane.b32.xlu1 %v4818_v34, %s5090_s19  ;;  %s5095_s3 = smov 77   ;;  %s5096_s19 = smov 76  }
 0x452   : > { %4859 = vrot.lane.b32.xlu0 %v4818_v34, %s5091_s25  ;;  %4854 = vrot.lane.b32.xlu1 %v4818_v34, %s7540_s20  ;;  %s5098_s25 = smov 47   ;;  %s5106_s20 = smov 100  }
 0x456   : > { %4869 = vrot.lane.b32.xlu0 %v4818_v34, %s7542_s22  ;;  %4864 = vrot.lane.b32.xlu1 %v4818_v34, %s7539_s30  ;;  %s5110_s22 = smov 119  }
 0x45a   : > { %4879 = vrot.lane.b32.xlu0 %v4818_v34, %s7541_s17  ;;  %4874 = vrot.lane.b32.xlu1 %v4818_v34, %s7557_s18 }
 0x45e   : > { %4889 = vrot.lane.b32.xlu0 %v4818_v34, %s5092_s16  ;;  %4884 = vrot.lane.b32.xlu1 %v4818_v34, %s5093_s28  ;;  %s5099_s16 = smov 25   ;;  %s5102_s28 = smov 50  }
 0x462   : > { %4899 = vrot.lane.b32.xlu0 %v4818_v34, %s5094_s13  ;;  %4894 = vrot.lane.b32.xlu1 %v4818_v34, %s5095_s3  ;;  %s5103_s13 = smov 97   ;;  %s5104_s3 = smov 75  }
 0x466   : > { %4909 = vrot.lane.b32.xlu0 %v4818_v34, %s7545_s23  ;;  %4904 = vrot.lane.b32.xlu1 %v4818_v34, %s5096_s19  ;;  %s5105_s19 = smov 122  }
 0x46a   : > { %4919 = vrot.lane.b32.xlu0 %v4818_v34, %s7544_s24  ;;  %4914 = vrot.lane.b32.xlu1 %v4818_v34, %s7543_s15  ;;  %s5097_s24 = smov 22  }
 0x46e   : > { %2715 = vrot.lane.b32.xlu0 %v6774_v59, %s7561_s10  ;;  %4924 = vrot.lane.b32.xlu1 %v4818_v34, %s7546_s0 }
 0x472   : > { %2717 = vrot.lane.b32.xlu1 %v6776_v58, %s7561_s10  ;;  %2857 = vperm.xlu0 %4928, %v2853_v45  }
 0x476   : > { %2862 = vperm.xlu1 %4767, %v2854_v16  }
 0x4b4   : > { %v4820_v0 = vpop.permute.xlu0 %4819  ;;  %v4815_v39 = vpop.permute.xlu1 %4814 }
 0x4b5   : > { %v4822_v56 = vunpack.i.h.bf16 %v4820_v0  ;;  %v4821_v57 = vunpack.i.l.bf16 %v4820_v0  ;;  %v4817_v41 = vunpack.i.h.bf16 %v4815_v39  ;;  %v4816_v10 = vunpack.i.l.bf16 %v4815_v39 }
 0x4b7   : > { %v2528_v2 = vsel %vm7779_vm0, %v4821_v57, %v4822_v56  ;;  %v2531_v53 = vsel %vm7780_vm1, %v4822_v56, %v4821_v57  ;;  %v2520_v29 = vsel %vm7781_vm13, %v4816_v10, %v4817_v41  ;;  %v2523_v8 = vsel %vm7782_vm2, %v4817_v41, %v4816_v10 }
 0x4b8   : > { %v2729_v52 = vrot.slane %v2528_v2, 4  ;;  %v2730_v60 = vrot.slane %v2531_v53, 4  ;;  %v2724_v44 = vrot.slane %v2520_v29, 2  ;;  %v2725_v40 = vrot.slane %v2523_v8, 2  ;;  %v4830_v22 = vpop.permute.xlu0 %4829  ;;  %v4825_v48 = vpop.permute.xlu1 %4824 }
 0x4b9   : > { %v4832_v9 = vunpack.i.h.bf16 %v4830_v22  ;;  %v4831_v62 = vunpack.i.l.bf16 %v4830_v22  ;;  %v4827_v19 = vunpack.i.h.bf16 %v4825_v48  ;;  %v4826_v46 = vunpack.i.l.bf16 %v4825_v48 }
 0x4ba   : > { %v2784_v42 = vsel %vm1243_vm5, %v6776_v58, %v2725_v40  ;;  %v2786_v30 = vsel %vm1261_vm10, %v2725_v40, %v2730_v60  ;;  %v2783_v37 = vsel %vm1243_vm5, %v6774_v59, %v2724_v44  ;;  %v2785_v28 = vsel %vm1261_vm10, %v2724_v44, %v2729_v52 }
 0x4bb   : > { %v2554_v63 = vsel %vm2553_vm15, %v4831_v62, %v4832_v9  ;;  %v2557_v15 = vsel %vm2553_vm15, %v4832_v9, %v4831_v62  ;;  %v2536_v27 = vsel %vm7783_vm11, %v4826_v46, %v4827_v19  ;;  %v2539_v31 = vsel %vm7784_vm12, %v4827_v19, %v4826_v46 }
 0x4bc   : > { %v2739_v1 = vrot.slane %v2554_v63, 2  ;;  %v2740_v23 = vrot.slane %v2557_v15, 2  ;;  %v2734_v26 = vrot.slane %v2536_v27, 6  ;;  %v2735_v24 = vrot.slane %v2539_v31, 6  ;;  %v4840_v49 = vpop.permute.xlu0 %4839  ;;  %v4835_v33 = vpop.permute.xlu1 %4834 }
 0x4bd   : > { %v4842_v43 = vunpack.i.h.bf16 %v4840_v49  ;;  %v4841_v50 = vunpack.i.l.bf16 %v4840_v49  ;;  %v4837_v3 = vunpack.i.h.bf16 %v4835_v33  ;;  %v4836_v13 = vunpack.i.l.bf16 %v4835_v33 }
 0x4be   : > { %v4214_v5 = vpack.c.bf16 %v2786_v30, %v2784_v42  ;;  %v4216_v20 = vpack.c.bf16 %v2785_v28, %v2783_v37  ;;  %v2788_v11 = vsel %vm1279_vm8, %v2730_v60, %v2735_v24  ;;  %v2787_v12 = vsel %vm1279_vm8, %v2729_v52, %v2734_v26 }
 0x4bf   : > { %v2563_v21 = vsel %vm2562_vm3, %v4841_v50, %v4842_v43  ;;  %v2566_v17 = vsel %vm2562_vm3, %v4842_v43, %v4841_v50  ;;  %vm7785_vm0 = vcmask 1014784   ;;  %vm2580_vm13 = vcmask 891904  }
 0x4c0   : > { %v2544_v55 = vsel %vm7785_vm0, %v4836_v13, %v4837_v3  ;;  %vm7786_vm1 = vmmov %vm7785_vm0  ;;  %v2744_v36 = vrot.slane %v2563_v21, 4  ;;  %v2745_v18 = vrot.slane %v2566_v17, 4  ;;  %4215 = vmatprep.subr.bf16.mxu1 %v4214_v5  ;;  %v4850_v6 = vpop.permute.xlu0 %4849  ;;  %v4845_v54 = vpop.permute.xlu1 %4844  ;;  %vm7787_vm2 = vcmask 785408  }
 0x4c1   : > { %v2548_v25 = vsel %vm7786_vm1, %v4837_v3, %v4836_v13  ;;  %v2789_v47 = vsel %vm1243_vm5, %v2544_v55, %v2739_v1  ;;  %4217 = vmatpush1.bf16.msra.mxu1 %v4216_v20  ;;  %v4852_v32 = vunpack.i.h.bf16 %v4850_v6  ;;  %v4851_v61 = vunpack.i.l.bf16 %v4850_v6 }
 0x4c2   : > { %v2790_v14 = vsel %vm1243_vm5, %v2548_v25, %v2740_v23  ;;  %v4847_v35 = vunpack.i.h.bf16 %v4845_v54  ;;  %v4846_v4 = vunpack.i.l.bf16 %v4845_v54  ;;  %v4220_v59 = vpack.c.bf16 %v2789_v47, %v2787_v12 }
 0x4c3   : > { %v4218_v38 = vpack.c.bf16 %v2790_v14, %v2788_v11  ;;  %v2591_v58 = vsel %vm2590_vm4, %v4851_v61, %v4852_v32  ;;  %v2594_v34 = vsel %vm2590_vm4, %v4852_v32, %v4851_v61  ;;  %v2792_v57 = vsel %vm1261_vm10, %v2740_v23, %v2745_v18  ;;  %vm7788_vm4 = vmmov %vm7787_vm2 }
 0x4c4   : > { %v2572_v51 = vsel %vm2571_vm6, %v4846_v4, %v4847_v35  ;;  %v2575_v16 = vsel %vm2571_vm6, %v4847_v35, %v4846_v4  ;;  %v4860_v39 = vpop.permute.xlu0 %4859  ;;  %v4855_v56 = vpop.permute.xlu1 %4854  ;;  %v2791_v41 = vsel %vm1261_vm10, %v2739_v1, %v2744_v36  ;;  %v2754_v8 = vrot.slane %v2591_v58, 2 }
 0x4c5   : > { %v2749_v45 = vrot.slane %v2572_v51, 6  ;;  %v2750_v0 = vrot.slane %v2575_v16, 6  ;;  %4219 = vmatprep.subr.bf16.mxu1 %v4218_v38  ;;  %v4862_v10 = vunpack.i.h.bf16 %v4860_v39  ;;  %v4861_v2 = vunpack.i.l.bf16 %v4860_v39 }
 0x4c6   : > { %v4857_v53 = vunpack.i.h.bf16 %v4855_v56  ;;  %v4856_v29 = vunpack.i.l.bf16 %v4855_v56  ;;  %4221 = vmatpush1.bf16.msra.mxu1 %v4220_v59  ;;  %v2755_v52 = vrot.slane %v2594_v34, 2  ;;  %vm2659_vm6 = vcmask 637952  }
 0x4c7   : > { %v2794_v60 = vsel %vm1279_vm8, %v2745_v18, %v2750_v0  ;;  %v2793_v44 = vsel %vm1279_vm8, %v2744_v36, %v2749_v45  ;;  %v2581_v40 = vsel %vm2580_vm13, %v4861_v2, %v4862_v10  ;;  %v2585_v22 = vsel %vm2580_vm13, %v4862_v10, %v4861_v2 }
 0x4c8   : > { %v2599_v48 = vsel %vm7787_vm2, %v4856_v29, %v4857_v53  ;;  %v2602_v9 = vsel %vm7788_vm4, %v4857_v53, %v4856_v29  ;;  %v4870_v46 = vpop.permute.xlu0 %4869  ;;  %v4865_v42 = vpop.permute.xlu1 %4864  ;;  %v4222_v30 = vpack.c.bf16 %v2794_v60, %v2792_v57  ;;  %v4224_v37 = vpack.c.bf16 %v2793_v44, %v2791_v41 }
 0x4c9   : > { %v2759_v62 = vrot.slane %v2599_v48, 4  ;;  %v2760_v19 = vrot.slane %v2602_v9, 4  ;;  %vm2640_vm11 = vcmask 654336   ;;  %v4872_v28 = vunpack.i.h.bf16 %v4870_v46 }
 0x4ca   : > { %v4871_v63 = vunpack.i.l.bf16 %v4870_v46  ;;  %v4867_v15 = vunpack.i.h.bf16 %v4865_v42  ;;  %v4866_v27 = vunpack.i.l.bf16 %v4865_v42  ;;  %4223 = vmatprep.subr.bf16.mxu1 %v4222_v30  ;;  %v2796_v31 = vsel %vm1243_vm5, %v2585_v22, %v2755_v52 }
 0x4cb   : > { %v2798_v1 = vsel %vm1261_vm10, %v2755_v52, %v2760_v19  ;;  %v2795_v23 = vsel %vm1243_vm5, %v2581_v40, %v2754_v8  ;;  %v2797_v26 = vsel %vm1261_vm10, %v2754_v8, %v2759_v62  ;;  %vm7789_vm12 = vcmask 760832   ;;  %4225 = vmatpush1.bf16.msra.mxu1 %v4224_v37 }
 0x4cc   : > { %v2624_v24 = vsel %vm7789_vm12, %v4871_v63, %v4872_v28  ;;  %vm7790_vm0 = vmmov %vm7789_vm12  ;;  %v2607_v33 = vsel %vm616_vm9, %v4866_v27, %v4867_v15  ;;  %v2610_v43 = vsel %vm616_vm9, %v4867_v15, %v4866_v27  ;;  %v4880_v20 = vpop.permute.xlu0 %4879  ;;  %v4875_v11 = vpop.permute.xlu1 %4874  ;;  %vm2649_vm1 = vcmask 646144  }
 0x4cd   : > { %v2627_v49 = vsel %vm7790_vm0, %v4872_v28, %v4871_v63  ;;  %v2769_v50 = vrot.slane %v2624_v24, 2  ;;  %v2764_v13 = vrot.slane %v2607_v33, 6  ;;  %v2765_v5 = vrot.slane %v2610_v43, 6 }
 0x4ce   : > { %v2770_v3 = vrot.slane %v2627_v49, 2  ;;  %v4882_v12 = vunpack.i.h.bf16 %v4880_v20  ;;  %v4881_v21 = vunpack.i.l.bf16 %v4880_v20  ;;  %v4877_v17 = vunpack.i.h.bf16 %v4875_v11 }
 0x4cf   : > { %v4876_v55 = vunpack.i.l.bf16 %v4875_v11  ;;  %v4226_v25 = vpack.c.bf16 %v2798_v1, %v2796_v31  ;;  %v4228_v36 = vpack.c.bf16 %v2797_v26, %v2795_v23  ;;  %v2800_v18 = vsel %vm1279_vm8, %v2760_v19, %v2765_v5 }
 0x4d0   : > { %v2799_v6 = vsel %vm1279_vm8, %v2759_v62, %v2764_v13  ;;  %vm7791_vm13 = vcmask 752640   ;;  %vm7793_vm2 = vcmask 769024   ;;  %v4890_v4 = vpop.permute.xlu0 %4889  ;;  %v4885_v38 = vpop.permute.xlu1 %4884  ;;  %vm2668_vm12 = vcmask 629760  }
 0x4d1   : > { %v2632_v54 = vsel %vm7791_vm13, %v4881_v21, %v4882_v12  ;;  %vm7792_vm9 = vmmov %vm7791_vm13  ;;  %v2615_v47 = vsel %vm7793_vm2, %v4876_v55, %v4877_v17  ;;  %4227 = vmatprep.subr.bf16.mxu1 %v4226_v25  ;;  %v4892_v34 = vunpack.i.h.bf16 %v4890_v4  ;;  %v4891_v51 = vunpack.i.l.bf16 %v4890_v4 }
 0x4d2   : > { %v2635_v14 = vsel %vm7792_vm9, %v4882_v12, %v4881_v21  ;;  %vm7794_vm4 = vmmov %vm7793_vm2  ;;  %v2774_v61 = vrot.slane %v2632_v54, 4  ;;  %v2801_v58 = vsel %vm1243_vm5, %v2615_v47, %v2769_v50  ;;  %4229 = vmatpush1.bf16.msra.mxu1 %v4228_v36  ;;  %v4887_v16 = vunpack.i.h.bf16 %v4885_v38 }
 0x4d3   : > { %v2619_v32 = vsel %vm7794_vm4, %v4877_v17, %v4876_v55  ;;  %v2775_v35 = vrot.slane %v2635_v14, 4  ;;  %v4886_v45 = vunpack.i.l.bf16 %v4885_v38  ;;  %v4232_v39 = vpack.c.bf16 %v2801_v58, %v2799_v6 }
 0x4d4   : > { %v2802_v59 = vsel %vm1243_vm5, %v2619_v32, %v2770_v3  ;;  %vm2677_vm0 = vcmask 621568   ;;  %v2660_v56 = vsel %vm2659_vm6, %v4891_v51, %v4892_v34  ;;  %v2663_v57 = vsel %vm2659_vm6, %v4892_v34, %v4891_v51  ;;  %v4900_v29 = vpop.permute.xlu0 %4899  ;;  %v4895_v8 = vpop.permute.xlu1 %4894 }
 0x4d5   : > { %v4230_v0 = vpack.c.bf16 %v2802_v59, %v2800_v18  ;;  %v2641_v41 = vsel %vm2640_vm11, %v4886_v45, %v4887_v16  ;;  %v2644_v10 = vsel %vm2640_vm11, %v4887_v16, %v4886_v45  ;;  %v2804_v52 = vsel %vm1261_vm10, %v2770_v3, %v2775_v35 }
 0x4d6   : > { %v2779_v2 = vrot.slane %v2641_v41, 6  ;;  %v2780_v53 = vrot.slane %v2644_v10, 6  ;;  %v2803_v60 = vsel %vm1261_vm10, %v2769_v50, %v2774_v61  ;;  %v4902_v44 = vunpack.i.h.bf16 %v4900_v29 }
 0x4d7   : > { %4231 = vmatprep.subr.bf16.mxu1 %v4230_v0  ;;  %v4901_v40 = vunpack.i.l.bf16 %v4900_v29  ;;  %v4897_v22 = vunpack.i.h.bf16 %v4895_v8  ;;  %v4896_v48 = vunpack.i.l.bf16 %v4895_v8  ;;  %v2808_v9 = vrot.slane %v2660_v56, 2 }
 0x4d8   : > { %4233 = vmatpush1.bf16.msra.mxu1 %v4232_v39  ;;  %v2809_v62 = vrot.slane %v2663_v57, 2  ;;  %v2806_v19 = vsel %vm1279_vm8, %v2775_v35, %v2780_v53  ;;  %v2805_v46 = vsel %vm1279_vm8, %v2774_v61, %v2779_v2  ;;  %v4910_v27 = vpop.permute.xlu0 %4909  ;;  %v4905_v31 = vpop.permute.xlu1 %4904  ;;  %vm7795_vm6 = vcmask 515072  }
 0x4d9   : > { %v2650_v42 = vsel %vm2649_vm1, %v4901_v40, %v4902_v44  ;;  %v2654_v30 = vsel %vm2649_vm1, %v4902_v44, %v4901_v40  ;;  %v2669_v37 = vsel %vm2668_vm12, %v4896_v48, %v4897_v22  ;;  %v2672_v28 = vsel %vm2668_vm12, %v4897_v22, %v4896_v48  ;;  %vm7796_vm11 = vmmov %vm7795_vm6 }
 0x4da   : > { %v2813_v63 = vrot.slane %v2669_v37, 4  ;;  %v2814_v15 = vrot.slane %v2672_v28, 4  ;;  %v4234_v1 = vpack.c.bf16 %v2806_v19, %v2804_v52  ;;  %v4236_v23 = vpack.c.bf16 %v2805_v46, %v2803_v60  ;;  %v2849_v46 = vld [vmem:[%s7356_s4] sm:$0xff]  ;;  %v2851_v37 = vld [vmem:[%s7356_s4 + $0x10] sm:$0xff] }
 0x4db   : > { %v4912_v26 = vunpack.i.h.bf16 %v4910_v27  ;;  %v4911_v24 = vunpack.i.l.bf16 %v4910_v27  ;;  %v4907_v49 = vunpack.i.h.bf16 %v4905_v31  ;;  %v4906_v33 = vunpack.i.l.bf16 %v4905_v31  ;;  %v3044_v28 = vld [vmem:[%s7358_s6 + $0x80] sm:$0xff]  ;;  %v3029_v31 = vld [vmem:[%s7358_s6 + $0x8] sm:$0xff] }
 0x4dc   : > { %4235 = vmatprep.subr.bf16.mxu1 %v4234_v1  ;;  %v2840_v43 = vsel %vm1261_vm10, %v2809_v62, %v2814_v15  ;;  %v2839_v50 = vsel %vm1261_vm10, %v2808_v9, %v2813_v63  ;;  %v4920_v21 = vpop.permute.xlu0 %4919  ;;  %v4915_v17 = vpop.permute.xlu1 %4914  ;;  %v2838_v55 = vsel %vm1243_vm5, %v2654_v30, %v2809_v62  ;;  %v2837_v25 = vsel %vm1243_vm5, %v2650_v42, %v2808_v9  ;;  %v2852_v30 = vld [vmem:[%s7356_s4 + $0x18] sm:$0xff]  ;;  %v3046_v1 = vld [vmem:[%s7358_s6 + $0x90] sm:$0xff] }
 0x4dd   : > { %v2695_v3 = vsel %vm7795_vm6, %v4911_v24, %v4912_v26  ;;  %v2698_v13 = vsel %vm7796_vm11, %v4912_v26, %v4911_v24  ;;  %v2678_v5 = vsel %vm2677_vm0, %v4906_v33, %v4907_v49  ;;  %v2681_v20 = vsel %vm2677_vm0, %v4907_v49, %v4906_v33  ;;  %4237 = vmatpush1.bf16.msra.mxu1 %v4236_v23  ;;  %v3047_v23 = vld [vmem:[%s7358_s6 + $0x98] sm:$0xff]  ;;  %v3030_v49 = vld [vmem:[%s7358_s6 + $0x10] sm:$0xff] }
 0x4de   : > { %v2818_v11 = vrot.slane %v2678_v5, 6  ;;  %v2819_v12 = vrot.slane %v2681_v20, 6  ;;  %v4922_v36 = vunpack.i.h.bf16 %v4920_v21  ;;  %v4921_v18 = vunpack.i.l.bf16 %v4920_v21  ;;  %v3031_v33 = vld [vmem:[%s7358_s6 + $0x18] sm:$0xff]  ;;  %v3032_v5 = vld [vmem:[%s7358_s6 + $0x20] sm:$0xff]  ;;  %v3033_v20 = vld [vmem:[%s7358_s6 + $0x28] sm:$0xff] }
 0x4df   : > { %v4917_v6 = vunpack.i.h.bf16 %v4915_v17  ;;  %v4916_v54 = vunpack.i.l.bf16 %v4915_v17  ;;  %v2823_v14 = vrot.slane %v2695_v3, 2  ;;  %v2824_v47 = vrot.slane %v2698_v13, 2 }
 0x4e0   : > { %v4238_v32 = vpack.c.bf16 %v2840_v43, %v2838_v55  ;;  %v4240_v61 = vpack.c.bf16 %v2839_v50, %v2837_v25  ;;  %vm7797_vm1 = vcmask 506880   ;;  %vm7799_vm9 = vcmask 523264   ;;  %v4925_v58 = vpop.permute.xlu1 %4924  ;;  %v2716_v62 = vpop.permute.xlu0 %2715  ;;  %v3048_v43 = vld [vmem:[%s7358_s6 + $0xa0] sm:$0xff]  ;;  %v3049_v50 = vld [vmem:[%s7358_s6 + $0xa8] sm:$0xff]  ;;  %v3034_v55 = vld [vmem:[%s7358_s6 + $0x30] sm:$0xff] }
 0x4e1   : > { %v2703_v35 = vsel %vm7797_vm1, %v4921_v18, %v4922_v36  ;;  %vm7798_vm13 = vmmov %vm7797_vm1  ;;  %v2686_v38 = vsel %vm7799_vm9, %v4916_v54, %v4917_v6  ;;  %v2842_v34 = vsel %vm1279_vm8, %v2814_v15, %v2819_v12  ;;  %v2841_v16 = vsel %vm1279_vm8, %v2813_v63, %v2818_v11  ;;  %v3045_v63 = vld [vmem:[%s7358_s6 + $0x88] sm:$0xff]  ;;  %v3028_v15 = vld [vmem:[%s7358_s6] sm:$0xff] }
 0x4e2   : > { %v2706_v4 = vsel %vm7798_vm13, %v4922_v36, %v4921_v18  ;;  %vm7800_vm2 = vmmov %vm7799_vm9  ;;  %4239 = vmatprep.subr.bf16.mxu1 %v4238_v32  ;;  %v2843_v45 = vsel %vm1243_vm5, %v2686_v38, %v2823_v14  ;;  %v4927_v0 = vunpack.i.h.bf16 %v4925_v58  ;;  %v4926_v39 = vunpack.i.l.bf16 %v4925_v58  ;;  %v3050_v11 = vld [vmem:[%s7358_s6 + $0xb0] sm:$0xff]  ;;  %v3051_v12 = vld [vmem:[%s7358_s6 + $0xb8] sm:$0xff] }
 0x4e3   : > { %v2690_v59 = vsel %vm7800_vm2, %v4917_v6, %v4916_v54  ;;  %4241 = vmatpush1.bf16.msra.mxu1 %v4240_v61  ;;  %v4244_v57 = vpack.c.bf16 %v2843_v45, %v2841_v16  ;;  %v2828_v41 = vrot.slane %v2703_v35, 4  ;;  %v2829_v10 = vrot.slane %v2706_v4, 4  ;;  %v3035_v25 = vld [vmem:[%s7358_s6 + $0x38] sm:$0xff]  ;;  %v3052_v36 = vld [vmem:[%s7358_s6 + $0xc0] sm:$0xff]  ;;  %v3053_v18 = vld [vmem:[%s7358_s6 + $0xc8] sm:$0xff] }
 0x4e4   : > { %v2844_v51 = vsel %vm1243_vm5, %v2690_v59, %v2824_v47  ;;  %vm7801_vm4 = vcmask 498688   ;;  %v2718_v22 = vpop.permute.xlu1 %2717  ;;  %vm7803_vm0 = vcmask 490496   ;;  %v4250_v27 = vpack.c.bf16 %v3045_v63, %v3044_v28  ;;  %v3054_v35 = vld [vmem:[%s7358_s6 + $0xd0] sm:$0xff]  ;;  %v3055_v4 = vld [vmem:[%s7358_s6 + $0xd8] sm:$0xff] }
 0x4e5   : > { %v4242_v56 = vpack.c.bf16 %v2844_v51, %v2842_v34  ;;  %v2711_v2 = vsel %vm7801_vm4, %v4926_v39, %v4927_v0  ;;  %vm7802_vm12 = vmmov %vm7801_vm4  ;;  %v2846_v52 = vsel %vm1261_vm10, %v2824_v47, %v2829_v10  ;;  %v2845_v44 = vsel %vm1261_vm10, %v2823_v14, %v2828_v41  ;;  %v3036_v14 = vld [vmem:[%s7358_s6 + $0x40] sm:$0xff]  ;;  %v3037_v47 = vld [vmem:[%s7358_s6 + $0x48] sm:$0xff] }
 0x4e6   : > { %v2714_v53 = vsel %vm7802_vm12, %v4927_v0, %v4926_v39  ;;  %v2833_v29 = vrot.slane %v2711_v2, 6  ;;  %v2722_v19 = vsel %vm7803_vm0, %v2718_v22, %v2716_v62  ;;  %vm7804_vm6 = vmmov %vm7803_vm0  ;;  %v4252_v26 = vpack.c.bf16 %v3029_v31, %v3028_v15  ;;  %v3038_v38 = vld [vmem:[%s7358_s6 + $0x50] sm:$0xff]  ;;  %v3039_v58 = vld [vmem:[%s7358_s6 + $0x58] sm:$0xff] }
 0x4e7   : > { %4243 = vmatprep.subr.bf16.mxu1 %v4242_v56  ;;  %v2834_v8 = vrot.slane %v2714_v53, 6  ;;  %v2719_v42 = vsel %vm7804_vm6, %v2716_v62, %v2718_v22  ;;  %v4254_v24 = vpack.c.bf16 %v3047_v23, %v3046_v1  ;;  %v4256_v3 = vpack.c.bf16 %v3031_v33, %v3030_v49  ;;  %v3057_v2 = vld [vmem:[%s7358_s6 + $0xe8] sm:$0xff]  ;;  %v3040_v53 = vld [vmem:[%s7358_s6 + $0x60] sm:$0xff]  ;;  %v3043_v62 = vld [vmem:[%s7358_s6 + $0x78] sm:$0xff] }
 0x4e8   : > { %4245 = vmatpush1.bf16.msra.mxu1 %v4244_v57  ;;  %v2847_v40 = vsel %vm1279_vm8, %v2828_v41, %v2833_v29  ;;  %v4258_v13 = vpack.c.bf16 %v3049_v50, %v3048_v43  ;;  %v4260_v21 = vpack.c.bf16 %v3033_v20, %v3032_v5  ;;  %v4262_v17 = vpack.c.bf16 %v3051_v12, %v3050_v11 }
 0x4e9   : > { %v2848_v60 = vsel %vm1279_vm8, %v2829_v10, %v2834_v8  ;;  %v4248_v9 = vpack.c.bf16 %v2847_v40, %v2845_v44  ;;  %v4264_v6 = vpack.c.bf16 %v3035_v25, %v3034_v55  ;;  %v4266_v54 = vpack.c.bf16 %v3053_v18, %v3052_v36  ;;  %v3056_v10 = vld [vmem:[%s7358_s6 + $0xe0] sm:$0xff]  ;;  %v3058_v44 = vld [vmem:[%s7358_s6 + $0xf0] sm:$0xff]  ;;  %v3059_v40 = vld [vmem:[%s7358_s6 + $0xf8] sm:$0xff] }
 0x4ea   : > { %v4246_v48 = vpack.c.bf16 %v2848_v60, %v2846_v52  ;;  %v4268_v32 = vpack.c.bf16 %v3037_v47, %v3036_v14  ;;  %v4270_v59 = vpack.c.bf16 %v3055_v4, %v3054_v35  ;;  %v4272_v51 = vpack.c.bf16 %v3039_v58, %v3038_v38  ;;  %v3041_v60 = vld [vmem:[%s7358_s6 + $0x68] sm:$0xff] }
 0x4eb   : > { %v4274_v52 = vpack.c.bf16 %v3057_v2, %v3056_v10  ;;  %v3222_v10 = vld [vmem:[%s7359_s7] sm:$0xff]  ;;  %vm3207_vm13 = vcmask 588800   ;;  %vm3198_vm9 = vcmask 408576   ;;  %vm3209_vm2 = vcmask 793600  }
 0x4ec   : > { %4247 = vmatprep.subr.bf16.mxu1 %v4246_v48  ;;  %vm3201_vm4 = vcmask 818176   ;;  %vm3211_vm12 = vcmask 998400   ;;  %vm3213_vm0 = vcmask 154624   ;;  %vm3215_vm6 = vcmask 359424  }
 0x4ed   : > { %4249 = vmatpush1.bf16.msra.mxu1 %v4248_v9  ;;  %v3042_v9 = vld [vmem:[%s7358_s6 + $0x70] sm:$0xff] }
 0x4ee   : > { %3699 = vmatprep.subr.msk.mxu1 %vm1243_vm5, %v2722_v19 }
 0x4f1   : > { %3700 = vmatpush1.msk.msra.mxu1 %vm1243_vm5, %v2719_v42  ;;  %v2858_v61 = vpop.permute.xlu0 %2857  ;;  %v4278_v42 = vpack.c.bf16 %v3059_v40, %v3058_v44  ;;  %vm7805_vm5 = vcmask 1039360   ;;  %v3224_v44 = vld [vmem:[%s7359_s7 + $0x10] sm:$0xff]  ;;  %v3225_v40 = vld [vmem:[%s7359_s7 + $0x18] sm:$0xff] }
 0x4f2   : > { %2942 = vmatmul.mubr.f32.vlgmr.msra.gmra.mrb[8].mxu1 %v2849_v46  ;;  %4251 = vmatprep.subr.bf16.mxu1 %v4250_v27  ;;  %v4276_v46 = vpack.c.bf16 %v3041_v60, %v3040_v53  ;;  %vm7806_vm8 = vmmov %vm7805_vm5  ;;  %v3223_v53 = vld [vmem:[%s7359_s7 + $0x8] sm:$0xff] }
 0x4f3   : > { %3702 = vmatprep.mubr.msk.f32.mxu1 %vm2865_vm14, %v2852_v30  ;;  %4253 = vmatpush3.bf16.msra.mxu1 %v4252_v26  ;;  %vm7807_vm11 = vmmov %vm7805_vm5 }
 0x4f4   : > { %4255 = vmatprep.subr.bf16.mxu1 %v4254_v24  ;;  %vm7808_vm1 = vmmov %vm7805_vm5 }
 0x4f5   : > { %v2863_v56 = vpop.permute.xlu1 %2862 }
 0x4f6   : > { %2948 = vmatmul.mubr.f32.gmra.mrb[10].mxu1 %v2851_v37  ;;  %v4280_v37 = vpack.c.bf16 %v3043_v62, %v3042_v9  ;;  %v4288_v9 = vpack.c.bf16 %v3225_v40, %v3224_v44 }
 0x4f7   : > { %4257 = vmatpush3.bf16.msra.mxu1 %v4256_v3 }
 0x4f8   : > { %4259 = vmatprep.subr.bf16.mxu1 %v4258_v13 }
 0x4fb   : > { %4261 = vmatpush3.bf16.msra.mxu1 %v4260_v21 }
 0x4fc   : > { %4263 = vmatprep.subr.bf16.mxu1 %v4262_v17 }
 0x4ff   : > { %4265 = vmatpush3.bf16.msra.mxu1 %v4264_v6 }
 0x500   : > { %4267 = vmatprep.subr.bf16.mxu1 %v4266_v54 }
 0x503   : > { %4269 = vmatpush3.bf16.msra.mxu1 %v4268_v32 }
 0x504   : > { %4271 = vmatprep.subr.bf16.mxu1 %v4270_v59 }
 0x507   : > { %4273 = vmatpush3.bf16.msra.mxu1 %v4272_v51 }
 0x508   : > { %4275 = vmatprep.subr.bf16.mxu1 %v4274_v52  ;;  %v4284_v52 = vpack.c.bf16 %v3223_v53, %v3222_v10 }
 0x50b   : > { %4277 = vmatpush3.bf16.msra.mxu1 %v4276_v46  ;;  %v3227_v46 = vld [vmem:[%s7359_s7 + $0x28] sm:$0xff] }
 0x50c   : > { %4279 = vmatprep.subr.bf16.mxu1 %v4278_v42  ;;  %v3244_v42 = vld [vmem:[%s7359_s7 + $0xb0] sm:$0xff] }
 0x50f   : > { %4281 = vmatpush3.bf16.msra.mxu1 %v4280_v37 }
 0x5c5   : > { %v2943_v34 = vpop.f32.mrb[8].mxu1 }
 0x5c6   : > { %v2944_v16 = vadd.f32 %v2943_v34, %v2858_v61  ;;  %v2945_v45 = vpop.f32.mrb[9].mxu1 }
 0x5c7   : > { %v2946_v0 = vadd.f32 %v2945_v45, %v2858_v61 }
 0x5c8   : > { %v2954_v39 = vmax.f32 %v2944_v16, 0.0 }
 0x5c9   : > { %v2955_v57 = vmax.f32 %v2946_v0, 0.0  ;;  %v2949_v41 = vpop.f32.mrb[10].mxu1 }
 0x5ca   : > { %v6988_v29 = vadd.f32 %v2949_v41, %v2863_v56  ;;  %v2951_v8 = vpop.f32.mrb[11].mxu1  ;;  %v3239_v41 = vld [vmem:[%s7359_s7 + $0x88] sm:$0xff] }
 0x5cb   : > { %v2952_v22 = vadd.f32 %v2951_v8, %v2863_v56  ;;  %v4934_v48 = vpack.i.bf16 %v2955_v57, %v2954_v39  ;;  %v3241_v8 = vld [vmem:[%s7359_s7 + $0x98] sm:$0xff] }
 0x5cc   : > { %v2956_v19 = vmax.f32 %v6988_v29, 0.0  ;;  %v3240_v29 = vld [vmem:[%s7359_s7 + $0x90] sm:$0xff] }
 0x5cd   : > { %v2957_v30 = vmax.f32 %v2952_v22, 0.0  ;;  %4935 = vrot.lane.b32.xlu0 %v4934_v48, %s5087_s21  ;;  %4930 = vrot.lane.b32.xlu1 %v4934_v48, %s7538_s27  ;;  %v4286_v60 = vpack.c.bf16 %v3241_v8, %v3240_v29  ;;  %v3242_v22 = vld [vmem:[%s7359_s7 + $0xa0] sm:$0xff] }
 0x5cf   : > { %v4944_v28 = vpack.i.bf16 %v2957_v30, %v2956_v19 }
 0x5d1   : > { %4945 = vrot.lane.b32.xlu0 %v4944_v28, %s7538_s27  ;;  %4940 = vrot.lane.b32.xlu1 %v4934_v48, %s5088_s14  ;;  %v3243_v48 = vld [vmem:[%s7359_s7 + $0xa8] sm:$0xff]  ;;  %s5107_s27 = smov 44  }
 0x5d2   : > { %v4290_v62 = vpack.c.bf16 %v3243_v48, %v3242_v22 }
 0x5d5   : > { %4955 = vrot.lane.b32.xlu0 %v4944_v28, %s5088_s14  ;;  %4950 = vrot.lane.b32.xlu1 %v4944_v28, %s5087_s21  ;;  %s5108_s21 = smov 19   ;;  %s5109_s14 = smov 69  }
 0x63f   : > { %v4936_v63 = vpop.permute.xlu0 %4935  ;;  %v4931_v15 = vpop.permute.xlu1 %4930 }
 0x640   : > { %v4933_v27 = vunpack.i.h.bf16 %v4931_v15  ;;  %v4932_v31 = vunpack.i.l.bf16 %v4931_v15  ;;  %v4938_v1 = vunpack.i.h.bf16 %v4936_v63  ;;  %v4937_v23 = vunpack.i.l.bf16 %v4936_v63  ;;  %v3228_v63 = vld [vmem:[%s7359_s7 + $0x30] sm:$0xff]  ;;  %v3229_v15 = vld [vmem:[%s7359_s7 + $0x38] sm:$0xff] }
 0x642   : > { %v2970_v26 = vsel %vm7805_vm5, %v4932_v31, %v4933_v27  ;;  %v2978_v24 = vsel %vm7806_vm8, %v4933_v27, %v4932_v31  ;;  %v2992_v5 = vsel %vm2553_vm15, %v4937_v23, %v4938_v1  ;;  %v3000_v20 = vsel %vm2553_vm15, %v4938_v1, %v4937_v23  ;;  %v3246_v31 = vld [vmem:[%s7359_s7 + $0xc0] sm:$0xff]  ;;  %v3247_v1 = vld [vmem:[%s7359_s7 + $0xc8] sm:$0xff] }
 0x643   : > { %v4946_v49 = vpop.permute.xlu0 %4945  ;;  %v4941_v33 = vpop.permute.xlu1 %4940  ;;  %v2980_v11 = vmax.f32 %v2954_v39, %v2970_v26  ;;  %v2981_v17 = vmax.f32 %v2955_v57, %v2978_v24  ;;  %v3238_v57 = vld [vmem:[%s7359_s7 + $0x80] sm:$0xff]  ;;  %v4296_v27 = vpack.c.bf16 %v3229_v15, %v3228_v63  ;;  %v4298_v26 = vpack.c.bf16 %v3247_v1, %v3246_v31  ;;  %v3231_v24 = vld [vmem:[%s7359_s7 + $0x48] sm:$0xff] }
 0x644   : > { %v4948_v43 = vunpack.i.h.bf16 %v4946_v49  ;;  %v4947_v50 = vunpack.i.l.bf16 %v4946_v49  ;;  %v4943_v3 = vunpack.i.h.bf16 %v4941_v33  ;;  %v4942_v13 = vunpack.i.l.bf16 %v4941_v33  ;;  %v3230_v23 = vld [vmem:[%s7359_s7 + $0x40] sm:$0xff]  ;;  %v3248_v33 = vld [vmem:[%s7359_s7 + $0xd0] sm:$0xff] }
 0x645   : > { %v4282_v2 = vpack.c.bf16 %v3239_v41, %v3238_v57  ;;  %v4300_v49 = vpack.c.bf16 %v3231_v24, %v3230_v23  ;;  %v3256_v24 = vld [vmem:[%s7359_s7 + $0x110] sm:$0xff]  ;;  %vm3217_vm5 = vcmask 564224   ;;  %vm3220_vm8 = vcmask 973824  }
 0x646   : > { %v3010_v12 = vsel %vm2562_vm3, %v4942_v13, %v4943_v3  ;;  %v3018_v21 = vsel %vm2562_vm3, %v4943_v3, %v4942_v13  ;;  %v2971_v55 = vsel %vm7807_vm11, %v4947_v50, %v4948_v43  ;;  %v2979_v25 = vsel %vm7808_vm1, %v4948_v43, %v4947_v50  ;;  %v3249_v43 = vld [vmem:[%s7359_s7 + $0xd8] sm:$0xff]  ;;  %v3232_v50 = vld [vmem:[%s7359_s7 + $0x50] sm:$0xff] }
 0x647   : > { %v3020_v36 = vmax.f32 %v2992_v5, %v3010_v12  ;;  %v4956_v18 = vpop.permute.xlu0 %4955  ;;  %v4951_v6 = vpop.permute.xlu1 %4950  ;;  %v3021_v54 = vmax.f32 %v3000_v20, %v3018_v21  ;;  %v2983_v51 = vmax.f32 %v2957_v30, %v2979_v25  ;;  %v2982_v45 = vmax.f32 %v2956_v19, %v2971_v55  ;;  %4283 = vmatprep.subr.bf16.mxu1 %v4282_v2  ;;  %v3226_v19 = vld [vmem:[%s7359_s7 + $0x20] sm:$0xff]  ;;  %v3245_v30 = vld [vmem:[%s7359_s7 + $0xb8] sm:$0xff]  ;;  %v3251_v21 = vld [vmem:[%s7359_s7 + $0xe8] sm:$0xff] }
 0x648   : > { %v4958_v14 = vunpack.i.h.bf16 %v4956_v18  ;;  %v4957_v47 = vunpack.i.l.bf16 %v4956_v18  ;;  %v4953_v32 = vunpack.i.h.bf16 %v4951_v6  ;;  %v4952_v61 = vunpack.i.l.bf16 %v4951_v6  ;;  %v3233_v13 = vld [vmem:[%s7359_s7 + $0x58] sm:$0xff]  ;;  %v3250_v12 = vld [vmem:[%s7359_s7 + $0xe0] sm:$0xff] }
 0x649   : > { %v3024_v35 = vmax.f32 %v2980_v11, %v3020_v36  ;;  %v3025_v4 = vmax.f32 %v2981_v17, %v3021_v54  ;;  %v4292_v37 = vpack.c.bf16 %v3227_v46, %v3226_v19  ;;  %v4294_v28 = vpack.c.bf16 %v3245_v30, %v3244_v42  ;;  %v3234_v17 = vld [vmem:[%s7359_s7 + $0x60] sm:$0xff]  ;;  %v3235_v36 = vld [vmem:[%s7359_s7 + $0x68] sm:$0xff] }
 0x64a   : > { %v3011_v38 = vsel %vm2562_vm3, %v4957_v47, %v4958_v14  ;;  %v3019_v59 = vsel %vm2562_vm3, %v4958_v14, %v4957_v47  ;;  %v2993_v58 = vsel %vm2553_vm15, %v4952_v61, %v4953_v32  ;;  %v3001_v34 = vsel %vm2553_vm15, %v4953_v32, %v4952_v61  ;;  %v3252_v32 = vld [vmem:[%s7359_s7 + $0xf0] sm:$0xff]  ;;  %v3253_v61 = vld [vmem:[%s7359_s7 + $0xf8] sm:$0xff]  ;;  %v3254_v19 = vld [vmem:[%s7359_s7 + $0x100] sm:$0xff] }
 0x64b   : > { %3124 = vmatprep.mubr.f32.mxu1 %v3025_v4  ;;  %v3023_v16 = vmax.f32 %v3001_v34, %v3019_v59  ;;  %v3022_v0 = vmax.f32 %v2993_v58, %v3011_v38  ;;  %v4302_v3 = vpack.c.bf16 %v3249_v43, %v3248_v33  ;;  %v4304_v5 = vpack.c.bf16 %v3233_v13, %v3232_v50  ;;  %v3236_v38 = vld [vmem:[%s7359_s7 + $0x70] sm:$0xff]  ;;  %v3237_v59 = vld [vmem:[%s7359_s7 + $0x78] sm:$0xff]  ;;  %v3255_v46 = vld [vmem:[%s7359_s7 + $0x108] sm:$0xff] }
 0x64c   : > { %3125 = vmatmul.mubr.f32.vlgmr.msra.gmra.mrb[12].mxu1 %v3024_v35  ;;  %v4306_v25 = vpack.c.bf16 %v3251_v21, %v3250_v12  ;;  %v4308_v18 = vpack.c.bf16 %v3235_v36, %v3234_v17  ;;  %v4310_v4 = vpack.c.bf16 %v3253_v61, %v3252_v32  ;;  %v4312_v58 = vpack.c.bf16 %v3237_v59, %v3236_v38  ;;  %v3259_v13 = vld [vmem:[%s7359_s7 + $0x128] sm:$0xff]  ;;  %v3261_v12 = vld [vmem:[%s7359_s7 + $0x138] sm:$0xff]  ;;  %v3268_v61 = vld [vmem:[%s7359_s7 + $0x170] sm:$0xff] }
 0x64d   : > { %v3027_v39 = vmax.f32 %v2983_v51, %v3023_v16  ;;  %v3026_v56 = vmax.f32 %v2982_v45, %v3022_v0  ;;  %4285 = vmatpush3.bf16.msra.mxu1 %v4284_v52  ;;  %v5100_v16 = vmov 0.0|0.0   ;;  %vm3205_vm15 = vcmask 384000   ;;  %v3270_v59 = vld [vmem:[%s7359_s7 + $0x180] sm:$0xff] }
 0x64e   : > { %4287 = vmatprep.subr.bf16.mxu1 %v4286_v60  ;;  %vm3196_vm3 = vcmask 203776   ;;  %v4315_v1 = vpack.c.bf16 %v3255_v46, %v3254_v19  ;;  %vm7810_vm11 = vcmask 769024   ;;  %v3427_v46 = vld [vmem:[%s7361_s9 + $0x50] sm:$0xff]  ;;  %vm5111_vm1 = vmmov 0  }
 0x64f   : > { %3129 = vmatprep.mubr.f32.mxu1 %v3027_v39 }
 0x650   : > { %3130 = vmatmul.mubr.f32.gmra.mrb[14].mxu1 %v3026_v56 }
 0x651   : > { %4289 = vmatpush3.bf16.msra.mxu1 %v4288_v9 }
 0x652   : > { %4291 = vmatprep.subr.bf16.mxu1 %v4290_v62 }
 0x655   : > { %4293 = vmatpush3.bf16.msra.mxu1 %v4292_v37 }
 0x656   : > { %4295 = vmatprep.subr.bf16.mxu1 %v4294_v28 }
 0x659   : > { %4297 = vmatpush3.bf16.msra.mxu1 %v4296_v27 }
 0x65a   : > { %4299 = vmatprep.subr.bf16.mxu1 %v4298_v26 }
 0x65d   : > { %4301 = vmatpush3.bf16.msra.mxu1 %v4300_v49  ;;  %v3257_v49 = vld [vmem:[%s7359_s7 + $0x118] sm:$0xff] }
 0x65e   : > { %4303 = vmatprep.subr.bf16.mxu1 %v4302_v3  ;;  %v4318_v50 = vpack.c.bf16 %v3257_v49, %v3256_v24  ;;  %v3258_v3 = vld [vmem:[%s7359_s7 + $0x120] sm:$0xff]  ;;  %v3509_v49 = vld [vmem:[%s7363_s11 + $0x8] sm:$0xff] }
 0x65f   : > { %v3508_v24 = vld [vmem:[%s7363_s11] sm:$0xff] }
 0x661   : > { %4305 = vmatpush3.bf16.msra.mxu1 %v4304_v5 }
 0x662   : > { %4307 = vmatprep.subr.bf16.mxu1 %v4306_v25  ;;  %v3263_v25 = vld [vmem:[%s7359_s7 + $0x148] sm:$0xff] }
 0x665   : > { %4309 = vmatpush3.bf16.msra.mxu1 %v4308_v18  ;;  %v3264_v18 = vld [vmem:[%s7359_s7 + $0x150] sm:$0xff] }
 0x666   : > { %4311 = vmatprep.subr.bf16.mxu1 %v4310_v4 }
 0x669   : > { %4313 = vmatpush3.bf16.msra.mxu1 %v4312_v58  ;;  %v3271_v58 = vld [vmem:[%s7359_s7 + $0x188] sm:$0xff] }
 0x66a   : > { %4314 = vmatprep.subr.bf16.mxu1 %v5100_v16 }
 0x71f   : > { %v3743_v20 = vpop.f32.mrb[12].mxu1 }
 0x720   : > { %v3744_v11 = vpop.f32.mrb[13].mxu1 }
 0x721   : > { %v7105_v55 = vadd.f32 %v3744_v11, %v3743_v20  ;;  %v4321_v20 = vpack.c.bf16 %v3259_v13, %v3258_v3  ;;  %v3260_v11 = vld [vmem:[%s7359_s7 + $0x130] sm:$0xff]  ;;  %v4363_v3 = vpack.c.bf16 %v3509_v49, %v3508_v24 }
 0x722   : > { %v4324_v17 = vpack.c.bf16 %v3261_v12, %v3260_v11  ;;  %v3512_v12 = vld [vmem:[%s7363_s11 + $0x20] sm:$0xff] }
 0x723   : > { %v3746_v6 = vpop.f32.mrb[14].mxu1  ;;  %v3156_v54 = vrot.slane %v7105_v55, 6  ;;  %v3152_v14 = vrot.slane %v7105_v55, 5  ;;  %v3160_v34 = vrot.slane %v7105_v55, 7  ;;  %v3136_v51 = vrot.slane %v7105_v55, 1 }
 0x724   : > { %v3747_v47 = vpop.f32.mrb[15].mxu1  ;;  %v3140_v45 = vrot.slane %v7105_v55, 2  ;;  %v3144_v39 = vrot.slane %v7105_v55, 3  ;;  %v3148_v57 = vrot.slane %v7105_v55, 4 }
 0x725   : > { %v3748_v35 = vadd.f32 %v3747_v47, %v3746_v6  ;;  %3157 = vrot.lane.b32.xlu0 %v3156_v54, %s5097_s24  ;;  %3153 = vrot.lane.b32.xlu1 %v3152_v14, %s7554_s12  ;;  %s5101_s12 = smov 72   ;;  %v3265_v6 = vld [vmem:[%s7359_s7 + $0x158] sm:$0xff]  ;;  %v3266_v14 = vld [vmem:[%s7359_s7 + $0x160] sm:$0xff]  ;;  %s7814_s24 = sld [smem:[#allocation38_spill]] }
 0x726   : > { %v4330_v54 = vpack.c.bf16 %v3265_v6, %v3264_v18  ;;  %v3267_v47 = vld [vmem:[%s7359_s7 + $0x168] sm:$0xff]  ;;  %v3516_v18 = vld [vmem:[%s7363_s11 + $0x40] sm:$0xff] }
 0x727   : > { %v3168_v0 = vrot.slane %v3748_v35, 1  ;;  %v3172_v56 = vrot.slane %v3748_v35, 2  ;;  %v3180_v41 = vrot.slane %v3748_v35, 4  ;;  %v3176_v10 = vrot.slane %v3748_v35, 3  ;;  %v3517_v6 = vld [vmem:[%s7363_s11 + $0x48] sm:$0xff] }
 0x728   : > { %v3188_v2 = vrot.slane %v3748_v35, 6  ;;  %v3184_v53 = vrot.slane %v3748_v35, 5  ;;  %v3192_v29 = vrot.slane %v3748_v35, 7  ;;  %v4333_v32 = vpack.c.bf16 %v3267_v47, %v3266_v14  ;;  %v3518_v14 = vld [vmem:[%s7363_s11 + $0x50] sm:$0xf] }
 0x729   : > { %3161 = vrot.lane.b32.xlu0 %v3160_v34, %s5098_s25  ;;  %3137 = vrot.lane.b32.xlu1 %v3136_v51, %s5099_s16  ;;  %v4339_v51 = vpack.c.bf16 %v3271_v58, %v3270_v59 }
 0x72d   : > { %3165 = vrot.lane.b32.xlu0 %v3748_v35, %s5101_s12  ;;  %3141 = vrot.lane.b32.xlu1 %v3140_v45, %s5102_s28  ;;  %v3269_v35 = vld [vmem:[%s7359_s7 + $0x178] sm:$0xff] }
 0x72e   : > { %v4336_v38 = vpack.c.bf16 %v3269_v35, %v3268_v61 }
 0x731   : > { %3169 = vrot.lane.b32.xlu0 %v3168_v0, %s5103_s13  ;;  %3145 = vrot.lane.b32.xlu1 %v3144_v39, %s5104_s3  ;;  %s7811_s13 = sld [smem:[#allocation36_spill]] }
 0x732   : > { %s7812_s3 = sld [smem:[#allocation13_spill]] }
 0x735   : > { %3173 = vrot.lane.b32.xlu0 %v3172_v56, %s5105_s19  ;;  %3149 = vrot.lane.b32.xlu1 %v3148_v57, %s5106_s20  ;;  %s446_s19 = sand.u32 1, %s5052_s26  }
 0x736   : > { %s3600_s0 = scalar_lea.sflag [#allocation4], %s446_s19 }
 0x738   : > { %p7815_p9 = scmp.ne.s32.totalorder %s7812_s3, 0 }
 0x739   : > { %3181 = vrot.lane.b32.xlu0 %v3180_v41, %s5107_s27  ;;  %3177 = vrot.lane.b32.xlu1 %v3176_v10, %s5108_s21  ;;  %v3417_v41 = vld [vmem:[%s7361_s9] sm:$0xff]  ;;  %v3418_v10 = vld [vmem:[%s7361_s9 + $0x8] sm:$0xff]  ;;  %s7813_s21 = sld [smem:[#allocation37_spill]] }
 0x73d   : > { %3189 = vrot.lane.b32.xlu0 %v3188_v2, %s7557_s18  ;;  %3185 = vrot.lane.b32.xlu1 %v3184_v53, %s5109_s14  ;;  %v3419_v2 = vld [vmem:[%s7361_s9 + $0x10] sm:$0xff]  ;;  %v4342_v53 = vpack.c.bf16 %v3418_v10, %v3417_v41  ;;  %s3707_s14 = sshll.u32 %s5204_s29, 4  ;;  %s5112_s29 = smov [#allocation5]  }
 0x73e   : > { %s7310_s15 = scalar_lea.hbm %s7814_s24, %s3707_s14  ;;  %s4998_s23 = sshll.u32 %s5112_s29, 4  ;;  %s4999_s23 = int_to_ptr.vmem [resolvable:$false] %s4998_s23 }
 0x73f   : > { %s5000_s25 = scalar_lea.vmem %s4999_s23, 32 }
 0x741   : > { %3193 = vrot.lane.b32.xlu1 %v3192_v29, %s5110_s22  ;;  %v3420_v29 = vld [vmem:[%s7361_s9 + $0x18] sm:$0xff]  ;;  %s447_s22 = scalar_lea.vmem [#allocation5], %s446_s19 }
 0x742   : > { %s3612_s18 = sshll.u32 %s447_s22, 4  ;;  %s7312_s18 = int_to_ptr.vmem [resolvable:$true] %s3612_s18 }
 0x743   : > { %s4994_s10 = scalar_lea.vmem %s7312_s18, 16  ;;  %p5001_p2 = scmp.lt.s32.totalorder %s7312_s18, %s4999_s23 }
 0x744   : > { %p4995_p6 = scmp.ne.s32.totalorder %s7312_s18, %s4994_s10  ;;  %p5002_p3 = scmp.lt.s32.totalorder %s5000_s25, %s4994_s10 }
 0x746   : > { %p4996_p10 = pnand %p4995_p6, %p7815_p9  ;;  %p5003_p4 = por %p5002_p3, %p5001_p2 }
 0x748   : > { %p4997_p12 = pneg %p4996_p10 }
 0x74a   : > { %p5004_p7 = pnand %p5003_p4, %p4997_p12 }
 0x797   : > { %v3158_v8 = vpop.permute.xlu0 %3157  ;;  %v3154_v52 = vpop.permute.xlu1 %3153 }
 0x798   : > { %v3204_v62 = vsel %vm2865_vm14, %v3154_v52, %v3158_v8  ;;  %vm7809_vm14 = vcmask 1022976   ;;  %v4345_v8 = vpack.c.bf16 %v3420_v29, %v3419_v2 }
 0x79b   : > { %v3162_v60 = vpop.permute.xlu0 %3161  ;;  %v3138_v44 = vpop.permute.xlu1 %3137 }
 0x79c   : > { %v3206_v42 = vsel %vm3205_vm15, %v3204_v62, %v3162_v60  ;;  %v3197_v30 = vsel %vm3196_vm3, %v7105_v55, %v3138_v44  ;;  %v3262_v55 = vld [vmem:[%s7359_s7 + $0x140] sm:$0xff]  ;;  %v3422_v60 = vld [vmem:[%s7361_s9 + $0x28] sm:$0xff]  ;;  %vm3433_vm15 = vcmask 982016   ;;  %vm3520_vm3 = vcmask 687104  }
 0x79d   : > { %v4327_v36 = vpack.c.bf16 %v3263_v25, %v3262_v55  ;;  %v3426_v62 = vld [vmem:[%s7361_s9 + $0x48] sm:$0xff]  ;;  %v3514_v55 = vld [vmem:[%s7363_s11 + $0x30] sm:$0xff]  ;;  %v3515_v25 = vld [vmem:[%s7363_s11 + $0x38] sm:$0xff] }
 0x79f   : > { %v3166_v40 = vpop.permute.xlu0 %3165  ;;  %v3142_v22 = vpop.permute.xlu1 %3141 }
 0x7a0   : > { %v3208_v37 = vsel %vm3207_vm13, %v3206_v42, %v3166_v40  ;;  %v3199_v28 = vsel %vm3198_vm9, %v3197_v30, %v3142_v22  ;;  %v3423_v40 = vld [vmem:[%s7361_s9 + $0x30] sm:$0xff]  ;;  %v3424_v22 = vld [vmem:[%s7361_s9 + $0x38] sm:$0xff] }
 0x7a1   : > { %v3428_v42 = vld [vmem:[%s7361_s9 + $0x58] sm:$0xff] }
 0x7a2   : > { %v4357_v30 = vpack.c.bf16 %v3428_v42, %v3427_v46 }
 0x7a3   : > { %v3170_v48 = vpop.permute.xlu0 %3169  ;;  %v3146_v9 = vpop.permute.xlu1 %3145 }
 0x7a4   : > { %v3210_v63 = vsel %vm3209_vm2, %v3208_v37, %v3170_v48  ;;  %v3200_v15 = vsel %vm1531_vm7, %v3199_v28, %v3146_v9  ;;  %vm3273_vm7 = vcmask 130048   ;;  %v4351_v48 = vpack.c.bf16 %v3424_v22, %v3423_v40  ;;  %v3425_v9 = vld [vmem:[%s7361_s9 + $0x40] sm:$0xff]  ;;  %v3430_v28 = vld [vmem:[%s7361_s9 + $0x68] sm:$0xff] }
 0x7a5   : > { %v4354_v19 = vpack.c.bf16 %v3426_v62, %v3425_v9  ;;  %v3429_v37 = vld [vmem:[%s7361_s9 + $0x60] sm:$0xff] }
 0x7a7   : > { %v3174_v27 = vpop.permute.xlu0 %3173  ;;  %v3150_v31 = vpop.permute.xlu1 %3149 }
 0x7a8   : > { %v3202_v23 = vsel %vm3201_vm4, %v3200_v15, %v3150_v31  ;;  %v3212_v26 = vsel %vm3211_vm12, %v3210_v63, %v3174_v27  ;;  %v4360_v63 = vpack.c.bf16 %v3430_v28, %v3429_v37  ;;  %v3431_v15 = vld [vmem:[%s7361_s9 + $0x70] sm:$0xff] }
 0x7a9   : > { %v3203_v33 = vsel %vm7809_vm14, %v3202_v23, %v3154_v52  ;;  %3340 = vmatprep.mubr.f32.mxu1 %v3212_v26  ;;  %v3421_v52 = vld [vmem:[%s7361_s9 + $0x20] sm:$0xff] }
 0x7aa   : > { %3341 = vmatmul.mubr.f32.vlgmr.msra.gmra.mrb[16].mxu1 %v3203_v33  ;;  %v4348_v44 = vpack.c.bf16 %v3422_v60, %v3421_v52  ;;  %v3272_v23 = vld [vmem:[%s7360_s8] sm:$0x1] }
 0x7ab   : > { %4316 = vmatpush1.bf16.msra.mxu1 %v4315_v1  ;;  %v3178_v43 = vpop.permute.xlu1 %3177  ;;  %v3182_v4 = vpop.permute.xlu0 %3181 }
 0x7ac   : > { %4317 = vmatprep.subr.bf16.mxu1 %v5100_v16  ;;  %v3214_v34 = vsel %vm3213_vm0, %v3174_v27, %v3178_v43 }
 0x7ad   : > { %v3216_v45 = vsel %vm3215_vm6, %v3214_v34, %v3182_v4 }
 0x7af   : > { %4319 = vmatpush1.bf16.msra.mxu1 %v4318_v50  ;;  %v3186_v5 = vpop.permute.xlu1 %3185  ;;  %v3190_v0 = vpop.permute.xlu0 %3189 }
 0x7b0   : > { %4320 = vmatprep.subr.bf16.mxu1 %v5100_v16  ;;  %v3218_v39 = vsel %vm3217_vm5, %v3216_v45, %v3186_v5  ;;  %v3510_v5 = vld [vmem:[%s7363_s11 + $0x10] sm:$0xff] }
 0x7b1   : > { %v3219_v56 = vsel %vm7810_vm11, %v3218_v39, %v3190_v0 }
 0x7b3   : > { %4322 = vmatpush1.bf16.msra.mxu1 %v4321_v20  ;;  %v3194_v21 = vpop.permute.xlu1 %3193  ;;  %v3511_v20 = vld [vmem:[%s7363_s11 + $0x18] sm:$0xff] }
 0x7b4   : > { %3703 = vmatprep.mubr.msk.f32.mxu1 %vm3273_vm7, %v3194_v21  ;;  %4323 = vmatprep.subr.bf16.mxu1 %v5100_v16  ;;  %v3221_v57 = vsel %vm3220_vm8, %v3219_v56, %v3194_v21  ;;  %v4366_v11 = vpack.c.bf16 %v3511_v20, %v3510_v5  ;;  %v3513_v21 = vld [vmem:[%s7363_s11 + $0x28] sm:$0xff] }
 0x7b7   : > { %4325 = vmatpush1.bf16.msra.mxu1 %v4324_v17  ;;  %v4369_v17 = vpack.c.bf16 %v3513_v21, %v3512_v12 }
 0x7b8   : > { %4326 = vmatprep.subr.bf16.mxu1 %v5100_v16 }
 0x7bb   : > { %4328 = vmatpush1.bf16.msra.mxu1 %v4327_v36  ;;  %v4372_v36 = vpack.c.bf16 %v3515_v25, %v3514_v55 }
 0x7bc   : > { %4329 = vmatprep.subr.bf16.mxu1 %v5100_v16 }
 0x7bf   : > { %4331 = vmatpush1.bf16.msra.mxu1 %v4330_v54  ;;  %v4375_v54 = vpack.c.bf16 %v3517_v6, %v3516_v18 }
 0x7c0   : > { %4332 = vmatprep.subr.bf16.mxu1 %v5100_v16 }
 0x7c3   : > { %4334 = vmatpush1.bf16.msra.mxu1 %v4333_v32 }
 0x7c4   : > { %4335 = vmatprep.subr.bf16.mxu1 %v5100_v16 }
 0x7c7   : > { %4337 = vmatpush1.bf16.msra.mxu1 %v4336_v38 }
 0x7c8   : > { %4338 = vmatprep.subr.bf16.mxu1 %v5100_v16 }
 0x7cb   : > { %4340 = vmatpush1.bf16.msra.mxu1 %v4339_v51 }
 0x7cc   : > { %4341 = vmatprep.subr.bf16.mxu1 %v5100_v16 }
 0x7ce   : > { %3411 = vmatmul.mubr.f32.vlgmr.msra.gmra.mrb[18].mxu1 %v3221_v57 }
 0x7cf   : > { %4343 = vmatpush3.bf16.msra.mxu1 %v4342_v53  ;;  %3842 = vmatprep.mubr.msk.f32.mxu1 %vm5111_vm1, %v7601_v7 }
 0x7d0   : > { %4344 = vmatprep.subr.bf16.mxu1 %v5100_v16 }
 0x7d3   : > { %4346 = vmatpush3.bf16.msra.mxu1 %v4345_v8 }
 0x7d4   : > { %4347 = vmatprep.subr.bf16.mxu1 %v5100_v16 }
 0x7d7   : > { %4349 = vmatpush3.bf16.msra.mxu1 %v4348_v44 }
 0x7d8   : > { %4350 = vmatprep.subr.bf16.mxu1 %v5100_v16 }
 0x7db   : > { %4352 = vmatpush3.bf16.msra.mxu1 %v4351_v48 }
 0x7dc   : > { %4353 = vmatprep.subr.bf16.mxu1 %v5100_v16 }
 0x7df   : > { %4355 = vmatpush3.bf16.msra.mxu1 %v4354_v19 }
 0x7e0   : > { %4356 = vmatprep.subr.bf16.mxu1 %v5100_v16 }
 0x7e3   : > { %4358 = vmatpush3.bf16.msra.mxu1 %v4357_v30 }
 0x7e4   : > { %4359 = vmatprep.subr.bf16.mxu1 %v5100_v16 }
 0x7e7   : > { %4361 = vmatpush3.bf16.msra.mxu1 %v4360_v63 }
 0x7e8   : > { %3840 = vmatprep.subr.mxu1 %v7601_v7 }
 0x7eb   : > { %3841 = vmatpush3.msra.mxu1 %v3431_v15 }
 0x7ec   : > { %4362 = vmatprep.subr.bf16.mxu1 %v5100_v16 }
 0x87d   : > { %v3781_v27 = vpop.f32.mrb[16].mxu1 }
 0x87e   : > { %v3782_v31 = vpop.f32.mrb[17].mxu1 }
 0x87f   : > { %v3783_v1 = vadd.f32 %v3782_v31, %v3781_v27 }
 0x881   : > { %v3343_v26 = vadd.f32 %v3783_v1, %v3272_v23 }
 0x8a1   : > { %v3412_v33 = vpop.f32.mrb[18].mxu1 }
 0x8a2   : > { %v3413_v43 = vadd.f32 %v3412_v33, %v3343_v26  ;;  %v3414_v50 = vpop.f32.mrb[19].mxu1 }
 0x8a4   : > { %v3416_v13 = vmax.f32 %v3413_v43, 0.0 }
 0x8a6   : > { %3843 = vmatmul.mubr.msk.f32.vlgmr.msra.gmra.mrb[20].mxu1 %vm3433_vm15, %v3416_v13 }
 0x8a7   : > { %4364 = vmatpush3.bf16.msra.mxu1 %v4363_v3  ;;  %3867 = vmatprep.mubr.msk.f32.mxu1 %vm5111_vm1, %v7601_v7 }
 0x8a8   : > { %4365 = vmatprep.subr.bf16.mxu1 %v5100_v16 }
 0x8ab   : > { %4367 = vmatpush3.bf16.msra.mxu1 %v4366_v11 }
 0x8ac   : > { %4368 = vmatprep.subr.bf16.mxu1 %v5100_v16 }
 0x8af   : > { %4370 = vmatpush3.bf16.msra.mxu1 %v4369_v17 }
 0x8b0   : > { %4371 = vmatprep.subr.bf16.mxu1 %v5100_v16 }
 0x8b3   : > { %4373 = vmatpush3.bf16.msra.mxu1 %v4372_v36 }
 0x8b4   : > { %4374 = vmatprep.subr.bf16.mxu1 %v5100_v16  ;;  %v3432_v16 = vld [vmem:[%s7811_s13] sm:$0x1] }
 0x8b7   : > { %4376 = vmatpush3.bf16.msra.mxu1 %v4375_v54 }
 0x8b8   : > { %3865 = vmatprep.subr.mxu1 %v7601_v7  ;;  %v3519_v7 = vld [vmem:[%s7813_s21] sm:$0x1] }
 0x8bb   : > { %3866 = vmatpush3.msk.msra.mxu1 %vm1261_vm10, %v3518_v14  ;;  %vm3597_vm10 = vcmask 73728  }
 0x979   : > { %v3503_v47 = vpop.f32.mrb[20].mxu1 }
 0x97a   : > { %v3504_v32 = vadd.f32 %v3503_v47, %v3432_v16  ;;  %v3844_v61 = vpop.f32.mrb[21].mxu1 }
 0x97c   : > { %v3507_v35 = vmax.f32 %v3504_v32, 0.0 }
 0x97e   : > { %3868 = vmatmul.mubr.msk.f32.vlgmr.msra.gmra.mrb[22].mxu1 %vm3520_vm3, %v3507_v35 }
 0xa51   : > { %v3593_v4 = vpop.f32.mrb[22].mxu1 }
 0xa52   : > { %v3594_v38 = vadd.f32 %v3593_v4, %v3519_v7  ;;  %v3869_v59 = vpop.f32.mrb[23].mxu1 }
 0xa54   : > { %3598 = vst.msk [vmem:[%s447_s22] sm:$0x1] %vm3597_vm10, %v3594_v38 }
 0xa55   : > { %5007 = shalt.err (!%p5004_p7)
}
 0xa56   : > { %s5008_s16 = scalar_lea.hbm %s7310_s15, 16  ;;  %s5012_s13 = scalar_lea.hbm %s7814_s24, 32 }
 0xa57   : > { %p5009_p8 = scmp.ne.s32.totalorder %s7310_s15, %s5008_s16  ;;  %p5013_p1 = scmp.lt.u32.totalorder %s7310_s15, %s7814_s24 }
 0xa58   : > { %p5014_p0 = scmp.lt.u32.totalorder %s5012_s13, %s5008_s16  ;;  %p5016_p6 = scmp.lt.u32.totalorder %s5008_s16, %s7310_s15 }
 0xa59   : > { %p5010_p11 = pnand %p5009_p8, %p7815_p9 }
 0xa5a   : > { %p5015_p5 = por %p5014_p0, %p5013_p1 }
 0xa5b   : > { %p5011_p13 = pneg %p5010_p11 }
 0xa5c   : > { %p5017_p10 = por %p5016_p6, %p5015_p5 }
 0xa5e   : > { %p5018_p12 = pnand %p5017_p10, %p5011_p13 }
 0xa60   : > { %5021 = shalt.err (!%p5018_p12)
}
 0xa61   : > { %4387 = dma.vmem_to_hbm [thread:$0]  (%p7815_p9), %s7312_s18, 16, %s7310_s15, %s3600_s0  }
 0xa62 PF: > { %s7816_s27 = sld [smem:[#allocation10_spill]]  ;;  %s7817_s21 = sld [smem:[#allocation8_spill]] }
 0xa63   : > { %s7818_s14 = sld [smem:[#allocation14_spill]] }
 0xa68   : > { %p4399_p2 = scmp.ge.s32.totalorder %s7816_s27, 2  ;;  %s3624_s22 = sand.u32 1, %s7817_s21  }
 0xa69   : > { %p7819_p3 = scmp.ne.s32.totalorder %s7818_s14, 0  ;;  %s3625_s17 = scalar_lea.sflag [#allocation4], %s3624_s22 }
 0xa6b   : > { %p4394_p4 = pnand %p4399_p2, %p7819_p3 }
 0xa6d   : > { %5043 = dma.done.wait (!%p4394_p4), %s3625_s17, 16  }
 0xa6e   : > { %5045 = vsyncadd (!%p4394_p4), %s3625_s17, 4294967280  ;;  %s7820_s28 = sld [smem:[#allocation11_spill]]  ;;  %s7821_s30 = sld [smem:[#allocation9_spill]] }
 0xa6f   : > { %s7822_s27 = sld [smem:[#allocation12_spill]]  ;;  %s7823_s25 = smov %s5052_s26 }
 0xa74   : > { %p24_p7 = scmp.ge.s32.totalorder %s7820_s28, 4   ;;  %s7824_s26 = smov %s7821_s30 }
 0xa76   :  { %26 = sbr.rel (!%p24_p7) target bundleno = 10 (0xa), region = 112 }
 0xa7d   :  { %3629 = vsyncpa [#allocation3], 1 }
 0xa7e   :  { %3631 = vsyncpa [#allocation3 + $0x1], 1 }
 0xa7f   :  { %3632 = vsyncpa [#allocation4], 1 }
 0xa80   :  { %3634 = vsyncpa [#allocation4 + $0x1], 1 }

</bundles_post_ra>
